<compile_context>
chip_gen: v5e
topology: v5e:2x2
jax: 0.10.0
libtpu: 0.0.40
codegen_flags: <defaults>
</compile_context>

<pallas_src>
import functools

import jax
import jax.numpy as jnp
from jax.experimental import pallas as pl
from jax.experimental.pallas import tpu as pltpu

EPS = 1e-5
EXPANSION = 4


# ----------------------------------------------------------------------------
# tile pickers (no host padding: prefer exact divisors / full-extent blocks)
# ----------------------------------------------------------------------------
def _pick_tile_m(m, target=512):
    if m <= target:
        return m, False                      # full extent, no masking needed
    for cand in range(target, 7, -8):        # largest multiple-of-8 divisor
        if m % cand == 0:
            return cand, False
    return target, True                      # ragged rows: mask in-kernel


def _pick_tile_n(n, target=256):
    if n <= target:
        return n
    for cand in (256, 128):
        if n % cand == 0:
            return cand
    return 128                               # ragged lanes: masked on writeback


def _pick_tile_k(k):
    if k <= 1024:
        return k
    for cand in (512, 384, 256, 128):        # must divide K exactly
        if k % cand == 0:
            return cand
    return k


# ----------------------------------------------------------------------------
# Kernel 1: fused GEMM
#   y = [relu(A*a_in + b_in)] @ B            (optional per-K-column BN prologue)
#   r = [relu]( y  [+ S*a_sc + b_sc] )       (optional residual + BN + ReLU)
#   outputs: r  and per-M-block partial column sum / sum-of-squares of r
#            (BN batch stats fused into the epilogue).
# ----------------------------------------------------------------------------
def _fused_gemm_kernel(*refs, has_in_affine, has_residual, relu_out,
                       m_total, tile_m, mask_rows):
    idx = 0
    a_ref = refs[idx]; idx += 1
    b_ref = refs[idx]; idx += 1
    if has_in_affine:
        ain_ref = refs[idx]; bin_ref = refs[idx + 1]; idx += 2
    if has_residual:
        s_ref = refs[idx]; asc_ref = refs[idx + 1]; bsc_ref = refs[idx + 2]; idx += 3
    o_ref = refs[idx]; stats_ref = refs[idx + 1]; acc_ref = refs[idx + 2]

    k = pl.program_id(2)

    @pl.when(k == 0)
    def _():
        acc_ref[...] = jnp.zeros_like(acc_ref)

    a = a_ref[...]
    if has_in_affine:                                   # fused BN-apply prologue
        a = jnp.maximum(a * ain_ref[...] + bin_ref[...], 0.0)
    acc_ref[...] += jnp.dot(a.astype(jnp.bfloat16), b_ref[...],
                            preferred_element_type=jnp.float32)

    @pl.when(k == pl.num_programs(2) - 1)
    def _():
        r = acc_ref[...]
        if has_residual:                                # fused residual + BN_sc
            r = r + s_ref[...] * asc_ref[...] + bsc_ref[...]
        if relu_out:
            r = jnp.maximum(r, 0.0)
        o_ref[...] = r
        if mask_rows:                                   # ragged-M fallback
            rows = (pl.program_id(0) * tile_m
                    + jax.lax.broadcasted_iota(jnp.int32, r.shape, 0))
            r = jnp.where(rows < m_total, r, 0.0)
        ssum = jnp.sum(r, axis=0, keepdims=True)
        ssq = jnp.sum(r * r, axis=0, keepdims=True)
        row = jax.lax.broadcasted_iota(jnp.int32, (8, r.shape[1]), 0)
        stats_ref[...] = jnp.where(row == 0, ssum,
                                   jnp.where(row == 1, ssq, 0.0))[None]


def fused_gemm(a, b, in_affine=None, residual=None, relu_out=False):
    """Returns (r, mean, var) where mean/var are per-column batch stats of r."""
    M, K = a.shape
    K2, Nc = b.shape
    assert K == K2
    tm, mask_rows = _pick_tile_m(M)
    tn = _pick_tile_n(Nc)
    tk = _pick_tile_k(K)
    assert K % tk == 0
    gm, gn, gk = pl.cdiv(M, tm), pl.cdiv(Nc, tn), K // tk

    in_specs = [pl.BlockSpec((tm, tk), lambda i, j, k: (i, k)),
                pl.BlockSpec((tk, tn), lambda i, j, k: (k, j))]
    operands = [a, b]
    if in_affine is not None:
        ain, bin_ = in_affine
        in_specs += [pl.BlockSpec((1, tk), lambda i, j, k: (0, k)),
                     pl.BlockSpec((1, tk), lambda i, j, k: (0, k))]
        operands += [ain.reshape(1, K), bin_.reshape(1, K)]
    if residual is not None:
        s, asc, bsc = residual
        in_specs += [pl.BlockSpec((tm, tn), lambda i, j, k: (i, j)),
                     pl.BlockSpec((1, tn), lambda i, j, k: (0, j)),
                     pl.BlockSpec((1, tn), lambda i, j, k: (0, j))]
        operands += [s, asc.reshape(1, Nc), bsc.reshape(1, Nc)]

    kernel = functools.partial(_fused_gemm_kernel,
                               has_in_affine=in_affine is not None,
                               has_residual=residual is not None,
                               relu_out=relu_out,
                               m_total=M, tile_m=tm, mask_rows=mask_rows)
    r, stats = pl.pallas_call(
        kernel,
        out_shape=(jax.ShapeDtypeStruct((M, Nc), jnp.float32),
                   jax.ShapeDtypeStruct((gm, 8, Nc), jnp.float32)),
        grid_spec=pltpu.PrefetchScalarGridSpec(
            num_scalar_prefetch=0,
            grid=(gm, gn, gk),
            in_specs=in_specs,
            out_specs=(pl.BlockSpec((tm, tn), lambda i, j, k: (i, j)),
                       pl.BlockSpec((1, 8, tn), lambda i, j, k: (i, 0, j))),
            scratch_shapes=[pltpu.VMEM((tm, tn), jnp.float32)]),
        compiler_params=pltpu.CompilerParams(
            dimension_semantics=("parallel", "parallel", "arbitrary")),
    )(*operands)

    sums = jnp.sum(stats, axis=0)                       # (8, Nc), tiny
    mean = sums[0] / M
    var = sums[1] / M - mean * mean                     # biased var (train mode)
    return r, mean, var


# ----------------------------------------------------------------------------
# Kernel 2: direct 3x3 conv (pad=1, stride s) with fused BN2 batch stats.
# Input is pre-split host-side into s*s phase planes of the spatially padded
# activation, so every tap is a *static* shifted window -> 9 unrolled MXU dots.
# ----------------------------------------------------------------------------
def _conv3x3_kernel(planes_ref, w_ref, y_ref, stats_ref, *, taps, ho, wo):
    cin = planes_ref.shape[-1]
    cout = w_ref.shape[-1]
    acc = jnp.zeros((ho * wo, cout), jnp.float32)
    for t, (p, ro, co) in enumerate(taps):              # 9 taps, fully unrolled
        win = planes_ref[0, p]                          # (Hq, Wq, cin)
        patch = win[ro:ro + ho, co:co + wo, :]          # static shifted window
        patch = patch.reshape(ho * wo, cin).astype(jnp.bfloat16)
        acc = acc + jnp.dot(patch, w_ref[t], preferred_element_type=jnp.float32)
    y_ref[...] = acc.reshape(1, ho, wo, cout)
    # fused BN2 batch-stat partials (per image, reduced on the host)
    ssum = jnp.sum(acc, axis=0, keepdims=True)
    ssq = jnp.sum(acc * acc, axis=0, keepdims=True)
    row = jax.lax.broadcasted_iota(jnp.int32, (8, cout), 0)
    stats_ref[...] = jnp.where(row == 0, ssum,
                               jnp.where(row == 1, ssq, 0.0))[None]


def _build_planes(x1, stride, ho, wo):
    """Spatial pad=1 then split into stride*stride phase planes (~1x data)."""
    n, h, w, c = x1.shape
    s = stride
    xp = jnp.pad(x1, ((0, 0), (1, 1), (1, 1), (0, 0)))
    hq, wq = ho + 2 // s, wo + 2 // s
    planes = []
    for ph in range(s):
        for pw in range(s):
            p = xp[:, ph::s, pw::s, :][:, :hq, :wq, :]
            dh, dw = hq - p.shape[1], wq - p.shape[2]
            if dh or dw:
                p = jnp.pad(p, ((0, 0), (0, dh), (0, dw), (0, 0)))
            planes.append(p)
    planes = jnp.stack(planes, axis=1)                  # (N, s*s, Hq, Wq, C)
    taps = tuple(((kh % s) * s + (kw % s), kh // s, kw // s)
                 for kh in range(3) for kw in range(3))
    return planes, taps


def conv3x3_bn_stats(x1, w_taps, stride):
    """x1: (N,H,W,C) NHWC, w_taps: (9, C, Cout) bf16.  Returns (y2, mean, var)."""
    n, h, w, c = x1.shape
    cout = w_taps.shape[-1]
    ho = (h - 1) // stride + 1
    wo = (w - 1) // stride + 1
    planes, taps = _build_planes(x1, stride, ho, wo)
    s2, hq, wq = planes.shape[1], planes.shape[2], planes.shape[3]
    tn = _pick_tile_n(cout)
    gj = pl.cdiv(cout, tn)
    kernel = functools.partial(_conv3x3_kernel, taps=taps, ho=ho, wo=wo)
    # TODO(synk): for very large H*W*C, block the output-row dim with an
    # Element-indexed (haloed) input window instead of one full image per step.
    y2, stats = pl.pallas_call(
        kernel,
        out_shape=(jax.ShapeDtypeStruct((n, ho, wo, cout), jnp.float32),
                   jax.ShapeDtypeStruct((n, 8, cout), jnp.float32)),
        grid_spec=pltpu.PrefetchScalarGridSpec(
            num_scalar_prefetch=0,
            grid=(n, gj),
            in_specs=[pl.BlockSpec((1, s2, hq, wq, c),
                                   lambda b, j: (b, 0, 0, 0, 0)),
                      pl.BlockSpec((9, c, tn), lambda b, j: (0, 0, j))],
            out_specs=(pl.BlockSpec((1, ho, wo, tn), lambda b, j: (b, 0, 0, j)),
                       pl.BlockSpec((1, 8, tn), lambda b, j: (b, 0, j)))),
        compiler_params=pltpu.CompilerParams(
            dimension_semantics=("parallel", "parallel")),
    )(planes, w_taps)

    m = n * ho * wo
    sums = jnp.sum(stats, axis=0)
    mean = sums[0] / m
    var = sums[1] / m - mean * mean
    return y2, mean, var


# ----------------------------------------------------------------------------
# Bottleneck forward
# ----------------------------------------------------------------------------
def bottleneck_forward(x_nchw, params, stride):
    n, cin, h, w = x_nchw.shape
    c_out = params["w1"].shape[0]
    cexp = EXPANSION * c_out
    ho = (h - 1) // stride + 1
    wo = (w - 1) // stride + 1

    # TODO(synk): across a full network keep activations channels-last so these
    # entry/exit transposes happen once, not per block.
    x = jnp.transpose(x_nchw, (0, 2, 3, 1))             # NHWC
    xf = x.reshape(n * h * w, cin)

    # weights in channels-last GEMM layout, bf16 for the MXU
    w1 = params["w1"].reshape(c_out, cin).T.astype(jnp.bfloat16)
    w2 = jnp.transpose(params["w2"], (2, 3, 1, 0)).reshape(
        9, c_out, c_out).astype(jnp.bfloat16)
    w3 = params["w3"].reshape(cexp, c_out).T.astype(jnp.bfloat16)

    # ---- conv1 (1x1) with fused BN1 batch stats ----
    y1, m1, v1 = fused_gemm(xf, w1)
    a1 = params["g1"] * jax.lax.rsqrt(v1 + EPS)
    b1 = params["b1"] - m1 * a1

    # ---- BN1 apply + ReLU (XLA fuses this into conv2's plane construction) ----
    x1 = jnp.maximum(y1 * a1[None, :] + b1[None, :], 0.0).reshape(n, h, w, c_out)

    # ---- conv2 (3x3, stride, pad=1) direct conv with fused BN2 stats ----
    y2, m2, v2 = conv3x3_bn_stats(x1, w2, stride)
    a2 = params["g2"] * jax.lax.rsqrt(v2 + EPS)
    b2 = params["b2"] - m2 * a2

    # ---- shortcut ----
    if stride != 1 or cin != cexp:
        # TODO(synk): fold the spatial stride into the GEMM's A index_map.
        xs = x[:, ::stride, ::stride, :].reshape(n * ho * wo, cin)
        wsc = params["wsc"].reshape(cexp, cin).T.astype(jnp.bfloat16)
        ysc, msc, vsc = fused_gemm(xs, wsc)
        asc = params["gsc"] * jax.lax.rsqrt(vsc + EPS)
        bsc = params["bsc"] - msc * asc
        sc = ysc
    else:
        sc = xf
        asc = jnp.ones((cexp,), jnp.float32)
        bsc = jnp.zeros((cexp,), jnp.float32)

    # ---- conv3 (1x1): fused BN2-apply prologue, residual+BN_sc+ReLU epilogue,
    #      and fused BN3 batch stats ----
    y2f = y2.reshape(n * ho * wo, c_out)
    r, m3, v3 = fused_gemm(y2f, w3, in_affine=(a2, b2),
                           residual=(sc, asc, bsc), relu_out=True)
    a3 = params["g3"] * jax.lax.rsqrt(v3 + EPS)
    b3 = params["b3"] - m3 * a3

    # ---- BN3 apply (no final relu); XLA fuses into the NCHW transpose ----
    x3 = (r * a3[None, :] + b3[None, :]).reshape(n, ho, wo, cexp)
    return jnp.transpose(x3, (0, 3, 1, 2))


bottleneck = jax.jit(bottleneck_forward, static_argnums=(2,))


# ----------------------------------------------------------------------------
# deterministic parameter init (shapes from the PyTorch __init__)
# ----------------------------------------------------------------------------
def init_params(key, c_in, c_out, stride):
    cexp = EXPANSION * c_out
    ks = jax.random.split(key, 12)

    def conv_w(k, o, i, kh, kw):
        return jax.random.normal(k, (o, i, kh, kw), jnp.float32) * (i * kh * kw) ** -0.5

    p = {
        "w1": conv_w(ks[0], c_out, c_in, 1, 1),
        "g1": 1.0 + 0.1 * jax.random.normal(ks[1], (c_out,), jnp.float32),
        "b1": 0.1 * jax.random.normal(ks[2], (c_out,), jnp.float32),
        "w2": conv_w(ks[3], c_out, c_out, 3, 3),
        "g2": 1.0 + 0.1 * jax.random.normal(ks[4], (c_out,), jnp.float32),
        "b2": 0.1 * jax.random.normal(ks[5], (c_out,), jnp.float32),
        "w3": conv_w(ks[6], cexp, c_out, 1, 1),
        "g3": 1.0 + 0.1 * jax.random.normal(ks[7], (cexp,), jnp.float32),
        "b3": 0.1 * jax.random.normal(ks[8], (cexp,), jnp.float32),
    }
    if stride != 1 or c_in != cexp:
        p["wsc"] = conv_w(ks[9], cexp, c_in, 1, 1)
        p["gsc"] = 1.0 + 0.1 * jax.random.normal(ks[10], (cexp,), jnp.float32)
        p["bsc"] = 0.1 * jax.random.normal(ks[11], (cexp,), jnp.float32)
    return p


# ----------------------------------------------------------------------------
# pure-JAX reference (NCHW, mirrors the PyTorch forward exactly, f32 HIGHEST)
# ----------------------------------------------------------------------------
def _ref_bn_train(x, gamma, beta):
    mean = jnp.mean(x, axis=(0, 2, 3), keepdims=True)
    var = jnp.mean((x - mean) ** 2, axis=(0, 2, 3), keepdims=True)
    return ((x - mean) * jax.lax.rsqrt(var + EPS) * gamma[None, :, None, None]
            + beta[None, :, None, None])


def _ref_conv(x, w, stride=1, padding=0):
    return jax.lax.conv_general_dilated(
        x, w, (stride, stride), [(padding, padding)] * 2,
        dimension_numbers=("NCHW", "OIHW", "NCHW"),
        precision=jax.lax.Precision.HIGHEST)


def bottleneck_ref(x, params, stride):
    cexp = params["w3"].shape[0]
    x1 = jax.nn.relu(_ref_bn_train(_ref_conv(x, params["w1"]), params["g1"], params["b1"]))
    x2 = jax.nn.relu(_ref_bn_train(_ref_conv(x1, params["w2"], stride, 1), params["g2"], params["b2"]))
    y3 = _ref_conv(x2, params["w3"])
    if stride != 1 or x.shape[1] != cexp:
        sc = _ref_bn_train(_ref_conv(x, params["wsc"], stride), params["gsc"], params["bsc"])
    else:
        sc = x
    return _ref_bn_train(jax.nn.relu(y3 + sc), params["g3"], params["b3"])


# ----------------------------------------------------------------------------
if __name__ == "__main__":
    key = jax.random.PRNGKey(0)
    kx, kp1, kp2 = jax.random.split(key, 3)

    # tolerance covers bf16 MXU operands (f32 accumulation) vs f32-HIGHEST ref
    ATOL, RTOL = 6e-2, 3e-2

    # Case 1: projection shortcut (stride=2, c_in != 4*c_out)
    N, c_in, H, W = 2, 4, 16, 16
    c_out, stride = 8, 2
    x = jax.random.normal(kx, (N, c_in, H, W), jnp.float32)
    params = init_params(kp1, c_in, c_out, stride)
    out = jax.block_until_ready(bottleneck(x, params, stride))
    ref = bottleneck_ref(x, params, stride)
    assert out.shape == (N, EXPANSION * c_out, H // stride, W // stride), out.shape
    assert jnp.allclose(out, ref, atol=ATOL, rtol=RTOL), float(jnp.max(jnp.abs(out - ref)))

    # Case 2: identity shortcut (stride=1, c_in == 4*c_out)
    c_in2, c_out2, stride2 = 32, 8, 1
    x2 = jax.random.normal(kx, (N, c_in2, H, W), jnp.float32)
    params2 = init_params(kp2, c_in2, c_out2, stride2)
    out2 = jax.block_until_ready(bottleneck(x2, params2, stride2))
    ref2 = bottleneck_ref(x2, params2, stride2)
    assert out2.shape == (N, EXPANSION * c_out2, H, W), out2.shape
    assert jnp.allclose(out2, ref2, atol=ATOL, rtol=RTOL), float(jnp.max(jnp.abs(out2 - ref2)))

    print("KERNEL_OK")
</pallas_src>

<mosaic_0001>
module attributes {stable_mosaic.version = 11 : i64} {
  func.func @_fused_gemm_kernel(%arg0: i32, %arg1: i32, %arg2: i32, %arg3: memref<512x4xf32, #tpu.memory_space<vmem>>, %arg4: memref<4x8xbf16, #tpu.memory_space<vmem>>, %arg5: memref<512x8xf32, #tpu.memory_space<vmem>>, %arg6: memref<1x8x8xf32, #tpu.memory_space<vmem>>, %arg7: memref<512x8xf32, #tpu.memory_space<vmem>>) attributes {dimension_semantics = [#tpu.dimension_semantics<parallel>, #tpu.dimension_semantics<parallel>, #tpu.dimension_semantics<arbitrary>], iteration_bounds = array<i64: 1, 1, 1>, scalar_prefetch = 0 : i64, scratch_operands = 1 : i64, tpu.core_type = #tpu.core_type<tc>, window_params = [{transform_indices = @transform_0, window_bounds = array<i64: 512, 4>}, {transform_indices = @transform_1, window_bounds = array<i64: 4, 8>}, {transform_indices = @transform_2, window_bounds = array<i64: 512, 8>}, {transform_indices = @transform_3, window_bounds = array<i64: 1, 8, 8>}]} {
    %c0_i32 = arith.constant 0 : i32
    %0 = arith.cmpi eq, %arg2, %c0_i32 : i32
    %1 = arith.extui %0 : i1 to i32
    %c0_i32_0 = arith.constant 0 : i32
    %2 = arith.cmpi ne, %1, %c0_i32_0 : i32
    scf.if %2 {
      %cst_10 = arith.constant 0.000000e+00 : f32
      %13 = vector.broadcast %cst_10 : f32 to vector<512x8xf32>
      %c0_11 = arith.constant 0 : index
      %c0_12 = arith.constant 0 : index
      %14 = vector.load %arg7[%c0_11, %c0_12] : memref<512x8xf32, #tpu.memory_space<vmem>>, vector<512x8xf32>
      tpu.vector_store %arg7[%c0_11, %c0_12], %13 {strides = array<i32>} : memref<512x8xf32, #tpu.memory_space<vmem>>, vector<512x8xf32>,
    } else {
    }
    %c0 = arith.constant 0 : index
    %c0_1 = arith.constant 0 : index
    %3 = vector.load %arg3[%c0, %c0_1] : memref<512x4xf32, #tpu.memory_space<vmem>>, vector<512x4xf32>
    %c0_2 = arith.constant 0 : index
    %c0_3 = arith.constant 0 : index
    %4 = vector.load %arg7[%c0_2, %c0_3] : memref<512x8xf32, #tpu.memory_space<vmem>>, vector<512x8xf32>
    %5 = arith.truncf %3 : vector<512x4xf32> to vector<512x4xbf16>
    %c0_4 = arith.constant 0 : index
    %c0_5 = arith.constant 0 : index
    %6 = vector.load %arg4[%c0_4, %c0_5] : memref<4x8xbf16, #tpu.memory_space<vmem>>, vector<4x8xbf16>
    %cst = arith.constant dense<0.000000e+00> : vector<512x8xf32>
    %7 = tpu.matmul %5, %6, %cst {dimension_numbers = #tpu.dot_dimension_numbers<[1], [0], [0], [1], [0, 0, 1, 1], [], []>} : vector<512x4xbf16>, vector<4x8xbf16>, vector<512x8xf32> -> vector<512x8xf32>
    %8 = arith.addf %4, %7 : vector<512x8xf32>
    %c0_6 = arith.constant 0 : index
    %c0_7 = arith.constant 0 : index
    %9 = vector.load %arg7[%c0_6, %c0_7] : memref<512x8xf32, #tpu.memory_space<vmem>>, vector<512x8xf32>
    tpu.vector_store %arg7[%c0_6, %c0_7], %8 {strides = array<i32>} : memref<512x8xf32, #tpu.memory_space<vmem>>, vector<512x8xf32>,
    %c0_i32_8 = arith.constant 0 : i32
    %10 = arith.cmpi eq, %arg2, %c0_i32_8 : i32
    %11 = arith.extui %10 : i1 to i32
    %c0_i32_9 = arith.constant 0 : i32
    %12 = arith.cmpi ne, %11, %c0_i32_9 : i32
    scf.if %12 {
      %c0_10 = arith.constant 0 : index
      %c0_11 = arith.constant 0 : index
      %13 = vector.load %arg7[%c0_10, %c0_11] : memref<512x8xf32, #tpu.memory_space<vmem>>, vector<512x8xf32>
      %c0_12 = arith.constant 0 : index
      %c0_13 = arith.constant 0 : index
      %14 = vector.load %arg5[%c0_12, %c0_13] : memref<512x8xf32, #tpu.memory_space<vmem>>, vector<512x8xf32>
      tpu.vector_store %arg5[%c0_12, %c0_13], %13 {strides = array<i32>} : memref<512x8xf32, #tpu.memory_space<vmem>>, vector<512x8xf32>,
      %cst_14 = arith.constant dense<0.000000e+00> : vector<8xf32>
      %15 = vector.multi_reduction <add>, %13, %cst_14 [0] : vector<512x8xf32> to vector<8xf32>
      %16 = vector.shape_cast %15 : vector<8xf32> to vector<1x8xf32>
      %17 = arith.mulf %13, %13 : vector<512x8xf32>
      %cst_15 = arith.constant dense<0.000000e+00> : vector<8xf32>
      %18 = vector.multi_reduction <add>, %17, %cst_15 [0] : vector<512x8xf32> to vector<8xf32>
      %19 = vector.shape_cast %18 : vector<8xf32> to vector<1x8xf32>
      %20 = tpu.iota {dimensions = array<i32: 0>} : vector<8x8xi32>
      %c0_i32_16 = arith.constant 0 : i32
      %21 = vector.broadcast %c0_i32_16 : i32 to vector<8x8xi32>
      %22 = arith.cmpi eq, %20, %21 : vector<8x8xi32>
      %c1_i32 = arith.constant 1 : i32
      %23 = vector.broadcast %c1_i32 : i32 to vector<8x8xi32>
      %24 = arith.cmpi eq, %20, %23 : vector<8x8xi32>
      %cst_17 = arith.constant 0.000000e+00 : f32
      %25 = vector.shape_cast %19 : vector<1x8xf32> to vector<1x8xf32>
      %26 = vector.broadcast %25 : vector<1x8xf32> to vector<8x8xf32>
      %27 = vector.broadcast %cst_17 : f32 to vector<8x8xf32>
      %28 = arith.select %24, %26, %27 : vector<8x8xi1>, vector<8x8xf32>
      %29 = vector.shape_cast %16 : vector<1x8xf32> to vector<1x8xf32>
      %30 = vector.broadcast %29 : vector<1x8xf32> to vector<8x8xf32>
      %31 = arith.select %22, %30, %28 : vector<8x8xi1>, vector<8x8xf32>
      %32 = vector.shape_cast %31 : vector<8x8xf32> to vector<1x8x8xf32>
      %c0_18 = arith.constant 0 : index
      %c0_19 = arith.constant 0 : index
      %c0_20 = arith.constant 0 : index
      %33 = vector.load %arg6[%c0_18, %c0_19, %c0_20] : memref<1x8x8xf32, #tpu.memory_space<vmem>>, vector<1x8x8xf32>
      tpu.vector_store %arg6[%c0_18, %c0_19, %c0_20], %32 {strides = array<i32>} : memref<1x8x8xf32, #tpu.memory_space<vmem>>, vector<1x8x8xf32>,
    } else {
    }
    return
  }
  func.func @transform_0(%arg0: i32, %arg1: i32, %arg2: i32) -> (i32, i32) {
    %c0_i32 = arith.constant 0 : i32
    return %arg0, %arg2 : i32, i32
  }
  func.func @transform_1(%arg0: i32, %arg1: i32, %arg2: i32) -> (i32, i32) {
    %c0_i32 = arith.constant 0 : i32
    return %arg2, %arg1 : i32, i32
  }
  func.func @transform_2(%arg0: i32, %arg1: i32, %arg2: i32) -> (i32, i32) {
    %c0_i32 = arith.constant 0 : i32
    return %arg0, %arg1 : i32, i32
  }
  func.func @transform_3(%arg0: i32, %arg1: i32, %arg2: i32) -> (i32, i32, i32) {
    %c0_i32 = arith.constant 0 : i32
    %c0_i32_0 = arith.constant 0 : i32
    return %arg0, %c0_i32, %arg1 : i32, i32, i32
  }
}

module attributes {stable_mosaic.version = 11 : i64} {
  func.func @_conv3x3_kernel(%arg0: i32, %arg1: i32, %arg2: memref<1x4x9x9x8xf32, #tpu.memory_space<vmem>>, %arg3: memref<9x8x8xbf16, #tpu.memory_space<vmem>>, %arg4: memref<1x8x8x8xf32, #tpu.memory_space<vmem>>, %arg5: memref<1x8x8xf32, #tpu.memory_space<vmem>>) attributes {dimension_semantics = [#tpu.dimension_semantics<parallel>, #tpu.dimension_semantics<parallel>], iteration_bounds = array<i64: 2, 1>, scalar_prefetch = 0 : i64, scratch_operands = 0 : i64, tpu.core_type = #tpu.core_type<tc>, window_params = [{transform_indices = @transform_0, window_bounds = array<i64: 1, 4, 9, 9, 8>}, {transform_indices = @transform_1, window_bounds = array<i64: 9, 8, 8>}, {transform_indices = @transform_2, window_bounds = array<i64: 1, 8, 8, 8>}, {transform_indices = @transform_3, window_bounds = array<i64: 1, 8, 8>}]} {
    %cst = arith.constant 0.000000e+00 : f32
    %0 = vector.broadcast %cst : f32 to vector<64x8xf32>
    %c0 = arith.constant 0 : index
    %c0_0 = arith.constant 0 : index
    %c0_1 = arith.constant 0 : index
    %c0_2 = arith.constant 0 : index
    %c0_3 = arith.constant 0 : index
    %1 = vector.load %arg2[%c0, %c0_0, %c0_1, %c0_2, %c0_3] : memref<1x4x9x9x8xf32, #tpu.memory_space<vmem>>, vector<1x1x9x9x8xf32>
    %2 = vector.shape_cast %1 : vector<1x1x9x9x8xf32> to vector<9x9x8xf32>
    %3 = vector.extract_strided_slice %2 {offsets = [0, 0, 0], sizes = [8, 8, 8], strides = [1, 1, 1]} : vector<9x9x8xf32> to vector<8x8x8xf32>
    %4 = vector.shape_cast %3 : vector<8x8x8xf32> to vector<64x8xf32>
    %5 = arith.truncf %4 : vector<64x8xf32> to vector<64x8xbf16>
    %c0_4 = arith.constant 0 : index
    %c0_5 = arith.constant 0 : index
    %c0_6 = arith.constant 0 : index
    %6 = vector.load %arg3[%c0_4, %c0_5, %c0_6] : memref<9x8x8xbf16, #tpu.memory_space<vmem>>, vector<1x8x8xbf16>
    %7 = vector.shape_cast %6 : vector<1x8x8xbf16> to vector<8x8xbf16>
    %cst_7 = arith.constant dense<0.000000e+00> : vector<64x8xf32>
    %8 = tpu.matmul %5, %7, %cst_7 {dimension_numbers = #tpu.dot_dimension_numbers<[1], [0], [0], [1], [0, 0, 1, 1], [], []>} : vector<64x8xbf16>, vector<8x8xbf16>, vector<64x8xf32> -> vector<64x8xf32>
    %9 = arith.addf %0, %8 : vector<64x8xf32>
    %c0_8 = arith.constant 0 : index
    %c1 = arith.constant 1 : index
    %c0_9 = arith.constant 0 : index
    %c0_10 = arith.constant 0 : index
    %c0_11 = arith.constant 0 : index
    %10 = vector.load %arg2[%c0_8, %c1, %c0_9, %c0_10, %c0_11] : memref<1x4x9x9x8xf32, #tpu.memory_space<vmem>>, vector<1x1x9x9x8xf32>
    %11 = vector.shape_cast %10 : vector<1x1x9x9x8xf32> to vector<9x9x8xf32>
    %12 = vector.extract_strided_slice %11 {offsets = [0, 0, 0], sizes = [8, 8, 8], strides = [1, 1, 1]} : vector<9x9x8xf32> to vector<8x8x8xf32>
    %13 = vector.shape_cast %12 : vector<8x8x8xf32> to vector<64x8xf32>
    %14 = arith.truncf %13 : vector<64x8xf32> to vector<64x8xbf16>
    %c1_12 = arith.constant 1 : index
    %c0_13 = arith.constant 0 : index
    %c0_14 = arith.constant 0 : index
    %15 = vector.load %arg3[%c1_12, %c0_13, %c0_14] : memref<9x8x8xbf16, #tpu.memory_space<vmem>>, vector<1x8x8xbf16>
    %16 = vector.shape_cast %15 : vector<1x8x8xbf16> to vector<8x8xbf16>
    %cst_15 = arith.constant dense<0.000000e+00> : vector<64x8xf32>
    %17 = tpu.matmul %14, %16, %cst_15 {dimension_numbers = #tpu.dot_dimension_numbers<[1], [0], [0], [1], [0, 0, 1, 1], [], []>} : vector<64x8xbf16>, vector<8x8xbf16>, vector<64x8xf32> -> vector<64x8xf32>
    %18 = arith.addf %9, %17 : vector<64x8xf32>
    %c0_16 = arith.constant 0 : index
    %c0_17 = arith.constant 0 : index
    %c0_18 = arith.constant 0 : index
    %c0_19 = arith.constant 0 : index
    %c0_20 = arith.constant 0 : index
    %19 = vector.load %arg2[%c0_16, %c0_17, %c0_18, %c0_19, %c0_20] : memref<1x4x9x9x8xf32, #tpu.memory_space<vmem>>, vector<1x1x9x9x8xf32>
    %20 = vector.shape_cast %19 : vector<1x1x9x9x8xf32> to vector<9x9x8xf32>
    %21 = vector.extract_strided_slice %20 {offsets = [0, 1, 0], sizes = [8, 8, 8], strides = [1, 1, 1]} : vector<9x9x8xf32> to vector<8x8x8xf32>
    %22 = vector.shape_cast %21 : vector<8x8x8xf32> to vector<64x8xf32>
    %23 = arith.truncf %22 : vector<64x8xf32> to vector<64x8xbf16>
    %c2 = arith.constant 2 : index
    %c0_21 = arith.constant 0 : index
    %c0_22 = arith.constant 0 : index
    %24 = vector.load %arg3[%c2, %c0_21, %c0_22] : memref<9x8x8xbf16, #tpu.memory_space<vmem>>, vector<1x8x8xbf16>
    %25 = vector.shape_cast %24 : vector<1x8x8xbf16> to vector<8x8xbf16>
    %cst_23 = arith.constant dense<0.000000e+00> : vector<64x8xf32>
    %26 = tpu.matmul %23, %25, %cst_23 {dimension_numbers = #tpu.dot_dimension_numbers<[1], [0], [0], [1], [0, 0, 1, 1], [], []>} : vector<64x8xbf16>, vector<8x8xbf16>, vector<64x8xf32> -> vector<64x8xf32>
    %27 = arith.addf %18, %26 : vector<64x8xf32>
    %c0_24 = arith.constant 0 : index
    %c2_25 = arith.constant 2 : index
    %c0_26 = arith.constant 0 : index
    %c0_27 = arith.constant 0 : index
    %c0_28 = arith.constant 0 : index
    %28 = vector.load %arg2[%c0_24, %c2_25, %c0_26, %c0_27, %c0_28] : memref<1x4x9x9x8xf32, #tpu.memory_space<vmem>>, vector<1x1x9x9x8xf32>
    %29 = vector.shape_cast %28 : vector<1x1x9x9x8xf32> to vector<9x9x8xf32>
    %30 = vector.extract_strided_slice %29 {offsets = [0, 0, 0], sizes = [8, 8, 8], strides = [1, 1, 1]} : vector<9x9x8xf32> to vector<8x8x8xf32>
    %31 = vector.shape_cast %30 : vector<8x8x8xf32> to vector<64x8xf32>
    %32 = arith.truncf %31 : vector<64x8xf32> to vector<64x8xbf16>
    %c3 = arith.constant 3 : index
    %c0_29 = arith.constant 0 : index
    %c0_30 = arith.constant 0 : index
    %33 = vector.load %arg3[%c3, %c0_29, %c0_30] : memref<9x8x8xbf16, #tpu.memory_space<vmem>>, vector<1x8x8xbf16>
    %34 = vector.shape_cast %33 : vector<1x8x8xbf16> to vector<8x8xbf16>
    %cst_31 = arith.constant dense<0.000000e+00> : vector<64x8xf32>
    %35 = tpu.matmul %32, %34, %cst_31 {dimension_numbers = #tpu.dot_dimension_numbers<[1], [0], [0], [1], [0, 0, 1, 1], [], []>} : vector<64x8xbf16>, vector<8x8xbf16>, vector<64x8xf32> -> vector<64x8xf32>
    %36 = arith.addf %27, %35 : vector<64x8xf32>
    %c0_32 = arith.constant 0 : index
    %c3_33 = arith.constant 3 : index
    %c0_34 = arith.constant 0 : index
    %c0_35 = arith.constant 0 : index
    %c0_36 = arith.constant 0 : index
    %37 = vector.load %arg2[%c0_32, %c3_33, %c0_34, %c0_35, %c0_36] : memref<1x4x9x9x8xf32, #tpu.memory_space<vmem>>, vector<1x1x9x9x8xf32>
    %38 = vector.shape_cast %37 : vector<1x1x9x9x8xf32> to vector<9x9x8xf32>
    %39 = vector.extract_strided_slice %38 {offsets = [0, 0, 0], sizes = [8, 8, 8], strides = [1, 1, 1]} : vector<9x9x8xf32> to vector<8x8x8xf32>
    %40 = vector.shape_cast %39 : vector<8x8x8xf32> to vector<64x8xf32>
    %41 = arith.truncf %40 : vector<64x8xf32> to vector<64x8xbf16>
    %c4 = arith.constant 4 : index
    %c0_37 = arith.constant 0 : index
    %c0_38 = arith.constant 0 : index
    %42 = vector.load %arg3[%c4, %c0_37, %c0_38] : memref<9x8x8xbf16, #tpu.memory_space<vmem>>, vector<1x8x8xbf16>
    %43 = vector.shape_cast %42 : vector<1x8x8xbf16> to vector<8x8xbf16>
    %cst_39 = arith.constant dense<0.000000e+00> : vector<64x8xf32>
    %44 = tpu.matmul %41, %43, %cst_39 {dimension_numbers = #tpu.dot_dimension_numbers<[1], [0], [0], [1], [0, 0, 1, 1], [], []>} : vector<64x8xbf16>, vector<8x8xbf16>, vector<64x8xf32> -> vector<64x8xf32>
    %45 = arith.addf %36, %44 : vector<64x8xf32>
    %c0_40 = arith.constant 0 : index
    %c2_41 = arith.constant 2 : index
    %c0_42 = arith.constant 0 : index
    %c0_43 = arith.constant 0 : index
    %c0_44 = arith.constant 0 : index
    %46 = vector.load %arg2[%c0_40, %c2_41, %c0_42, %c0_43, %c0_44] : memref<1x4x9x9x8xf32, #tpu.memory_space<vmem>>, vector<1x1x9x9x8xf32>
    %47 = vector.shape_cast %46 : vector<1x1x9x9x8xf32> to vector<9x9x8xf32>
    %48 = vector.extract_strided_slice %47 {offsets = [0, 1, 0], sizes = [8, 8, 8], strides = [1, 1, 1]} : vector<9x9x8xf32> to vector<8x8x8xf32>
    %49 = vector.shape_cast %48 : vector<8x8x8xf32> to vector<64x8xf32>
    %50 = arith.truncf %49 : vector<64x8xf32> to vector<64x8xbf16>
    %c5 = arith.constant 5 : index
    %c0_45 = arith.constant 0 : index
    %c0_46 = arith.constant 0 : index
    %51 = vector.load %arg3[%c5, %c0_45, %c0_46] : memref<9x8x8xbf16, #tpu.memory_space<vmem>>, vector<1x8x8xbf16>
    %52 = vector.shape_cast %51 : vector<1x8x8xbf16> to vector<8x8xbf16>
    %cst_47 = arith.constant dense<0.000000e+00> : vector<64x8xf32>
    %53 = tpu.matmul %50, %52, %cst_47 {dimension_numbers = #tpu.dot_dimension_numbers<[1], [0], [0], [1], [0, 0, 1, 1], [], []>} : vector<64x8xbf16>, vector<8x8xbf16>, vector<64x8xf32> -> vector<64x8xf32>
    %54 = arith.addf %45, %53 : vector<64x8xf32>
    %c0_48 = arith.constant 0 : index
    %c0_49 = arith.constant 0 : index
    %c0_50 = arith.constant 0 : index
    %c0_51 = arith.constant 0 : index
    %c0_52 = arith.constant 0 : index
    %55 = vector.load %arg2[%c0_48, %c0_49, %c0_50, %c0_51, %c0_52] : memref<1x4x9x9x8xf32, #tpu.memory_space<vmem>>, vector<1x1x9x9x8xf32>
    %56 = vector.shape_cast %55 : vector<1x1x9x9x8xf32> to vector<9x9x8xf32>
    %57 = vector.extract_strided_slice %56 {offsets = [1, 0, 0], sizes = [8, 8, 8], strides = [1, 1, 1]} : vector<9x9x8xf32> to vector<8x8x8xf32>
    %58 = vector.shape_cast %57 : vector<8x8x8xf32> to vector<64x8xf32>
    %59 = arith.truncf %58 : vector<64x8xf32> to vector<64x8xbf16>
    %c6 = arith.constant 6 : index
    %c0_53 = arith.constant 0 : index
    %c0_54 = arith.constant 0 : index
    %60 = vector.load %arg3[%c6, %c0_53, %c0_54] : memref<9x8x8xbf16, #tpu.memory_space<vmem>>, vector<1x8x8xbf16>
    %61 = vector.shape_cast %60 : vector<1x8x8xbf16> to vector<8x8xbf16>
    %cst_55 = arith.constant dense<0.000000e+00> : vector<64x8xf32>
    %62 = tpu.matmul %59, %61, %cst_55 {dimension_numbers = #tpu.dot_dimension_numbers<[1], [0], [0], [1], [0, 0, 1, 1], [], []>} : vector<64x8xbf16>, vector<8x8xbf16>, vector<64x8xf32> -> vector<64x8xf32>
    %63 = arith.addf %54, %62 : vector<64x8xf32>
    %c0_56 = arith.constant 0 : index
    %c1_57 = arith.constant 1 : index
    %c0_58 = arith.constant 0 : index
    %c0_59 = arith.constant 0 : index
    %c0_60 = arith.constant 0 : index
    %64 = vector.load %arg2[%c0_56, %c1_57, %c0_58, %c0_59, %c0_60] : memref<1x4x9x9x8xf32, #tpu.memory_space<vmem>>, vector<1x1x9x9x8xf32>
    %65 = vector.shape_cast %64 : vector<1x1x9x9x8xf32> to vector<9x9x8xf32>
    %66 = vector.extract_strided_slice %65 {offsets = [1, 0, 0], sizes = [8, 8, 8], strides = [1, 1, 1]} : vector<9x9x8xf32> to vector<8x8x8xf32>
    %67 = vector.shape_cast %66 : vector<8x8x8xf32> to vector<64x8xf32>
    %68 = arith.truncf %67 : vector<64x8xf32> to vector<64x8xbf16>
    %c7 = arith.constant 7 : index
    %c0_61 = arith.constant 0 : index
    %c0_62 = arith.constant 0 : index
    %69 = vector.load %arg3[%c7, %c0_61, %c0_62] : memref<9x8x8xbf16, #tpu.memory_space<vmem>>, vector<1x8x8xbf16>
    %70 = vector.shape_cast %69 : vector<1x8x8xbf16> to vector<8x8xbf16>
    %cst_63 = arith.constant dense<0.000000e+00> : vector<64x8xf32>
    %71 = tpu.matmul %68, %70, %cst_63 {dimension_numbers = #tpu.dot_dimension_numbers<[1], [0], [0], [1], [0, 0, 1, 1], [], []>} : vector<64x8xbf16>, vector<8x8xbf16>, vector<64x8xf32> -> vector<64x8xf32>
    %72 = arith.addf %63, %71 : vector<64x8xf32>
    %c0_64 = arith.constant 0 : index
    %c0_65 = arith.constant 0 : index
    %c0_66 = arith.constant 0 : index
    %c0_67 = arith.constant 0 : index
    %c0_68 = arith.constant 0 : index
    %73 = vector.load %arg2[%c0_64, %c0_65, %c0_66, %c0_67, %c0_68] : memref<1x4x9x9x8xf32, #tpu.memory_space<vmem>>, vector<1x1x9x9x8xf32>
    %74 = vector.shape_cast %73 : vector<1x1x9x9x8xf32> to vector<9x9x8xf32>
    %75 = vector.extract_strided_slice %74 {offsets = [1, 1, 0], sizes = [8, 8, 8], strides = [1, 1, 1]} : vector<9x9x8xf32> to vector<8x8x8xf32>
    %76 = vector.shape_cast %75 : vector<8x8x8xf32> to vector<64x8xf32>
    %77 = arith.truncf %76 : vector<64x8xf32> to vector<64x8xbf16>
    %c8 = arith.constant 8 : index
    %c0_69 = arith.constant 0 : index
    %c0_70 = arith.constant 0 : index
    %78 = vector.load %arg3[%c8, %c0_69, %c0_70] : memref<9x8x8xbf16, #tpu.memory_space<vmem>>, vector<1x8x8xbf16>
    %79 = vector.shape_cast %78 : vector<1x8x8xbf16> to vector<8x8xbf16>
    %cst_71 = arith.constant dense<0.000000e+00> : vector<64x8xf32>
    %80 = tpu.matmul %77, %79, %cst_71 {dimension_numbers = #tpu.dot_dimension_numbers<[1], [0], [0], [1], [0, 0, 1, 1], [], []>} : vector<64x8xbf16>, vector<8x8xbf16>, vector<64x8xf32> -> vector<64x8xf32>
    %81 = arith.addf %72, %80 : vector<64x8xf32>
    %82 = vector.shape_cast %81 : vector<64x8xf32> to vector<1x8x8x8xf32>
    %c0_72 = arith.constant 0 : index
    %c0_73 = arith.constant 0 : index
    %c0_74 = arith.constant 0 : index
    %c0_75 = arith.constant 0 : index
    %83 = vector.load %arg4[%c0_72, %c0_73, %c0_74, %c0_75] : memref<1x8x8x8xf32, #tpu.memory_space<vmem>>, vector<1x8x8x8xf32>
    tpu.vector_store %arg4[%c0_72, %c0_73, %c0_74, %c0_75], %82 {strides = array<i32>} : memref<1x8x8x8xf32, #tpu.memory_space<vmem>>, vector<1x8x8x8xf32>,
    %cst_76 = arith.constant dense<0.000000e+00> : vector<8xf32>
    %84 = vector.multi_reduction <add>, %81, %cst_76 [0] : vector<64x8xf32> to vector<8xf32>
    %85 = vector.shape_cast %84 : vector<8xf32> to vector<1x8xf32>
    %86 = arith.mulf %81, %81 : vector<64x8xf32>
    %cst_77 = arith.constant dense<0.000000e+00> : vector<8xf32>
    %87 = vector.multi_reduction <add>, %86, %cst_77 [0] : vector<64x8xf32> to vector<8xf32>
    %88 = vector.shape_cast %87 : vector<8xf32> to vector<1x8xf32>
    %89 = tpu.iota {dimensions = array<i32: 0>} : vector<8x8xi32>
    %c0_i32 = arith.constant 0 : i32
    %90 = vector.broadcast %c0_i32 : i32 to vector<8x8xi32>
    %91 = arith.cmpi eq, %89, %90 : vector<8x8xi32>
    %c1_i32 = arith.constant 1 : i32
    %92 = vector.broadcast %c1_i32 : i32 to vector<8x8xi32>
    %93 = arith.cmpi eq, %89, %92 : vector<8x8xi32>
    %cst_78 = arith.constant 0.000000e+00 : f32
    %94 = vector.shape_cast %88 : vector<1x8xf32> to vector<1x8xf32>
    %95 = vector.broadcast %94 : vector<1x8xf32> to vector<8x8xf32>
    %96 = vector.broadcast %cst_78 : f32 to vector<8x8xf32>
    %97 = arith.select %93, %95, %96 : vector<8x8xi1>, vector<8x8xf32>
    %98 = vector.shape_cast %85 : vector<1x8xf32> to vector<1x8xf32>
    %99 = vector.broadcast %98 : vector<1x8xf32> to vector<8x8xf32>
    %100 = arith.select %91, %99, %97 : vector<8x8xi1>, vector<8x8xf32>
    %101 = vector.shape_cast %100 : vector<8x8xf32> to vector<1x8x8xf32>
    %c0_79 = arith.constant 0 : index
    %c0_80 = arith.constant 0 : index
    %c0_81 = arith.constant 0 : index
    %102 = vector.load %arg5[%c0_79, %c0_80, %c0_81] : memref<1x8x8xf32, #tpu.memory_space<vmem>>, vector<1x8x8xf32>
    tpu.vector_store %arg5[%c0_79, %c0_80, %c0_81], %101 {strides = array<i32>} : memref<1x8x8xf32, #tpu.memory_space<vmem>>, vector<1x8x8xf32>,
    return
  }
  func.func @transform_0(%arg0: i32, %arg1: i32) -> (i32, i32, i32, i32, i32) {
    %c0_i32 = arith.constant 0 : i32
    %c0_i32_0 = arith.constant 0 : i32
    %c0_i32_1 = arith.constant 0 : i32
    %c0_i32_2 = arith.constant 0 : i32
    %c0_i32_3 = arith.constant 0 : i32
    return %arg0, %c0_i32, %c0_i32_0, %c0_i32_1, %c0_i32_2 : i32, i32, i32, i32, i32
  }
  func.func @transform_1(%arg0: i32, %arg1: i32) -> (i32, i32, i32) {
    %c0_i32 = arith.constant 0 : i32
    %c0_i32_0 = arith.constant 0 : i32
    %c0_i32_1 = arith.constant 0 : i32
    return %c0_i32, %c0_i32_0, %arg1 : i32, i32, i32
  }
  func.func @transform_2(%arg0: i32, %arg1: i32) -> (i32, i32, i32, i32) {
    %c0_i32 = arith.constant 0 : i32
    %c0_i32_0 = arith.constant 0 : i32
    %c0_i32_1 = arith.constant 0 : i32
    return %arg0, %c0_i32, %c0_i32_0, %arg1 : i32, i32, i32, i32
  }
  func.func @transform_3(%arg0: i32, %arg1: i32) -> (i32, i32, i32) {
    %c0_i32 = arith.constant 0 : i32
    %c0_i32_0 = arith.constant 0 : i32
    return %arg0, %c0_i32, %arg1 : i32, i32, i32
  }
}

module attributes {stable_mosaic.version = 11 : i64} {
  func.func @_fused_gemm_kernel(%arg0: i32, %arg1: i32, %arg2: i32, %arg3: memref<128x4xf32, #tpu.memory_space<vmem>>, %arg4: memref<4x32xbf16, #tpu.memory_space<vmem>>, %arg5: memref<128x32xf32, #tpu.memory_space<vmem>>, %arg6: memref<1x8x32xf32, #tpu.memory_space<vmem>>, %arg7: memref<128x32xf32, #tpu.memory_space<vmem>>) attributes {dimension_semantics = [#tpu.dimension_semantics<parallel>, #tpu.dimension_semantics<parallel>, #tpu.dimension_semantics<arbitrary>], iteration_bounds = array<i64: 1, 1, 1>, scalar_prefetch = 0 : i64, scratch_operands = 1 : i64, tpu.core_type = #tpu.core_type<tc>, window_params = [{transform_indices = @transform_0, window_bounds = array<i64: 128, 4>}, {transform_indices = @transform_1, window_bounds = array<i64: 4, 32>}, {transform_indices = @transform_2, window_bounds = array<i64: 128, 32>}, {transform_indices = @transform_3, window_bounds = array<i64: 1, 8, 32>}]} {
    %c0_i32 = arith.constant 0 : i32
    %0 = arith.cmpi eq, %arg2, %c0_i32 : i32
    %1 = arith.extui %0 : i1 to i32
    %c0_i32_0 = arith.constant 0 : i32
    %2 = arith.cmpi ne, %1, %c0_i32_0 : i32
    scf.if %2 {
      %cst_10 = arith.constant 0.000000e+00 : f32
      %13 = vector.broadcast %cst_10 : f32 to vector<128x32xf32>
      %c0_11 = arith.constant 0 : index
      %c0_12 = arith.constant 0 : index
      %14 = vector.load %arg7[%c0_11, %c0_12] : memref<128x32xf32, #tpu.memory_space<vmem>>, vector<128x32xf32>
      tpu.vector_store %arg7[%c0_11, %c0_12], %13 {strides = array<i32>} : memref<128x32xf32, #tpu.memory_space<vmem>>, vector<128x32xf32>,
    } else {
    }
    %c0 = arith.constant 0 : index
    %c0_1 = arith.constant 0 : index
    %3 = vector.load %arg3[%c0, %c0_1] : memref<128x4xf32, #tpu.memory_space<vmem>>, vector<128x4xf32>
    %c0_2 = arith.constant 0 : index
    %c0_3 = arith.constant 0 : index
    %4 = vector.load %arg7[%c0_2, %c0_3] : memref<128x32xf32, #tpu.memory_space<vmem>>, vector<128x32xf32>
    %5 = arith.truncf %3 : vector<128x4xf32> to vector<128x4xbf16>
    %c0_4 = arith.constant 0 : index
    %c0_5 = arith.constant 0 : index
    %6 = vector.load %arg4[%c0_4, %c0_5] : memref<4x32xbf16, #tpu.memory_space<vmem>>, vector<4x32xbf16>
    %cst = arith.constant dense<0.000000e+00> : vector<128x32xf32>
    %7 = tpu.matmul %5, %6, %cst {dimension_numbers = #tpu.dot_dimension_numbers<[1], [0], [0], [1], [0, 0, 1, 1], [], []>} : vector<128x4xbf16>, vector<4x32xbf16>, vector<128x32xf32> -> vector<128x32xf32>
    %8 = arith.addf %4, %7 : vector<128x32xf32>
    %c0_6 = arith.constant 0 : index
    %c0_7 = arith.constant 0 : index
    %9 = vector.load %arg7[%c0_6, %c0_7] : memref<128x32xf32, #tpu.memory_space<vmem>>, vector<128x32xf32>
    tpu.vector_store %arg7[%c0_6, %c0_7], %8 {strides = array<i32>} : memref<128x32xf32, #tpu.memory_space<vmem>>, vector<128x32xf32>,
    %c0_i32_8 = arith.constant 0 : i32
    %10 = arith.cmpi eq, %arg2, %c0_i32_8 : i32
    %11 = arith.extui %10 : i1 to i32
    %c0_i32_9 = arith.constant 0 : i32
    %12 = arith.cmpi ne, %11, %c0_i32_9 : i32
    scf.if %12 {
      %c0_10 = arith.constant 0 : index
      %c0_11 = arith.constant 0 : index
      %13 = vector.load %arg7[%c0_10, %c0_11] : memref<128x32xf32, #tpu.memory_space<vmem>>, vector<128x32xf32>
      %c0_12 = arith.constant 0 : index
      %c0_13 = arith.constant 0 : index
      %14 = vector.load %arg5[%c0_12, %c0_13] : memref<128x32xf32, #tpu.memory_space<vmem>>, vector<128x32xf32>
      tpu.vector_store %arg5[%c0_12, %c0_13], %13 {strides = array<i32>} : memref<128x32xf32, #tpu.memory_space<vmem>>, vector<128x32xf32>,
      %cst_14 = arith.constant dense<0.000000e+00> : vector<32xf32>
      %15 = vector.multi_reduction <add>, %13, %cst_14 [0] : vector<128x32xf32> to vector<32xf32>
      %16 = vector.shape_cast %15 : vector<32xf32> to vector<1x32xf32>
      %17 = arith.mulf %13, %13 : vector<128x32xf32>
      %cst_15 = arith.constant dense<0.000000e+00> : vector<32xf32>
      %18 = vector.multi_reduction <add>, %17, %cst_15 [0] : vector<128x32xf32> to vector<32xf32>
      %19 = vector.shape_cast %18 : vector<32xf32> to vector<1x32xf32>
      %20 = tpu.iota {dimensions = array<i32: 0>} : vector<8x32xi32>
      %c0_i32_16 = arith.constant 0 : i32
      %21 = vector.broadcast %c0_i32_16 : i32 to vector<8x32xi32>
      %22 = arith.cmpi eq, %20, %21 : vector<8x32xi32>
      %c1_i32 = arith.constant 1 : i32
      %23 = vector.broadcast %c1_i32 : i32 to vector<8x32xi32>
      %24 = arith.cmpi eq, %20, %23 : vector<8x32xi32>
      %cst_17 = arith.constant 0.000000e+00 : f32
      %25 = vector.shape_cast %19 : vector<1x32xf32> to vector<1x32xf32>
      %26 = vector.broadcast %25 : vector<1x32xf32> to vector<8x32xf32>
      %27 = vector.broadcast %cst_17 : f32 to vector<8x32xf32>
      %28 = arith.select %24, %26, %27 : vector<8x32xi1>, vector<8x32xf32>
      %29 = vector.shape_cast %16 : vector<1x32xf32> to vector<1x32xf32>
      %30 = vector.broadcast %29 : vector<1x32xf32> to vector<8x32xf32>
      %31 = arith.select %22, %30, %28 : vector<8x32xi1>, vector<8x32xf32>
      %32 = vector.shape_cast %31 : vector<8x32xf32> to vector<1x8x32xf32>
      %c0_18 = arith.constant 0 : index
      %c0_19 = arith.constant 0 : index
      %c0_20 = arith.constant 0 : index
      %33 = vector.load %arg6[%c0_18, %c0_19, %c0_20] : memref<1x8x32xf32, #tpu.memory_space<vmem>>, vector<1x8x32xf32>
      tpu.vector_store %arg6[%c0_18, %c0_19, %c0_20], %32 {strides = array<i32>} : memref<1x8x32xf32, #tpu.memory_space<vmem>>, vector<1x8x32xf32>,
    } else {
    }
    return
  }
  func.func @transform_0(%arg0: i32, %arg1: i32, %arg2: i32) -> (i32, i32) {
    %c0_i32 = arith.constant 0 : i32
    return %arg0, %arg2 : i32, i32
  }
  func.func @transform_1(%arg0: i32, %arg1: i32, %arg2: i32) -> (i32, i32) {
    %c0_i32 = arith.constant 0 : i32
    return %arg2, %arg1 : i32, i32
  }
  func.func @transform_2(%arg0: i32, %arg1: i32, %arg2: i32) -> (i32, i32) {
    %c0_i32 = arith.constant 0 : i32
    return %arg0, %arg1 : i32, i32
  }
  func.func @transform_3(%arg0: i32, %arg1: i32, %arg2: i32) -> (i32, i32, i32) {
    %c0_i32 = arith.constant 0 : i32
    %c0_i32_0 = arith.constant 0 : i32
    return %arg0, %c0_i32, %arg1 : i32, i32, i32
  }
}

module attributes {stable_mosaic.version = 11 : i64} {
  func.func @_fused_gemm_kernel(%arg0: i32, %arg1: i32, %arg2: i32, %arg3: memref<128x8xf32, #tpu.memory_space<vmem>>, %arg4: memref<8x32xbf16, #tpu.memory_space<vmem>>, %arg5: memref<1x8xf32, #tpu.memory_space<vmem>>, %arg6: memref<1x8xf32, #tpu.memory_space<vmem>>, %arg7: memref<128x32xf32, #tpu.memory_space<vmem>>, %arg8: memref<1x32xf32, #tpu.memory_space<vmem>>, %arg9: memref<1x32xf32, #tpu.memory_space<vmem>>, %arg10: memref<128x32xf32, #tpu.memory_space<vmem>>, %arg11: memref<1x8x32xf32, #tpu.memory_space<vmem>>, %arg12: memref<128x32xf32, #tpu.memory_space<vmem>>) attributes {dimension_semantics = [#tpu.dimension_semantics<parallel>, #tpu.dimension_semantics<parallel>, #tpu.dimension_semantics<arbitrary>], iteration_bounds = array<i64: 1, 1, 1>, scalar_prefetch = 0 : i64, scratch_operands = 1 : i64, tpu.core_type = #tpu.core_type<tc>, window_params = [{transform_indices = @transform_0, window_bounds = array<i64: 128, 8>}, {transform_indices = @transform_1, window_bounds = array<i64: 8, 32>}, {transform_indices = @transform_2, window_bounds = array<i64: 1, 8>}, {transform_indices = @transform_3, window_bounds = array<i64: 1, 8>}, {transform_indices = @transform_4, window_bounds = array<i64: 128, 32>}, {transform_indices = @transform_5, window_bounds = array<i64: 1, 32>}, {transform_indices = @transform_6, window_bounds = array<i64: 1, 32>}, {transform_indices = @transform_7, window_bounds = array<i64: 128, 32>}, {transform_indices = @transform_8, window_bounds = array<i64: 1, 8, 32>}]} {
    %c0_i32 = arith.constant 0 : i32
    %0 = arith.cmpi eq, %arg2, %c0_i32 : i32
    %1 = arith.extui %0 : i1 to i32
    %c0_i32_0 = arith.constant 0 : i32
    %2 = arith.cmpi ne, %1, %c0_i32_0 : i32
    scf.if %2 {
      %cst_15 = arith.constant 0.000000e+00 : f32
      %21 = vector.broadcast %cst_15 : f32 to vector<128x32xf32>
      %c0_16 = arith.constant 0 : index
      %c0_17 = arith.constant 0 : index
      %22 = vector.load %arg12[%c0_16, %c0_17] : memref<128x32xf32, #tpu.memory_space<vmem>>, vector<128x32xf32>
      tpu.vector_store %arg12[%c0_16, %c0_17], %21 {strides = array<i32>} : memref<128x32xf32, #tpu.memory_space<vmem>>, vector<128x32xf32>,
    } else {
    }
    %c0 = arith.constant 0 : index
    %c0_1 = arith.constant 0 : index
    %3 = vector.load %arg3[%c0, %c0_1] : memref<128x8xf32, #tpu.memory_space<vmem>>, vector<128x8xf32>
    %c0_2 = arith.constant 0 : index
    %c0_3 = arith.constant 0 : index
    %4 = vector.load %arg5[%c0_2, %c0_3] : memref<1x8xf32, #tpu.memory_space<vmem>>, vector<1x8xf32>
    %5 = vector.broadcast %4 : vector<1x8xf32> to vector<128x8xf32>
    %6 = arith.mulf %3, %5 : vector<128x8xf32>
    %c0_4 = arith.constant 0 : index
    %c0_5 = arith.constant 0 : index
    %7 = vector.load %arg6[%c0_4, %c0_5] : memref<1x8xf32, #tpu.memory_space<vmem>>, vector<1x8xf32>
    %8 = vector.broadcast %7 : vector<1x8xf32> to vector<128x8xf32>
    %9 = arith.addf %6, %8 : vector<128x8xf32>
    %cst = arith.constant 0.000000e+00 : f32
    %10 = vector.broadcast %cst : f32 to vector<128x8xf32>
    %11 = arith.maximumf %9, %10 : vector<128x8xf32>
    %c0_6 = arith.constant 0 : index
    %c0_7 = arith.constant 0 : index
    %12 = vector.load %arg12[%c0_6, %c0_7] : memref<128x32xf32, #tpu.memory_space<vmem>>, vector<128x32xf32>
    %13 = arith.truncf %11 : vector<128x8xf32> to vector<128x8xbf16>
    %c0_8 = arith.constant 0 : index
    %c0_9 = arith.constant 0 : index
    %14 = vector.load %arg4[%c0_8, %c0_9] : memref<8x32xbf16, #tpu.memory_space<vmem>>, vector<8x32xbf16>
    %cst_10 = arith.constant dense<0.000000e+00> : vector<128x32xf32>
    %15 = tpu.matmul %13, %14, %cst_10 {dimension_numbers = #tpu.dot_dimension_numbers<[1], [0], [0], [1], [0, 0, 1, 1], [], []>} : vector<128x8xbf16>, vector<8x32xbf16>, vector<128x32xf32> -> vector<128x32xf32>
    %16 = arith.addf %12, %15 : vector<128x32xf32>
    %c0_11 = arith.constant 0 : index
    %c0_12 = arith.constant 0 : index
    %17 = vector.load %arg12[%c0_11, %c0_12] : memref<128x32xf32, #tpu.memory_space<vmem>>, vector<128x32xf32>
    tpu.vector_store %arg12[%c0_11, %c0_12], %16 {strides = array<i32>} : memref<128x32xf32, #tpu.memory_space<vmem>>, vector<128x32xf32>,
    %c0_i32_13 = arith.constant 0 : i32
    %18 = arith.cmpi eq, %arg2, %c0_i32_13 : i32
    %19 = arith.extui %18 : i1 to i32
    %c0_i32_14 = arith.constant 0 : i32
    %20 = arith.cmpi ne, %19, %c0_i32_14 : i32
    scf.if %20 {
      %c0_15 = arith.constant 0 : index
      %c0_16 = arith.constant 0 : index
      %21 = vector.load %arg12[%c0_15, %c0_16] : memref<128x32xf32, #tpu.memory_space<vmem>>, vector<128x32xf32>
      %c0_17 = arith.constant 0 : index
      %c0_18 = arith.constant 0 : index
      %22 = vector.load %arg7[%c0_17, %c0_18] : memref<128x32xf32, #tpu.memory_space<vmem>>, vector<128x32xf32>
      %c0_19 = arith.constant 0 : index
      %c0_20 = arith.constant 0 : index
      %23 = vector.load %arg8[%c0_19, %c0_20] : memref<1x32xf32, #tpu.memory_space<vmem>>, vector<1x32xf32>
      %24 = vector.broadcast %23 : vector<1x32xf32> to vector<128x32xf32>
      %25 = arith.mulf %22, %24 : vector<128x32xf32>
      %26 = arith.addf %21, %25 : vector<128x32xf32>
      %c0_21 = arith.constant 0 : index
      %c0_22 = arith.constant 0 : index
      %27 = vector.load %arg9[%c0_21, %c0_22] : memref<1x32xf32, #tpu.memory_space<vmem>>, vector<1x32xf32>
      %28 = vector.broadcast %27 : vector<1x32xf32> to vector<128x32xf32>
      %29 = arith.addf %26, %28 : vector<128x32xf32>
      %cst_23 = arith.constant 0.000000e+00 : f32
      %30 = vector.broadcast %cst_23 : f32 to vector<128x32xf32>
      %31 = arith.maximumf %29, %30 : vector<128x32xf32>
      %c0_24 = arith.constant 0 : index
      %c0_25 = arith.constant 0 : index
      %32 = vector.load %arg10[%c0_24, %c0_25] : memref<128x32xf32, #tpu.memory_space<vmem>>, vector<128x32xf32>
      tpu.vector_store %arg10[%c0_24, %c0_25], %31 {strides = array<i32>} : memref<128x32xf32, #tpu.memory_space<vmem>>, vector<128x32xf32>,
      %cst_26 = arith.constant dense<0.000000e+00> : vector<32xf32>
      %33 = vector.multi_reduction <add>, %31, %cst_26 [0] : vector<128x32xf32> to vector<32xf32>
      %34 = vector.shape_cast %33 : vector<32xf32> to vector<1x32xf32>
      %35 = arith.mulf %31, %31 : vector<128x32xf32>
      %cst_27 = arith.constant dense<0.000000e+00> : vector<32xf32>
      %36 = vector.multi_reduction <add>, %35, %cst_27 [0] : vector<128x32xf32> to vector<32xf32>
      %37 = vector.shape_cast %36 : vector<32xf32> to vector<1x32xf32>
      %38 = tpu.iota {dimensions = array<i32: 0>} : vector<8x32xi32>
      %c0_i32_28 = arith.constant 0 : i32
      %39 = vector.broadcast %c0_i32_28 : i32 to vector<8x32xi32>
      %40 = arith.cmpi eq, %38, %39 : vector<8x32xi32>
      %c1_i32 = arith.constant 1 : i32
      %41 = vector.broadcast %c1_i32 : i32 to vector<8x32xi32>
      %42 = arith.cmpi eq, %38, %41 : vector<8x32xi32>
      %cst_29 = arith.constant 0.000000e+00 : f32
      %43 = vector.shape_cast %37 : vector<1x32xf32> to vector<1x32xf32>
      %44 = vector.broadcast %43 : vector<1x32xf32> to vector<8x32xf32>
      %45 = vector.broadcast %cst_29 : f32 to vector<8x32xf32>
      %46 = arith.select %42, %44, %45 : vector<8x32xi1>, vector<8x32xf32>
      %47 = vector.shape_cast %34 : vector<1x32xf32> to vector<1x32xf32>
      %48 = vector.broadcast %47 : vector<1x32xf32> to vector<8x32xf32>
      %49 = arith.select %40, %48, %46 : vector<8x32xi1>, vector<8x32xf32>
      %50 = vector.shape_cast %49 : vector<8x32xf32> to vector<1x8x32xf32>
      %c0_30 = arith.constant 0 : index
      %c0_31 = arith.constant 0 : index
      %c0_32 = arith.constant 0 : index
      %51 = vector.load %arg11[%c0_30, %c0_31, %c0_32] : memref<1x8x32xf32, #tpu.memory_space<vmem>>, vector<1x8x32xf32>
      tpu.vector_store %arg11[%c0_30, %c0_31, %c0_32], %50 {strides = array<i32>} : memref<1x8x32xf32, #tpu.memory_space<vmem>>, vector<1x8x32xf32>,
    } else {
    }
    return
  }
  func.func @transform_0(%arg0: i32, %arg1: i32, %arg2: i32) -> (i32, i32) {
    %c0_i32 = arith.constant 0 : i32
    return %arg0, %arg2 : i32, i32
  }
  func.func @transform_1(%arg0: i32, %arg1: i32, %arg2: i32) -> (i32, i32) {
    %c0_i32 = arith.constant 0 : i32
    return %arg2, %arg1 : i32, i32
  }
  func.func @transform_2(%arg0: i32, %arg1: i32, %arg2: i32) -> (i32, i32) {
    %c0_i32 = arith.constant 0 : i32
    %c0_i32_0 = arith.constant 0 : i32
    return %c0_i32, %arg2 : i32, i32
  }
  func.func @transform_3(%arg0: i32, %arg1: i32, %arg2: i32) -> (i32, i32) {
    %c0_i32 = arith.constant 0 : i32
    %c0_i32_0 = arith.constant 0 : i32
    return %c0_i32, %arg2 : i32, i32
  }
  func.func @transform_4(%arg0: i32, %arg1: i32, %arg2: i32) -> (i32, i32) {
    %c0_i32 = arith.constant 0 : i32
    return %arg0, %arg1 : i32, i32
  }
  func.func @transform_5(%arg0: i32, %arg1: i32, %arg2: i32) -> (i32, i32) {
    %c0_i32 = arith.constant 0 : i32
    %c0_i32_0 = arith.constant 0 : i32
    return %c0_i32, %arg1 : i32, i32
  }
  func.func @transform_6(%arg0: i32, %arg1: i32, %arg2: i32) -> (i32, i32) {
    %c0_i32 = arith.constant 0 : i32
    %c0_i32_0 = arith.constant 0 : i32
    return %c0_i32, %arg1 : i32, i32
  }
  func.func @transform_7(%arg0: i32, %arg1: i32, %arg2: i32) -> (i32, i32) {
    %c0_i32 = arith.constant 0 : i32
    return %arg0, %arg1 : i32, i32
  }
  func.func @transform_8(%arg0: i32, %arg1: i32, %arg2: i32) -> (i32, i32, i32) {
    %c0_i32 = arith.constant 0 : i32
    %c0_i32_0 = arith.constant 0 : i32
    return %arg0, %c0_i32, %arg1 : i32, i32, i32
  }
}

</mosaic_0001>

<bundles_post_ra>
// kernel: bottleneck_forward.4
= control target key start
LH: loop header
LB: loop body
LE: loop exit
PB: predicated region body
PF: predicated region fallthrough
CT: control target
= control target key end

     0   :  { %vm341_vm0 = vcmask 1041408   ;;  %vm244_vm1 = vcmask 31744   ;;  %vm18_vm2 = vcmask 64512   ;;  %v1155_v62 = vmov 0.0   ;;  %s2325_s1 = inlined_call_operand.vmem [shape: bf16[4,8], index: 1, kind: input, shape index: {}]   ;;  %s2326_s0 = inlined_call_operand.vmem [shape: f32[512,4], index: 0, kind: input, shape index: {}]   ;;  %s2327_s2 = inlined_call_operand.vmem [shape: f32[512,8], index: 2, kind: output, shape index: {0}]   ;;  %s2328_s3 = inlined_call_operand.vmem [shape: f32[1,8,8], index: 3, kind: output, shape index: {1}]  }
   0x1   :  { %v243_v0 = vld [vmem:[%s2325_s1] sm:$0x3]  ;;  %v84_v2 = vld [vmem:[%s2326_s0 + $0x8] sm:$0xff]  ;;  %v85_v8 = vld [vmem:[%s2326_s0 + $0x10] sm:$0xff]  ;;  %19 = vst.msk [vmem:[#allocation2] sm:$0xff] %vm18_vm2, %v1155_v62 }
   0x2   :  { %v83_v1 = vld [vmem:[%s2326_s0] sm:$0xff]  ;;  %v343_v3 = vsel %vm341_vm0, %v243_v0, 0  ;;  %v100_v6 = vld [vmem:[%s2326_s0 + $0x88] sm:$0xff]  ;;  %v86_v9 = vld [vmem:[%s2326_s0 + $0x18] sm:$0xff]  ;;  %20 = vst.msk [vmem:[#allocation2 + $0x8] sm:$0xff] %vm18_vm2, %v1155_v62 }
   0x3   :  { %v211_v4 = vpack.c.bf16 %v84_v2, %v83_v1  ;;  %v99_v5 = vld [vmem:[%s2326_s0 + $0x80] sm:$0xff]  ;;  %352 = vmatpush.bf16.msra.mxu0 %v343_v3  ;;  %1151 = vmatpush.bf16.msra.mxu1 %v343_v3  ;;  %v101_v10 = vld [vmem:[%s2326_s0 + $0x90] sm:$0xff]  ;;  %v102_v11 = vld [vmem:[%s2326_s0 + $0x98] sm:$0xff]  ;;  %v212_v12 = vpack.c.bf16 %v86_v9, %v85_v8  ;;  %21 = vst.msk [vmem:[#allocation2 + $0x10] sm:$0xff] %vm18_vm2, %v1155_v62 }
   0x4   :  { %v219_v7 = vpack.c.bf16 %v100_v6, %v99_v5  ;;  %1152 = vmatpush.bf16.msra.mxu2 %v343_v3  ;;  %1153 = vmatpush.bf16.msra.mxu3 %v343_v3  ;;  %v220_v13 = vpack.c.bf16 %v102_v11, %v101_v10  ;;  %v115_v14 = vld [vmem:[%s2326_s0 + $0x100] sm:$0xff]  ;;  %v116_v15 = vld [vmem:[%s2326_s0 + $0x108] sm:$0xff]  ;;  %v117_v23 = vld [vmem:[%s2326_s0 + $0x110] sm:$0xff]  ;;  %22 = vst.msk [vmem:[#allocation2 + $0x18] sm:$0xff] %vm18_vm2, %v1155_v62 }
   0x5   :  { %v227_v16 = vpack.c.bf16 %v116_v15, %v115_v14  ;;  %v87_v17 = vld [vmem:[%s2326_s0 + $0x20] sm:$0xff]  ;;  %v88_v18 = vld [vmem:[%s2326_s0 + $0x28] sm:$0xff]  ;;  %v118_v24 = vld [vmem:[%s2326_s0 + $0x118] sm:$0xff]  ;;  %23 = vst.msk [vmem:[#allocation2 + $0x20] sm:$0xff] %vm18_vm2, %v1155_v62 }
   0x6   :  { %1119 = vmatmul.msk.bf16.vlgmr.msra.gmra.mxu0 %vm244_vm1, %v211_v4  ;;  %1127 = vmatmul.msk.bf16.vlgmr.msra.gmra.mxu1 %vm244_vm1, %v219_v7  ;;  %v103_v19 = vld [vmem:[%s2326_s0 + $0xa0] sm:$0xff]  ;;  %v104_v20 = vld [vmem:[%s2326_s0 + $0xa8] sm:$0xff]  ;;  %v213_v21 = vpack.c.bf16 %v88_v18, %v87_v17  ;;  %v228_v25 = vpack.c.bf16 %v118_v24, %v117_v23  ;;  %v89_v26 = vld [vmem:[%s2326_s0 + $0x30] sm:$0xff]  ;;  %24 = vst.msk [vmem:[#allocation2 + $0x28] sm:$0xff] %vm18_vm2, %v1155_v62 }
   0x7   :  { %1135 = vmatmul.msk.bf16.vlgmr.msra.gmra.mxu2 %vm244_vm1, %v227_v16  ;;  %v221_v22 = vpack.c.bf16 %v104_v20, %v103_v19  ;;  %v90_v27 = vld [vmem:[%s2326_s0 + $0x38] sm:$0xff]  ;;  %v105_v28 = vld [vmem:[%s2326_s0 + $0xb0] sm:$0xff]  ;;  %v119_v32 = vld [vmem:[%s2326_s0 + $0x120] sm:$0xff]  ;;  %25 = vst.msk [vmem:[#allocation2 + $0x30] sm:$0xff] %vm18_vm2, %v1155_v62 }
   0x8   :  { %v106_v29 = vld [vmem:[%s2326_s0 + $0xb8] sm:$0xff]  ;;  %v214_v30 = vpack.c.bf16 %v90_v27, %v89_v26  ;;  %v120_v33 = vld [vmem:[%s2326_s0 + $0x128] sm:$0xff]  ;;  %v131_v34 = vld [vmem:[%s2326_s0 + $0x180] sm:$0xff]  ;;  %26 = vst.msk [vmem:[#allocation2 + $0x38] sm:$0xff] %vm18_vm2, %v1155_v62 }
   0x9   :  { %v222_v31 = vpack.c.bf16 %v106_v29, %v105_v28  ;;  %v229_v35 = vpack.c.bf16 %v120_v33, %v119_v32  ;;  %v132_v36 = vld [vmem:[%s2326_s0 + $0x188] sm:$0xff]  ;;  %v91_v38 = vld [vmem:[%s2326_s0 + $0x40] sm:$0xff]  ;;  %v121_v44 = vld [vmem:[%s2326_s0 + $0x130] sm:$0xff]  ;;  %27 = vst.msk [vmem:[#allocation2 + $0x40] sm:$0xff] %vm18_vm2, %v1155_v62 }
   0xa   :  { %v235_v37 = vpack.c.bf16 %v132_v36, %v131_v34  ;;  %v92_v39 = vld [vmem:[%s2326_s0 + $0x48] sm:$0xff]  ;;  %v107_v40 = vld [vmem:[%s2326_s0 + $0xc0] sm:$0xff]  ;;  %v122_v45 = vld [vmem:[%s2326_s0 + $0x138] sm:$0xff]  ;;  %28 = vst.msk [vmem:[#allocation2 + $0x48] sm:$0xff] %vm18_vm2, %v1155_v62 }
   0xb   :  { %v108_v41 = vld [vmem:[%s2326_s0 + $0xc8] sm:$0xff]  ;;  %v215_v42 = vpack.c.bf16 %v92_v39, %v91_v38  ;;  %v133_v46 = vld [vmem:[%s2326_s0 + $0x190] sm:$0xff]  ;;  %v230_v47 = vpack.c.bf16 %v122_v45, %v121_v44  ;;  %v134_v48 = vld [vmem:[%s2326_s0 + $0x198] sm:$0xff]  ;;  %29 = vst.msk [vmem:[#allocation2 + $0x50] sm:$0xff] %vm18_vm2, %v1155_v62 }
   0xc   :  { %1143 = vmatmul.msk.bf16.vlgmr.msra.gmra.mxu3 %vm244_vm1, %v235_v37  ;;  %v223_v43 = vpack.c.bf16 %v108_v41, %v107_v40  ;;  %v236_v49 = vpack.c.bf16 %v134_v48, %v133_v46  ;;  %v93_v50 = vld [vmem:[%s2326_s0 + $0x50] sm:$0xff]  ;;  %v94_v51 = vld [vmem:[%s2326_s0 + $0x58] sm:$0xff]  ;;  %v123_v56 = vld [vmem:[%s2326_s0 + $0x140] sm:$0xff]  ;;  %30 = vst.msk [vmem:[#allocation2 + $0x58] sm:$0xff] %vm18_vm2, %v1155_v62 }
   0xd   :  { %v109_v52 = vld [vmem:[%s2326_s0 + $0xd0] sm:$0xff]  ;;  %v110_v53 = vld [vmem:[%s2326_s0 + $0xd8] sm:$0xff]  ;;  %v216_v54 = vpack.c.bf16 %v94_v51, %v93_v50  ;;  %v124_v57 = vld [vmem:[%s2326_s0 + $0x148] sm:$0xff]  ;;  %31 = vst.msk [vmem:[#allocation2 + $0x60] sm:$0xff] %vm18_vm2, %v1155_v62 }
   0xe   :  { %v224_v55 = vpack.c.bf16 %v110_v53, %v109_v52  ;;  %v135_v58 = vld [vmem:[%s2326_s0 + $0x1a0] sm:$0xff]  ;;  %v231_v59 = vpack.c.bf16 %v124_v57, %v123_v56  ;;  %v136_v60 = vld [vmem:[%s2326_s0 + $0x1a8] sm:$0xff]  ;;  %32 = vst.msk [vmem:[#allocation2 + $0x68] sm:$0xff] %vm18_vm2, %v1155_v62  ;;  %v125_v5 = vld [vmem:[%s2326_s0 + $0x150] sm:$0xff] }
   0xf   :  { %v237_v61 = vpack.c.bf16 %v136_v60, %v135_v58  ;;  %v95_v63 = vld [vmem:[%s2326_s0 + $0x60] sm:$0xff]  ;;  %v96_v0 = vld [vmem:[%s2326_s0 + $0x68] sm:$0xff]  ;;  %33 = vst.msk [vmem:[#allocation2 + $0x70] sm:$0xff] %vm18_vm2, %v1155_v62  ;;  %v126_v6 = vld [vmem:[%s2326_s0 + $0x158] sm:$0xff] }
  0x10   :  { %v111_v1 = vld [vmem:[%s2326_s0 + $0xe0] sm:$0xff]  ;;  %v112_v2 = vld [vmem:[%s2326_s0 + $0xe8] sm:$0xff]  ;;  %v217_v3 = vpack.c.bf16 %v96_v0, %v95_v63  ;;  %v137_v7 = vld [vmem:[%s2326_s0 + $0x1b0] sm:$0xff]  ;;  %34 = vst.msk [vmem:[#allocation2 + $0x78] sm:$0xff] %vm18_vm2, %v1155_v62  ;;  %v232_v8 = vpack.c.bf16 %v126_v6, %v125_v5 }
  0x11   :  { %v225_v4 = vpack.c.bf16 %v112_v2, %v111_v1  ;;  %v138_v9 = vld [vmem:[%s2326_s0 + $0x1b8] sm:$0xff]  ;;  %35 = vst.msk [vmem:[#allocation2 + $0x80] sm:$0xff] %vm18_vm2, %v1155_v62  ;;  %v97_v11 = vld [vmem:[%s2326_s0 + $0x70] sm:$0xff]  ;;  %v127_v17 = vld [vmem:[%s2326_s0 + $0x160] sm:$0xff] }
  0x12   :  { %v238_v10 = vpack.c.bf16 %v138_v9, %v137_v7  ;;  %36 = vst.msk [vmem:[#allocation2 + $0x88] sm:$0xff] %vm18_vm2, %v1155_v62  ;;  %v113_v14 = vld [vmem:[%s2326_s0 + $0xf0] sm:$0xff]  ;;  %v114_v15 = vld [vmem:[%s2326_s0 + $0xf8] sm:$0xff]  ;;  %v128_v18 = vld [vmem:[%s2326_s0 + $0x168] sm:$0xff] }
  0x13   :  { %37 = vst.msk [vmem:[#allocation2 + $0x90] sm:$0xff] %vm18_vm2, %v1155_v62  ;;  %v226_v16 = vpack.c.bf16 %v114_v15, %v113_v14  ;;  %v139_v19 = vld [vmem:[%s2326_s0 + $0x1c0] sm:$0xff]  ;;  %v141_v32 = vld [vmem:[%s2326_s0 + $0x1d0] sm:$0xff]  ;;  %v142_v34 = vld [vmem:[%s2326_s0 + $0x1d8] sm:$0xff] }
  0x14   :  { %38 = vst.msk [vmem:[#allocation2 + $0x98] sm:$0xff] %vm18_vm2, %v1155_v62  ;;  %v147_v20 = vld [vmem:[#allocation2] sm:$0xff]  ;;  %v240_v36 = vpack.c.bf16 %v142_v34, %v141_v32  ;;  %v149_v37 = vld [vmem:[#allocation2 + $0x10] sm:$0xff]  ;;  %v150_v46 = vld [vmem:[#allocation2 + $0x18] sm:$0xff] }
  0x15   :  { %39 = vst.msk [vmem:[#allocation2 + $0xa0] sm:$0xff] %vm18_vm2, %v1155_v62  ;;  %v144_v56 = vld [vmem:[%s2326_s0 + $0x1e8] sm:$0xff] }
  0x16   :  { %1120 = vmatmul.msk.bf16.gmra.mxu0 %vm244_vm1, %v212_v12  ;;  %1128 = vmatmul.msk.bf16.gmra.mxu1 %vm244_vm1, %v220_v13  ;;  %40 = vst.msk [vmem:[#allocation2 + $0xa8] sm:$0xff] %vm18_vm2, %v1155_v62  ;;  %v98_v12 = vld [vmem:[%s2326_s0 + $0x78] sm:$0xff] }
  0x17   :  { %1136 = vmatmul.msk.bf16.gmra.mxu2 %vm244_vm1, %v228_v25  ;;  %41 = vst.msk [vmem:[#allocation2 + $0xb0] sm:$0xff] %vm18_vm2, %v1155_v62  ;;  %v218_v13 = vpack.c.bf16 %v98_v12, %v97_v11 }
  0x18   :  { %42 = vst.msk [vmem:[#allocation2 + $0xb8] sm:$0xff] %vm18_vm2, %v1155_v62  ;;  %v163_v39 = vld [vmem:[#allocation2 + $0x80] sm:$0xff] }
  0x19   :  { %43 = vst.msk [vmem:[#allocation2 + $0xc0] sm:$0xff] %vm18_vm2, %v1155_v62  ;;  %v164_v41 = vld [vmem:[#allocation2 + $0x88] sm:$0xff] }
  0x1a   :  { %44 = vst.msk [vmem:[#allocation2 + $0xc8] sm:$0xff] %vm18_vm2, %v1155_v62 }
  0x1b   :  { %45 = vst.msk [vmem:[#allocation2 + $0xd0] sm:$0xff] %vm18_vm2, %v1155_v62  ;;  %v166_v53 = vld [vmem:[#allocation2 + $0x98] sm:$0xff] }
  0x1c   :  { %1144 = vmatmul.msk.bf16.gmra.mxu3 %vm244_vm1, %v236_v49  ;;  %46 = vst.msk [vmem:[#allocation2 + $0xd8] sm:$0xff] %vm18_vm2, %v1155_v62 }
  0x1d   :  { %47 = vst.msk [vmem:[#allocation2 + $0xe0] sm:$0xff] %vm18_vm2, %v1155_v62 }
  0x1e   :  { %48 = vst.msk [vmem:[#allocation2 + $0xe8] sm:$0xff] %vm18_vm2, %v1155_v62 }
  0x1f   :  { %49 = vst.msk [vmem:[#allocation2 + $0xf0] sm:$0xff] %vm18_vm2, %v1155_v62 }
  0x20   :  { %50 = vst.msk [vmem:[#allocation2 + $0xf8] sm:$0xff] %vm18_vm2, %v1155_v62 }
  0x21   :  { %51 = vst.msk [vmem:[#allocation2 + $0x100] sm:$0xff] %vm18_vm2, %v1155_v62 }
  0x22   :  { %52 = vst.msk [vmem:[#allocation2 + $0x108] sm:$0xff] %vm18_vm2, %v1155_v62 }
  0x23   :  { %53 = vst.msk [vmem:[#allocation2 + $0x110] sm:$0xff] %vm18_vm2, %v1155_v62 }
  0x24   :  { %54 = vst.msk [vmem:[#allocation2 + $0x118] sm:$0xff] %vm18_vm2, %v1155_v62 }
  0x25   :  { %55 = vst.msk [vmem:[#allocation2 + $0x120] sm:$0xff] %vm18_vm2, %v1155_v62 }
  0x26   :  { %1121 = vmatmul.msk.bf16.gmra.mxu0 %vm244_vm1, %v213_v21  ;;  %1129 = vmatmul.msk.bf16.gmra.mxu1 %vm244_vm1, %v221_v22  ;;  %56 = vst.msk [vmem:[#allocation2 + $0x128] sm:$0xff] %vm18_vm2, %v1155_v62  ;;  %v233_v21 = vpack.c.bf16 %v128_v18, %v127_v17  ;;  %v140_v22 = vld [vmem:[%s2326_s0 + $0x1c8] sm:$0xff] }
  0x27   :  { %1137 = vmatmul.msk.bf16.gmra.mxu2 %vm244_vm1, %v229_v35  ;;  %57 = vst.msk [vmem:[#allocation2 + $0x130] sm:$0xff] %vm18_vm2, %v1155_v62  ;;  %v239_v23 = vpack.c.bf16 %v140_v22, %v139_v19  ;;  %v148_v35 = vld [vmem:[#allocation2 + $0x8] sm:$0xff] }
  0x28   :  { %58 = vst.msk [vmem:[#allocation2 + $0x138] sm:$0xff] %vm18_vm2, %v1155_v62  ;;  %v152_v22 = vld [vmem:[#allocation2 + $0x28] sm:$0xff] }
  0x29   :  { %59 = vst.msk [vmem:[#allocation2 + $0x140] sm:$0xff] %vm18_vm2, %v1155_v62  ;;  %v180_v32 = vld [vmem:[#allocation2 + $0x108] sm:$0xff] }
  0x2a   :  { %60 = vst.msk [vmem:[#allocation2 + $0x148] sm:$0xff] %vm18_vm2, %v1155_v62 }
  0x2b   :  { %61 = vst.msk [vmem:[#allocation2 + $0x150] sm:$0xff] %vm18_vm2, %v1155_v62 }
  0x2c   :  { %1145 = vmatmul.msk.bf16.gmra.mxu3 %vm244_vm1, %v237_v61  ;;  %62 = vst.msk [vmem:[#allocation2 + $0x158] sm:$0xff] %vm18_vm2, %v1155_v62  ;;  %v151_v61 = vld [vmem:[#allocation2 + $0x20] sm:$0xff] }
  0x2d   :  { %63 = vst.msk [vmem:[#allocation2 + $0x160] sm:$0xff] %vm18_vm2, %v1155_v62 }
  0x2e   :  { %64 = vst.msk [vmem:[#allocation2 + $0x168] sm:$0xff] %vm18_vm2, %v1155_v62 }
  0x2f   :  { %65 = vst.msk [vmem:[#allocation2 + $0x170] sm:$0xff] %vm18_vm2, %v1155_v62 }
  0x30   :  { %66 = vst.msk [vmem:[#allocation2 + $0x178] sm:$0xff] %vm18_vm2, %v1155_v62 }
  0x31   :  { %67 = vst.msk [vmem:[#allocation2 + $0x180] sm:$0xff] %vm18_vm2, %v1155_v62 }
  0x32   :  { %68 = vst.msk [vmem:[#allocation2 + $0x188] sm:$0xff] %vm18_vm2, %v1155_v62 }
  0x33   :  { %69 = vst.msk [vmem:[#allocation2 + $0x190] sm:$0xff] %vm18_vm2, %v1155_v62 }
  0x34   :  { %70 = vst.msk [vmem:[#allocation2 + $0x198] sm:$0xff] %vm18_vm2, %v1155_v62 }
  0x35   :  { %71 = vst.msk [vmem:[#allocation2 + $0x1a0] sm:$0xff] %vm18_vm2, %v1155_v62 }
  0x36   :  { %1122 = vmatmul.msk.bf16.gmra.mxu0 %vm244_vm1, %v214_v30  ;;  %1130 = vmatmul.msk.bf16.gmra.mxu1 %vm244_vm1, %v222_v31  ;;  %72 = vst.msk [vmem:[#allocation2 + $0x1a8] sm:$0xff] %vm18_vm2, %v1155_v62  ;;  %v129_v30 = vld [vmem:[%s2326_s0 + $0x170] sm:$0xff]  ;;  %v130_v31 = vld [vmem:[%s2326_s0 + $0x178] sm:$0xff] }
  0x37   :  { %1138 = vmatmul.msk.bf16.gmra.mxu2 %vm244_vm1, %v230_v47  ;;  %73 = vst.msk [vmem:[#allocation2 + $0x1b0] sm:$0xff] %vm18_vm2, %v1155_v62  ;;  %v234_v33 = vpack.c.bf16 %v130_v31, %v129_v30  ;;  %v165_v47 = vld [vmem:[#allocation2 + $0x90] sm:$0xff]  ;;  %v168_v30 = vld [vmem:[#allocation2 + $0xa8] sm:$0xff] }
  0x38   :  { %74 = vst.msk [vmem:[#allocation2 + $0x1b8] sm:$0xff] %vm18_vm2, %v1155_v62 }
  0x39   :  { %75 = vst.msk [vmem:[#allocation2 + $0x1c0] sm:$0xff] %vm18_vm2, %v1155_v62 }
  0x3a   :  { %76 = vst.msk [vmem:[#allocation2 + $0x1c8] sm:$0xff] %vm18_vm2, %v1155_v62 }
  0x3b   :  { %77 = vst.msk [vmem:[#allocation2 + $0x1d0] sm:$0xff] %vm18_vm2, %v1155_v62 }
  0x3c   :  { %1146 = vmatmul.msk.bf16.gmra.mxu3 %vm244_vm1, %v238_v10  ;;  %78 = vst.msk [vmem:[#allocation2 + $0x1d8] sm:$0xff] %vm18_vm2, %v1155_v62 }
  0x3d   :  { %79 = vst.msk [vmem:[#allocation2 + $0x1e0] sm:$0xff] %vm18_vm2, %v1155_v62 }
  0x3e   :  { %80 = vst.msk [vmem:[#allocation2 + $0x1e8] sm:$0xff] %vm18_vm2, %v1155_v62 }
  0x3f   :  { %81 = vst.msk [vmem:[#allocation2 + $0x1f0] sm:$0xff] %vm18_vm2, %v1155_v62 }
  0x40   :  { %82 = vst.msk [vmem:[#allocation2 + $0x1f8] sm:$0xff] %vm18_vm2, %v1155_v62 }
  0x46   :  { %1123 = vmatmul.msk.bf16.gmra.mxu0 %vm244_vm1, %v215_v42  ;;  %1131 = vmatmul.msk.bf16.gmra.mxu1 %vm244_vm1, %v223_v43 }
  0x47   :  { %1139 = vmatmul.msk.bf16.gmra.mxu2 %vm244_vm1, %v231_v59 }
  0x4c   :  { %1147 = vmatmul.msk.bf16.gmra.mxu3 %vm244_vm1, %v239_v23  ;;  %v167_v23 = vld [vmem:[#allocation2 + $0xa0] sm:$0xff] }
  0x56   :  { %1124 = vmatmul.msk.bf16.gmra.mxu0 %vm244_vm1, %v216_v54  ;;  %1132 = vmatmul.msk.bf16.gmra.mxu1 %vm244_vm1, %v224_v55  ;;  %v143_v55 = vld [vmem:[%s2326_s0 + $0x1e0] sm:$0xff] }
  0x57   :  { %1140 = vmatmul.msk.bf16.gmra.mxu2 %vm244_vm1, %v232_v8  ;;  %v241_v62 = vpack.c.bf16 %v144_v56, %v143_v55  ;;  %v169_v56 = vld [vmem:[#allocation2 + $0xb0] sm:$0xff] }
  0x5c   :  { %1148 = vmatmul.msk.bf16.gmra.mxu3 %vm244_vm1, %v240_v36 }
  0x66   :  { %1125 = vmatmul.msk.bf16.gmra.mxu0 %vm244_vm1, %v217_v3  ;;  %1133 = vmatmul.msk.bf16.gmra.mxu1 %vm244_vm1, %v225_v4 }
  0x67   :  { %1141 = vmatmul.msk.bf16.gmra.mxu2 %vm244_vm1, %v233_v21 }
  0x6c   :  { %1149 = vmatmul.msk.bf16.gmra.mxu3 %vm244_vm1, %v241_v62 }
  0x76   :  { %1126 = vmatmul.msk.bf16.gmra.mxu0 %vm244_vm1, %v218_v13  ;;  %1134 = vmatmul.msk.bf16.gmra.mxu1 %vm244_vm1, %v226_v16 }
  0x77   :  { %1142 = vmatmul.msk.bf16.gmra.mxu2 %vm244_vm1, %v234_v33 }
  0x83   :  { %v354_v24 = vpop.f32.mrf.mxu0  ;;  %v394_v26 = vpop.f32.mrf.mxu1 }
  0x84   :  { %v514_v25 = vadd.f32 %v354_v24, %v147_v20  ;;  %v530_v44 = vadd.f32 %v394_v26, %v163_v39  ;;  %v179_v24 = vld [vmem:[#allocation2 + $0x100] sm:$0xff] }
  0x86   :  { %579 = vst.msk [vmem:[#allocation2] sm:$0xff] %vm18_vm2, %v514_v25 }
  0x87   :  { %595 = vst.msk [vmem:[#allocation2 + $0x80] sm:$0xff] %vm18_vm2, %v530_v44 }
  0x8a   :  { %v434_v18 = vpop.f32.mrf.mxu2 }
  0x8b   :  { %v356_v27 = vpop.f32.mrf.mxu0  ;;  %v396_v29 = vpop.f32.mrf.mxu1  ;;  %v546_v26 = vadd.f32 %v434_v18, %v179_v24  ;;  %v195_v24 = vld [vmem:[#allocation2 + $0x180] sm:$0xff] }
  0x8c   :  { %v515_v40 = vadd.f32 %v356_v27, %v148_v35  ;;  %v531_v45 = vadd.f32 %v396_v29, %v164_v41  ;;  %v146_v41 = vld [vmem:[%s2326_s0 + $0x1f8] sm:$0xff] }
  0x8d   :  { %v646_v28 = vld [vmem:[#allocation2] sm:$0xff]  ;;  %611 = vst.msk [vmem:[#allocation2 + $0x100] sm:$0xff] %vm18_vm2, %v546_v26 }
  0x8e   :  { %710 = vst.msk [vmem:[%s2327_s2] sm:$0xff] %vm18_vm2, %v646_v28  ;;  %v907_v52 = vmul.f32 %v646_v28, %v646_v28  ;;  %v774_v57 = vsel %vm18_vm2, %v646_v28, 0.0  ;;  %v1545_v2 = vld [vmem:[#allocation2 + $0x80] sm:$0xff] }
  0x8f   :  { %580 = vst.msk [vmem:[#allocation2 + $0x8] sm:$0xff] %vm18_vm2, %v515_v40  ;;  %v145_v40 = vld [vmem:[%s2326_s0 + $0x1f0] sm:$0xff] }
  0x90   :  { %596 = vst.msk [vmem:[#allocation2 + $0x88] sm:$0xff] %vm18_vm2, %v531_v45  ;;  %v971_v3 = vsel %vm18_vm2, %v907_v52, 0.0  ;;  %v242_v44 = vpack.c.bf16 %v146_v41, %v145_v40  ;;  %v157_v40 = vld [vmem:[#allocation2 + $0x50] sm:$0xff] }
  0x91   :  { %726 = vst.msk [vmem:[%s2327_s2 + $0x80] sm:$0xff] %vm18_vm2, %v1545_v2 }
  0x92   :  { %v436_v33 = vpop.f32.mrf.mxu2  ;;  %1150 = vmatmul.msk.bf16.gmra.mxu3 %vm244_vm1, %v242_v44 }
  0x93   :  { %v359_v38 = vpop.f32.mrf.mxu0  ;;  %v399_v43 = vpop.f32.mrf.mxu1 }
  0x94   :  { %v516_v42 = vadd.f32 %v359_v38, %v149_v37  ;;  %v532_v48 = vadd.f32 %v399_v43, %v165_v47  ;;  %v547_v38 = vadd.f32 %v436_v33, %v180_v32  ;;  %v153_v43 = vld [vmem:[#allocation2 + $0x30] sm:$0xff] }
  0x96   :  { %581 = vst.msk [vmem:[#allocation2 + $0x10] sm:$0xff] %vm18_vm2, %v516_v42  ;;  %v647_v54 = vld [vmem:[#allocation2 + $0x8] sm:$0xff] }
  0x97   :  { %597 = vst.msk [vmem:[#allocation2 + $0x90] sm:$0xff] %vm18_vm2, %v532_v48  ;;  %v775_v58 = vsel %vm18_vm2, %v647_v54, 0.0  ;;  %v908_v59 = vmul.f32 %v647_v54, %v647_v54  ;;  %v1554_v6 = vld [vmem:[#allocation2 + $0x88] sm:$0xff] }
  0x98   :  { %711 = vst.msk [vmem:[%s2327_s2 + $0x8] sm:$0xff] %vm18_vm2, %v647_v54  ;;  %v776_v63 = vadd.f32 %v775_v58, %v774_v57  ;;  %v181_v57 = vld [vmem:[#allocation2 + $0x110] sm:$0xff] }
  0x99   :  { %v972_v4 = vsel %vm18_vm2, %v908_v59, 0.0  ;;  %727 = vst.msk [vmem:[%s2327_s2 + $0x88] sm:$0xff] %vm18_vm2, %v1554_v6 }
  0x9a   :  { %v973_v8 = vadd.f32 %v972_v4, %v971_v3  ;;  %612 = vst.msk [vmem:[#allocation2 + $0x108] sm:$0xff] %vm18_vm2, %v547_v38  ;;  %v439_v52 = vpop.f32.mrf.mxu2 }
  0x9b   :  { %v361_v49 = vpop.f32.mrf.mxu0  ;;  %v401_v51 = vpop.f32.mrf.mxu1  ;;  %v548_v59 = vadd.f32 %v439_v52, %v181_v57 }
  0x9c   :  { %v517_v50 = vadd.f32 %v361_v49, %v150_v46  ;;  %v533_v7 = vadd.f32 %v401_v51, %v166_v53  ;;  %v1613_v49 = vld [vmem:[#allocation2 + $0x100] sm:$0xff]  ;;  %v154_v53 = vld [vmem:[#allocation2 + $0x38] sm:$0xff] }
  0x9d   :  { %v648_v60 = vld [vmem:[#allocation2 + $0x10] sm:$0xff]  ;;  %742 = vst.msk [vmem:[%s2327_s2 + $0x100] sm:$0xff] %vm18_vm2, %v1613_v49 }
  0x9e   :  { %582 = vst.msk [vmem:[#allocation2 + $0x18] sm:$0xff] %vm18_vm2, %v517_v50  ;;  %v777_v0 = vsel %vm18_vm2, %v648_v60, 0.0  ;;  %v909_v1 = vmul.f32 %v648_v60, %v648_v60  ;;  %v1562_v12 = vld [vmem:[#allocation2 + $0x90] sm:$0xff] }
  0x9f   :  { %712 = vst.msk [vmem:[%s2327_s2 + $0x10] sm:$0xff] %vm18_vm2, %v648_v60  ;;  %v778_v9 = vadd.f32 %v777_v0, %v776_v63  ;;  %v170_v63 = vld [vmem:[#allocation2 + $0xb8] sm:$0xff] }
  0xa0   :  { %v974_v10 = vsel %vm18_vm2, %v909_v1, 0.0  ;;  %728 = vst.msk [vmem:[%s2327_s2 + $0x90] sm:$0xff] %vm18_vm2, %v1562_v12  ;;  %v182_v1 = vld [vmem:[#allocation2 + $0x118] sm:$0xff] }
  0xa1   :  { %v975_v14 = vadd.f32 %v974_v10, %v973_v8  ;;  %598 = vst.msk [vmem:[#allocation2 + $0x98] sm:$0xff] %vm18_vm2, %v533_v7  ;;  %v1636_v55 = vld [vmem:[#allocation2 + $0x108] sm:$0xff]  ;;  %v155_v7 = vld [vmem:[#allocation2 + $0x40] sm:$0xff] }
  0xa2   :  { %743 = vst.msk [vmem:[%s2327_s2 + $0x108] sm:$0xff] %vm18_vm2, %v1636_v55  ;;  %v441_v3 = vpop.f32.mrf.mxu2 }
  0xa3   :  { %v364_v5 = vpop.f32.mrf.mxu0  ;;  %v404_v17 = vpop.f32.mrf.mxu1  ;;  %613 = vst.msk [vmem:[#allocation2 + $0x110] sm:$0xff] %vm18_vm2, %v548_v59  ;;  %v173_v59 = vld [vmem:[#allocation2 + $0xd0] sm:$0xff] }
  0xa4   :  { %v518_v11 = vadd.f32 %v364_v5, %v151_v61  ;;  %v534_v25 = vadd.f32 %v404_v17, %v167_v23  ;;  %v549_v5 = vadd.f32 %v441_v3, %v182_v1  ;;  %v156_v17 = vld [vmem:[#allocation2 + $0x48] sm:$0xff] }
  0xa5   :  { %v649_v13 = vld [vmem:[#allocation2 + $0x18] sm:$0xff] }
  0xa6   :  { %713 = vst.msk [vmem:[%s2327_s2 + $0x18] sm:$0xff] %vm18_vm2, %v649_v13  ;;  %v779_v15 = vsel %vm18_vm2, %v649_v13, 0.0  ;;  %v910_v16 = vmul.f32 %v649_v13, %v649_v13 }
  0xa7   :  { %v780_v19 = vadd.f32 %v779_v15, %v778_v9  ;;  %583 = vst.msk [vmem:[#allocation2 + $0x20] sm:$0xff] %vm18_vm2, %v518_v11 }
  0xa8   :  { %v976_v20 = vsel %vm18_vm2, %v910_v16, 0.0  ;;  %599 = vst.msk [vmem:[#allocation2 + $0xa0] sm:$0xff] %vm18_vm2, %v534_v25  ;;  %v1586_v36 = vld [vmem:[#allocation2 + $0x98] sm:$0xff]  ;;  %v474_v16 = vpop.f32.mrf.mxu3 }
  0xa9   :  { %v977_v21 = vadd.f32 %v976_v20, %v975_v14  ;;  %729 = vst.msk [vmem:[%s2327_s2 + $0x98] sm:$0xff] %vm18_vm2, %v1586_v36  ;;  %v171_v20 = vld [vmem:[#allocation2 + $0xc0] sm:$0xff] }
  0xaa   :  { %614 = vst.msk [vmem:[#allocation2 + $0x118] sm:$0xff] %vm18_vm2, %v549_v5  ;;  %v1662_v11 = vld [vmem:[#allocation2 + $0x110] sm:$0xff]  ;;  %v444_v15 = vpop.f32.mrf.mxu2 }
  0xab   :  { %v366_v27 = vpop.f32.mrf.mxu0  ;;  %v406_v31 = vpop.f32.mrf.mxu1  ;;  %744 = vst.msk [vmem:[%s2327_s2 + $0x110] sm:$0xff] %vm18_vm2, %v1662_v11 }
  0xac   :  { %v519_v28 = vadd.f32 %v366_v27, %v152_v22  ;;  %v535_v37 = vadd.f32 %v406_v31, %v168_v30  ;;  %v562_v27 = vadd.f32 %v474_v16, %v195_v24  ;;  %v184_v31 = vld [vmem:[#allocation2 + $0x128] sm:$0xff] }
  0xae   :  { %v650_v29 = vld [vmem:[#allocation2 + $0x20] sm:$0xff]  ;;  %584 = vst.msk [vmem:[#allocation2 + $0x28] sm:$0xff] %vm18_vm2, %v519_v28 }
  0xaf   :  { %714 = vst.msk [vmem:[%s2327_s2 + $0x20] sm:$0xff] %vm18_vm2, %v650_v29  ;;  %v781_v34 = vsel %vm18_vm2, %v650_v29, 0.0  ;;  %v911_v35 = vmul.f32 %v650_v29, %v650_v29  ;;  %v1606_v47 = vld [vmem:[#allocation2 + $0xa0] sm:$0xff]  ;;  %v172_v29 = vld [vmem:[#allocation2 + $0xc8] sm:$0xff] }
  0xb0   :  { %v1588_v39 = vadd.f32 %v781_v34, %v780_v19  ;;  %600 = vst.msk [vmem:[#allocation2 + $0xa8] sm:$0xff] %vm18_vm2, %v535_v37  ;;  %v476_v37 = vpop.f32.mrf.mxu3 }
  0xb1   :  { %v978_v42 = vsel %vm18_vm2, %v911_v35, 0.0  ;;  %730 = vst.msk [vmem:[%s2327_s2 + $0xa0] sm:$0xff] %vm18_vm2, %v1606_v47  ;;  %v1684_v19 = vld [vmem:[#allocation2 + $0x118] sm:$0xff]  ;;  %v196_v35 = vld [vmem:[#allocation2 + $0x188] sm:$0xff] }
  0xb2   :  { %v1603_v45 = vadd.f32 %v978_v42, %v977_v21  ;;  %v183_v21 = vld [vmem:[#allocation2 + $0x120] sm:$0xff]  ;;  %745 = vst.msk [vmem:[%s2327_s2 + $0x118] sm:$0xff] %vm18_vm2, %v1684_v19  ;;  %v446_v32 = vpop.f32.mrf.mxu2  ;;  %v563_v38 = vadd.f32 %v476_v37, %v196_v35  ;;  %v160_v35 = vld [vmem:[#allocation2 + $0x68] sm:$0xff] }
  0xb3   :  { %v369_v46 = vpop.f32.mrf.mxu0  ;;  %v409_v51 = vpop.f32.mrf.mxu1  ;;  %v550_v23 = vadd.f32 %v444_v15, %v183_v21  ;;  %v551_v34 = vadd.f32 %v446_v32, %v184_v31  ;;  %627 = vst.msk [vmem:[#allocation2 + $0x180] sm:$0xff] %vm18_vm2, %v562_v27 }
  0xb4   :  { %v520_v48 = vadd.f32 %v369_v46, %v153_v43  ;;  %v536_v58 = vadd.f32 %v409_v51, %v169_v56  ;;  %628 = vst.msk [vmem:[#allocation2 + $0x188] sm:$0xff] %vm18_vm2, %v563_v38  ;;  %v158_v56 = vld [vmem:[#allocation2 + $0x58] sm:$0xff] }
  0xb5   :  { %v1616_v50 = vld [vmem:[#allocation2 + $0x28] sm:$0xff]  ;;  %615 = vst.msk [vmem:[#allocation2 + $0x120] sm:$0xff] %vm18_vm2, %v550_v23  ;;  %v159_v23 = vld [vmem:[#allocation2 + $0x60] sm:$0xff] }
  0xb6   :  { %715 = vst.msk [vmem:[%s2327_s2 + $0x28] sm:$0xff] %vm18_vm2, %v1616_v50 }
  0xb7   :  { %585 = vst.msk [vmem:[#allocation2 + $0x30] sm:$0xff] %vm18_vm2, %v520_v48  ;;  %v1629_v54 = vld [vmem:[#allocation2 + $0xa8] sm:$0xff] }
  0xb8   :  { %731 = vst.msk [vmem:[%s2327_s2 + $0xa8] sm:$0xff] %vm18_vm2, %v1629_v54 }
  0xb9   :  { %601 = vst.msk [vmem:[#allocation2 + $0xb0] sm:$0xff] %vm18_vm2, %v536_v58 }
  0xba   :  { %616 = vst.msk [vmem:[#allocation2 + $0x128] sm:$0xff] %vm18_vm2, %v551_v34  ;;  %v449_v51 = vpop.f32.mrf.mxu2  ;;  %v1727_v52 = vld [vmem:[#allocation2 + $0x180] sm:$0xff] }
  0xbb   :  { %v371_v60 = vpop.f32.mrf.mxu0  ;;  %v411_v0 = vpop.f32.mrf.mxu1  ;;  %758 = vst.msk [vmem:[%s2327_s2 + $0x180] sm:$0xff] %vm18_vm2, %v1727_v52 }
  0xbc   :  { %v521_v61 = vadd.f32 %v371_v60, %v154_v53  ;;  %v537_v4 = vadd.f32 %v411_v0, %v170_v63  ;;  %v1712_v44 = vld [vmem:[#allocation2 + $0x120] sm:$0xff]  ;;  %v479_v53 = vpop.f32.mrf.mxu3  ;;  %v185_v60 = vld [vmem:[#allocation2 + $0x130] sm:$0xff] }
  0xbd   :  { %746 = vst.msk [vmem:[%s2327_s2 + $0x120] sm:$0xff] %vm18_vm2, %v1712_v44  ;;  %v197_v0 = vld [vmem:[#allocation2 + $0x190] sm:$0xff]  ;;  %v552_v3 = vadd.f32 %v449_v51, %v185_v60 }
  0xbe   :  { %v1645_v62 = vld [vmem:[#allocation2 + $0x30] sm:$0xff]  ;;  %586 = vst.msk [vmem:[#allocation2 + $0x38] sm:$0xff] %vm18_vm2, %v521_v61  ;;  %v1748_v61 = vld [vmem:[#allocation2 + $0x188] sm:$0xff]  ;;  %v564_v5 = vadd.f32 %v479_v53, %v197_v0  ;;  %v175_v53 = vld [vmem:[#allocation2 + $0xe0] sm:$0xff] }
  0xbf   :  { %716 = vst.msk [vmem:[%s2327_s2 + $0x30] sm:$0xff] %vm18_vm2, %v1645_v62 }
  0xc0   :  { %602 = vst.msk [vmem:[#allocation2 + $0xb8] sm:$0xff] %vm18_vm2, %v537_v4  ;;  %v1655_v9 = vld [vmem:[#allocation2 + $0xb0] sm:$0xff] }
  0xc1   :  { %732 = vst.msk [vmem:[%s2327_s2 + $0xb0] sm:$0xff] %vm18_vm2, %v1655_v9  ;;  %v1741_v58 = vld [vmem:[#allocation2 + $0x128] sm:$0xff] }
  0xc2   :  { %747 = vst.msk [vmem:[%s2327_s2 + $0x128] sm:$0xff] %vm18_vm2, %v1741_v58  ;;  %v451_v15 = vpop.f32.mrf.mxu2 }
  0xc3   :  { %v374_v8 = vpop.f32.mrf.mxu0  ;;  %v414_v14 = vpop.f32.mrf.mxu1  ;;  %759 = vst.msk [vmem:[%s2327_s2 + $0x188] sm:$0xff] %vm18_vm2, %v1748_v61 }
  0xc4   :  { %v522_v10 = vadd.f32 %v374_v8, %v155_v7  ;;  %v538_v22 = vadd.f32 %v414_v14, %v171_v20  ;;  %617 = vst.msk [vmem:[#allocation2 + $0x130] sm:$0xff] %vm18_vm2, %v552_v3  ;;  %v174_v8 = vld [vmem:[#allocation2 + $0xd8] sm:$0xff]  ;;  %v481_v21 = vpop.f32.mrf.mxu3  ;;  %v199_v3 = vld [vmem:[#allocation2 + $0x1a0] sm:$0xff] }
  0xc5   :  { %v1664_v13 = vld [vmem:[#allocation2 + $0x38] sm:$0xff]  ;;  %629 = vst.msk [vmem:[#allocation2 + $0x190] sm:$0xff] %vm18_vm2, %v564_v5  ;;  %v188_v5 = vld [vmem:[#allocation2 + $0x148] sm:$0xff] }
  0xc6   :  { %717 = vst.msk [vmem:[%s2327_s2 + $0x38] sm:$0xff] %vm18_vm2, %v1664_v13  ;;  %v186_v14 = vld [vmem:[#allocation2 + $0x138] sm:$0xff] }
  0xc7   :  { %587 = vst.msk [vmem:[#allocation2 + $0x40] sm:$0xff] %vm18_vm2, %v522_v10  ;;  %v1677_v18 = vld [vmem:[#allocation2 + $0xb8] sm:$0xff] }
  0xc8   :  { %733 = vst.msk [vmem:[%s2327_s2 + $0xb8] sm:$0xff] %vm18_vm2, %v1677_v18  ;;  %v198_v20 = vld [vmem:[#allocation2 + $0x198] sm:$0xff] }
  0xc9   :  { %603 = vst.msk [vmem:[#allocation2 + $0xc0] sm:$0xff] %vm18_vm2, %v538_v22  ;;  %v565_v22 = vadd.f32 %v481_v21, %v198_v20  ;;  %v200_v20 = vld [vmem:[#allocation2 + $0x1a8] sm:$0xff]  ;;  %v785_v21 = vsel %vm18_vm2, %v1645_v62, 0.0 }
  0xca   :  { %v454_v31 = vpop.f32.mrf.mxu2 }
  0xcb   :  { %v376_v25 = vpop.f32.mrf.mxu0  ;;  %v416_v30 = vpop.f32.mrf.mxu1  ;;  %630 = vst.msk [vmem:[#allocation2 + $0x198] sm:$0xff] %vm18_vm2, %v565_v22  ;;  %v1776_v27 = vld [vmem:[#allocation2 + $0x130] sm:$0xff] }
  0xcc   :  { %v523_v26 = vadd.f32 %v376_v25, %v156_v17  ;;  %v539_v33 = vadd.f32 %v416_v30, %v172_v29  ;;  %v553_v17 = vadd.f32 %v451_v15, %v186_v14  ;;  %748 = vst.msk [vmem:[%s2327_s2 + $0x130] sm:$0xff] %vm18_vm2, %v1776_v27  ;;  %v1791_v32 = vld [vmem:[#allocation2 + $0x190] sm:$0xff]  ;;  %v914_v14 = vmul.f32 %v1664_v13, %v1664_v13 }
  0xcd   :  { %760 = vst.msk [vmem:[%s2327_s2 + $0x190] sm:$0xff] %vm18_vm2, %v1791_v32 }
  0xce   :  { %v1693_v28 = vld [vmem:[#allocation2 + $0x40] sm:$0xff]  ;;  %588 = vst.msk [vmem:[#allocation2 + $0x48] sm:$0xff] %vm18_vm2, %v523_v26 }
  0xcf   :  { %718 = vst.msk [vmem:[%s2327_s2 + $0x40] sm:$0xff] %vm18_vm2, %v1693_v28 }
  0xd0   :  { %604 = vst.msk [vmem:[#allocation2 + $0xc8] sm:$0xff] %vm18_vm2, %v539_v33  ;;  %v1704_v42 = vld [vmem:[#allocation2 + $0xc0] sm:$0xff]  ;;  %v484_v33 = vpop.f32.mrf.mxu3 }
  0xd1   :  { %734 = vst.msk [vmem:[%s2327_s2 + $0xc0] sm:$0xff] %vm18_vm2, %v1704_v42  ;;  %v566_v15 = vadd.f32 %v484_v33, %v199_v3  ;;  %v984_v33 = vsel %vm18_vm2, %v914_v14, 0.0 }
  0xd2   :  { %618 = vst.msk [vmem:[#allocation2 + $0x138] sm:$0xff] %vm18_vm2, %v553_v17  ;;  %v1812_v38 = vld [vmem:[#allocation2 + $0x198] sm:$0xff]  ;;  %v456_v60 = vpop.f32.mrf.mxu2 }
  0xd3   :  { %v379_v41 = vpop.f32.mrf.mxu0  ;;  %v419_v48 = vpop.f32.mrf.mxu1  ;;  %761 = vst.msk [vmem:[%s2327_s2 + $0x198] sm:$0xff] %vm18_vm2, %v1812_v38  ;;  %v555_v17 = vadd.f32 %v456_v60, %v188_v5 }
  0xd4   :  { %v524_v43 = vadd.f32 %v379_v41, %v157_v40  ;;  %v540_v63 = vadd.f32 %v419_v48, %v173_v59  ;;  %v912_v41 = vmul.f32 %v1616_v50, %v1616_v50  ;;  %v913_v48 = vmul.f32 %v1645_v62, %v1645_v62  ;;  %631 = vst.msk [vmem:[#allocation2 + $0x1a0] sm:$0xff] %vm18_vm2, %v566_v15 }
  0xd5   :  { %v1714_v46 = vld [vmem:[#allocation2 + $0x48] sm:$0xff]  ;;  %620 = vst.msk [vmem:[#allocation2 + $0x148] sm:$0xff] %vm18_vm2, %v555_v17 }
  0xd6   :  { %719 = vst.msk [vmem:[%s2327_s2 + $0x48] sm:$0xff] %vm18_vm2, %v1714_v46  ;;  %v982_v22 = vsel %vm18_vm2, %v913_v48, 0.0  ;;  %v916_v62 = vmul.f32 %v1714_v46, %v1714_v46 }
  0xd7   :  { %589 = vst.msk [vmem:[#allocation2 + $0x50] sm:$0xff] %vm18_vm2, %v524_v43  ;;  %v1734_v57 = vld [vmem:[#allocation2 + $0xc8] sm:$0xff] }
  0xd8   :  { %735 = vst.msk [vmem:[%s2327_s2 + $0xc8] sm:$0xff] %vm18_vm2, %v1734_v57 }
  0xd9   :  { %605 = vst.msk [vmem:[#allocation2 + $0xd0] sm:$0xff] %vm18_vm2, %v540_v63  ;;  %v1805_v37 = vld [vmem:[#allocation2 + $0x138] sm:$0xff]  ;;  %v783_v63 = vsel %vm18_vm2, %v1616_v50, 0.0  ;;  %v161_v50 = vld [vmem:[#allocation2 + $0x70] sm:$0xff] }
  0xda   :  { %749 = vst.msk [vmem:[%s2327_s2 + $0x138] sm:$0xff] %vm18_vm2, %v1805_v37 }
  0xdb   :  { %v381_v1 = vpop.f32.mrf.mxu0  ;;  %v421_v10 = vpop.f32.mrf.mxu1  ;;  %v1886_v15 = vld [vmem:[#allocation2 + $0x1a0] sm:$0xff] }
  0xdc   :  { %v525_v4 = vadd.f32 %v381_v1, %v158_v56  ;;  %v541_v16 = vadd.f32 %v421_v10, %v174_v8  ;;  %v187_v56 = vld [vmem:[#allocation2 + $0x140] sm:$0xff]  ;;  %v486_v8 = vpop.f32.mrf.mxu3  ;;  %v980_v10 = vsel %vm18_vm2, %v912_v41, 0.0  ;;  %762 = vst.msk [vmem:[%s2327_s2 + $0x1a0] sm:$0xff] %vm18_vm2, %v1886_v15 }
  0xdd   :  { %v554_v1 = vadd.f32 %v454_v31, %v187_v56  ;;  %v459_v56 = vpop.f32.mrf.mxu2 }
  0xde   :  { %v1757_v7 = vld [vmem:[#allocation2 + $0x50] sm:$0xff]  ;;  %590 = vst.msk [vmem:[#allocation2 + $0x58] sm:$0xff] %vm18_vm2, %v525_v4  ;;  %v176_v4 = vld [vmem:[#allocation2 + $0xe8] sm:$0xff] }
  0xdf   :  { %720 = vst.msk [vmem:[%s2327_s2 + $0x50] sm:$0xff] %vm18_vm2, %v1757_v7  ;;  %v917_v48 = vmul.f32 %v1757_v7, %v1757_v7 }
  0xe0   :  { %606 = vst.msk [vmem:[#allocation2 + $0xd8] sm:$0xff] %vm18_vm2, %v541_v16  ;;  %v1768_v25 = vld [vmem:[#allocation2 + $0xd0] sm:$0xff] }
  0xe1   :  { %736 = vst.msk [vmem:[%s2327_s2 + $0xd0] sm:$0xff] %vm18_vm2, %v1768_v25  ;;  %v990_v14 = vsel %vm18_vm2, %v917_v48, 0.0 }
  0xe2   :  { %619 = vst.msk [vmem:[#allocation2 + $0x140] sm:$0xff] %vm18_vm2, %v554_v1 }
  0xe3   :  { %v384_v24 = vpop.f32.mrf.mxu0  ;;  %v424_v30 = vpop.f32.mrf.mxu1 }
  0xe4   :  { %v526_v26 = vadd.f32 %v384_v24, %v159_v23  ;;  %v542_v0 = vadd.f32 %v424_v30, %v175_v53  ;;  %v915_v23 = vmul.f32 %v1693_v28, %v1693_v28  ;;  %v784_v24 = vadd.f32 %v783_v63, %v1588_v39  ;;  %v489_v63 = vpop.f32.mrf.mxu3 }
  0xe5   :  { %v1778_v29 = vld [vmem:[#allocation2 + $0x58] sm:$0xff]  ;;  %v787_v30 = vsel %vm18_vm2, %v1664_v13, 0.0 }
  0xe6   :  { %721 = vst.msk [vmem:[%s2327_s2 + $0x58] sm:$0xff] %vm18_vm2, %v1778_v29  ;;  %v786_v41 = vadd.f32 %v785_v21, %v784_v24  ;;  %v986_v13 = vsel %vm18_vm2, %v915_v23, 0.0  ;;  %v918_v1 = vmul.f32 %v1778_v29, %v1778_v29  ;;  %v1905_v24 = vld [vmem:[#allocation2 + $0x148] sm:$0xff] }
  0xe7   :  { %591 = vst.msk [vmem:[#allocation2 + $0x60] sm:$0xff] %vm18_vm2, %v526_v26  ;;  %v1798_v34 = vld [vmem:[#allocation2 + $0xd8] sm:$0xff]  ;;  %v981_v26 = vadd.f32 %v980_v10, %v1603_v45  ;;  %v789_v45 = vsel %vm18_vm2, %v1693_v28, 0.0  ;;  %v791_v28 = vsel %vm18_vm2, %v1714_v46, 0.0  ;;  %v793_v46 = vsel %vm18_vm2, %v1757_v7, 0.0 }
  0xe8   :  { %737 = vst.msk [vmem:[%s2327_s2 + $0xd8] sm:$0xff] %vm18_vm2, %v1798_v34  ;;  %v992_v21 = vsel %vm18_vm2, %v918_v1, 0.0 }
  0xe9   :  { %607 = vst.msk [vmem:[#allocation2 + $0xe0] sm:$0xff] %vm18_vm2, %v542_v0  ;;  %v988_v0 = vsel %vm18_vm2, %v916_v62, 0.0  ;;  %v1876_v10 = vld [vmem:[#allocation2 + $0x140] sm:$0xff]  ;;  %v177_v62 = vld [vmem:[#allocation2 + $0xf0] sm:$0xff] }
  0xea   :  { %750 = vst.msk [vmem:[%s2327_s2 + $0x140] sm:$0xff] %vm18_vm2, %v1876_v10 }
  0xeb   :  { %v386_v40 = vpop.f32.mrf.mxu0  ;;  %v426_v59 = vpop.f32.mrf.mxu1  ;;  %751 = vst.msk [vmem:[%s2327_s2 + $0x148] sm:$0xff] %vm18_vm2, %v1905_v24 }
  0xec   :  { %v527_v43 = vadd.f32 %v386_v40, %v160_v35  ;;  %v543_v16 = vadd.f32 %v426_v59, %v176_v4  ;;  %v567_v40 = vadd.f32 %v486_v8, %v200_v20  ;;  %v788_v59 = vadd.f32 %v787_v30, %v786_v41  ;;  %v162_v8 = vld [vmem:[#allocation2 + $0x78] sm:$0xff]  ;;  %v461_v41 = vpop.f32.mrf.mxu2 }
  0xed   :  { %v795_v20 = vsel %vm18_vm2, %v1778_v29, 0.0 }
  0xee   :  { %v1823_v51 = vld [vmem:[#allocation2 + $0x60] sm:$0xff]  ;;  %592 = vst.msk [vmem:[#allocation2 + $0x68] sm:$0xff] %vm18_vm2, %v527_v43  ;;  %v983_v43 = vadd.f32 %v982_v22, %v981_v26  ;;  %v790_v4 = vadd.f32 %v789_v45, %v788_v59  ;;  %v201_v59 = vld [vmem:[#allocation2 + $0x1b0] sm:$0xff] }
  0xef   :  { %722 = vst.msk [vmem:[%s2327_s2 + $0x60] sm:$0xff] %vm18_vm2, %v1823_v51  ;;  %v919_v22 = vmul.f32 %v1823_v51, %v1823_v51  ;;  %v797_v29 = vsel %vm18_vm2, %v1823_v51, 0.0  ;;  %v178_v51 = vld [vmem:[#allocation2 + $0xf8] sm:$0xff] }
  0xf0   :  { %608 = vst.msk [vmem:[#allocation2 + $0xe8] sm:$0xff] %vm18_vm2, %v543_v16  ;;  %v985_v60 = vadd.f32 %v984_v33, %v983_v43  ;;  %v1868_v3 = vld [vmem:[#allocation2 + $0xe0] sm:$0xff]  ;;  %v792_v16 = vadd.f32 %v791_v28, %v790_v4 }
  0xf1   :  { %632 = vst.msk [vmem:[#allocation2 + $0x1a8] sm:$0xff] %vm18_vm2, %v567_v40  ;;  %v994_v28 = vsel %vm18_vm2, %v919_v22, 0.0 }
  0xf2   :  { %v987_v5 = vadd.f32 %v986_v13, %v985_v60  ;;  %738 = vst.msk [vmem:[%s2327_s2 + $0xe0] sm:$0xff] %vm18_vm2, %v1868_v3  ;;  %v794_v26 = vadd.f32 %v793_v46, %v792_v16  ;;  %v491_v60 = vpop.f32.mrf.mxu3 }
  0xf3   :  { %v389_v31 = vpop.f32.mrf.mxu0  ;;  %v429_v53 = vpop.f32.mrf.mxu1 }
  0xf4   :  { %v528_v35 = vadd.f32 %v389_v31, %v161_v50  ;;  %v989_v50 = vadd.f32 %v988_v0, %v987_v5  ;;  %v796_v43 = vadd.f32 %v795_v20, %v794_v26  ;;  %v544_v48 = vadd.f32 %v429_v53, %v177_v62  ;;  %v190_v5 = vld [vmem:[#allocation2 + $0x158] sm:$0xff] }
  0xf5   :  { %v659_v39 = vld [vmem:[#allocation2 + $0x68] sm:$0xff]  ;;  %v568_v53 = vadd.f32 %v489_v63, %v201_v59  ;;  %v557_v16 = vadd.f32 %v461_v41, %v190_v5  ;;  %v923_v26 = vmul.f32 %v1545_v2, %v1545_v2  ;;  %v924_v41 = vmul.f32 %v1554_v6, %v1554_v6 }
  0xf6   :  { %723 = vst.msk [vmem:[%s2327_s2 + $0x68] sm:$0xff] %vm18_vm2, %v659_v39  ;;  %v991_v30 = vadd.f32 %v990_v14, %v989_v50  ;;  %v920_v31 = vmul.f32 %v659_v39, %v659_v39  ;;  %v799_v0 = vsel %vm18_vm2, %v659_v39, 0.0  ;;  %v798_v46 = vadd.f32 %v797_v29, %v796_v43 }
  0xf7   :  { %593 = vst.msk [vmem:[#allocation2 + $0x70] sm:$0xff] %vm18_vm2, %v528_v35  ;;  %v1893_v7 = vld [vmem:[#allocation2 + $0xe8] sm:$0xff]  ;;  %v189_v35 = vld [vmem:[#allocation2 + $0x150] sm:$0xff] }
  0xf8   :  { %739 = vst.msk [vmem:[%s2327_s2 + $0xe8] sm:$0xff] %vm18_vm2, %v1893_v7  ;;  %v993_v45 = vadd.f32 %v992_v21, %v991_v30  ;;  %v1919_v13 = vld [vmem:[#allocation2 + $0x1a8] sm:$0xff]  ;;  %v556_v4 = vadd.f32 %v459_v56, %v189_v35  ;;  %v996_v50 = vsel %vm18_vm2, %v920_v31, 0.0  ;;  %v800_v20 = vadd.f32 %v799_v0, %v798_v46  ;;  %v464_v31 = vpop.f32.mrf.mxu2 }
  0xf9   :  { %763 = vst.msk [vmem:[%s2327_s2 + $0x1a8] sm:$0xff] %vm18_vm2, %v1919_v13  ;;  %v809_v46 = vsel %vm18_vm2, %v1562_v12, 0.0 }
  0xfa   :  { %609 = vst.msk [vmem:[#allocation2 + $0xf0] sm:$0xff] %vm18_vm2, %v544_v48  ;;  %v494_v35 = vpop.f32.mrf.mxu3 }
  0xfb   :  { %v391_v17 = vpop.f32.mrf.mxu0  ;;  %v431_v40 = vpop.f32.mrf.mxu1  ;;  %621 = vst.msk [vmem:[#allocation2 + $0x150] sm:$0xff] %vm18_vm2, %v556_v4 }
  0xfc   :  { %v529_v23 = vadd.f32 %v391_v17, %v162_v8  ;;  %v202_v8 = vld [vmem:[#allocation2 + $0x1b8] sm:$0xff]  ;;  %v545_v14 = vadd.f32 %v431_v40, %v178_v51  ;;  %v995_v17 = vadd.f32 %v994_v28, %v993_v45  ;;  %633 = vst.msk [vmem:[#allocation2 + $0x1b0] sm:$0xff] %vm18_vm2, %v568_v53  ;;  %v805_v40 = vsel %vm18_vm2, %v1545_v2, 0.0 }
  0xfd   :  { %v569_v21 = vadd.f32 %v491_v60, %v202_v8  ;;  %622 = vst.msk [vmem:[#allocation2 + $0x158] sm:$0xff] %vm18_vm2, %v557_v16  ;;  %v1002_v60 = vsel %vm18_vm2, %v923_v26, 0.0  ;;  %v807_v2 = vsel %vm18_vm2, %v1554_v6, 0.0  ;;  %v925_v28 = vmul.f32 %v1562_v12, %v1562_v12 }
  0xfe   :  { %v660_v33 = vld [vmem:[#allocation2 + $0x70] sm:$0xff]  ;;  %594 = vst.msk [vmem:[#allocation2 + $0x78] sm:$0xff] %vm18_vm2, %v529_v23  ;;  %v997_v22 = vadd.f32 %v996_v50, %v995_v17  ;;  %v1004_v8 = vsel %vm18_vm2, %v924_v41, 0.0  ;;  %v811_v12 = vsel %vm18_vm2, %v1586_v36, 0.0 }
  0xff   :  { %724 = vst.msk [vmem:[%s2327_s2 + $0x70] sm:$0xff] %vm18_vm2, %v660_v33  ;;  %v921_v1 = vmul.f32 %v660_v33, %v660_v33  ;;  %v801_v39 = vsel %vm18_vm2, %v660_v33, 0.0  ;;  %v1006_v50 = vsel %vm18_vm2, %v925_v28, 0.0 }
 0x100   :  { %610 = vst.msk [vmem:[#allocation2 + $0xf8] sm:$0xff] %vm18_vm2, %v545_v14  ;;  %v802_v23 = vadd.f32 %v801_v39, %v800_v20  ;;  %v927_v39 = vmul.f32 %v1606_v47, %v1606_v47  ;;  %v191_v20 = vld [vmem:[#allocation2 + $0x160] sm:$0xff] }
 0x101   :  { %v998_v56 = vsel %vm18_vm2, %v921_v1, 0.0  ;;  %634 = vst.msk [vmem:[#allocation2 + $0x1b8] sm:$0xff] %vm18_vm2, %v569_v21  ;;  %v1949_v45 = vld [vmem:[#allocation2 + $0xf0] sm:$0xff]  ;;  %v926_v1 = vmul.f32 %v1586_v36, %v1586_v36  ;;  %v203_v21 = vld [vmem:[#allocation2 + $0x1c0] sm:$0xff]  ;;  %v192_v36 = vld [vmem:[#allocation2 + $0x168] sm:$0xff] }
 0x102   :  { %v999_v33 = vadd.f32 %v998_v56, %v997_v22  ;;  %740 = vst.msk [vmem:[%s2327_s2 + $0xf0] sm:$0xff] %vm18_vm2, %v1949_v45  ;;  %v1956_v51 = vld [vmem:[#allocation2 + $0x150] sm:$0xff]  ;;  %v466_v56 = vpop.f32.mrf.mxu2 }
 0x103   :  { %752 = vst.msk [vmem:[%s2327_s2 + $0x150] sm:$0xff] %vm18_vm2, %v1956_v51  ;;  %v1968_v0 = vld [vmem:[#allocation2 + $0x1b0] sm:$0xff]  ;;  %v1008_v22 = vsel %vm18_vm2, %v926_v1, 0.0  ;;  %v559_v41 = vadd.f32 %v466_v56, %v192_v36  ;;  %v934_v36 = vmul.f32 %v1798_v34, %v1798_v34 }
 0x104   :  { %764 = vst.msk [vmem:[%s2327_s2 + $0x1b0] sm:$0xff] %vm18_vm2, %v1968_v0  ;;  %v1987_v53 = vld [vmem:[#allocation2 + $0x158] sm:$0xff] }
 0x105   :  { %v661_v63 = vld [vmem:[#allocation2 + $0x78] sm:$0xff]  ;;  %753 = vst.msk [vmem:[%s2327_s2 + $0x158] sm:$0xff] %vm18_vm2, %v1987_v53 }
 0x106   :  { %725 = vst.msk [vmem:[%s2327_s2 + $0x78] sm:$0xff] %vm18_vm2, %v661_v63  ;;  %v803_v30 = vsel %vm18_vm2, %v661_v63, 0.0  ;;  %v922_v29 = vmul.f32 %v661_v63, %v661_v63 }
 0x107   :  { %v804_v62 = vadd.f32 %v803_v30, %v802_v23  ;;  %v1977_v6 = vld [vmem:[#allocation2 + $0xf8] sm:$0xff]  ;;  %v813_v23 = vsel %vm18_vm2, %v1606_v47, 0.0  ;;  %v204_v30 = vld [vmem:[#allocation2 + $0x1c8] sm:$0xff]  ;;  %624 = vst.msk [vmem:[#allocation2 + $0x168] sm:$0xff] %vm18_vm2, %v559_v41 }
 0x108   :  { %v1000_v43 = vsel %vm18_vm2, %v922_v29, 0.0  ;;  %741 = vst.msk [vmem:[%s2327_s2 + $0xf8] sm:$0xff] %vm18_vm2, %v1977_v6  ;;  %v1999_v17 = vld [vmem:[#allocation2 + $0x1b8] sm:$0xff]  ;;  %v496_v29 = vpop.f32.mrf.mxu3 }
 0x109   :  { %v806_v48 = vadd.f32 %v805_v40, %v804_v62  ;;  %v1001_v59 = vadd.f32 %v1000_v43, %v999_v33  ;;  %765 = vst.msk [vmem:[%s2327_s2 + $0x1b8] sm:$0xff] %vm18_vm2, %v1999_v17  ;;  %v928_v33 = vmul.f32 %v1629_v54, %v1629_v54  ;;  %v558_v62 = vadd.f32 %v464_v31, %v191_v20 }
 0x10a   :  { %v570_v40 = vadd.f32 %v494_v35, %v203_v21  ;;  %v571_v47 = vadd.f32 %v496_v29, %v204_v30  ;;  %v817_v35 = vsel %vm18_vm2, %v1655_v9, 0.0  ;;  %v821_v20 = vsel %vm18_vm2, %v1704_v42, 0.0 }
 0x10b   :  { %v808_v4 = vadd.f32 %v807_v2, %v806_v48  ;;  %v1003_v5 = vadd.f32 %v1002_v60, %v1001_v59  ;;  %v1010_v59 = vsel %vm18_vm2, %v927_v39, 0.0  ;;  %v815_v60 = vsel %vm18_vm2, %v1629_v54, 0.0  ;;  %623 = vst.msk [vmem:[#allocation2 + $0x160] sm:$0xff] %vm18_vm2, %v558_v62 }
 0x10c   :  { %v929_v2 = vmul.f32 %v1655_v9, %v1655_v9  ;;  %635 = vst.msk [vmem:[#allocation2 + $0x1c0] sm:$0xff] %vm18_vm2, %v570_v40  ;;  %v1012_v31 = vsel %vm18_vm2, %v928_v33, 0.0  ;;  %v932_v21 = vmul.f32 %v1734_v57, %v1734_v57  ;;  %v825_v62 = vsel %vm18_vm2, %v1768_v25, 0.0 }
 0x10d   :  { %v810_v14 = vadd.f32 %v809_v46, %v808_v4  ;;  %v1005_v16 = vadd.f32 %v1004_v8, %v1003_v5  ;;  %v930_v4 = vmul.f32 %v1677_v18, %v1677_v18  ;;  %636 = vst.msk [vmem:[#allocation2 + $0x1c8] sm:$0xff] %vm18_vm2, %v571_v47  ;;  %v819_v46 = vsel %vm18_vm2, %v1677_v18, 0.0 }
 0x10e   :  { %v1014_v8 = vsel %vm18_vm2, %v929_v2, 0.0  ;;  %v1020_v33 = vsel %vm18_vm2, %v932_v21, 0.0  ;;  %v1024_v47 = vsel %vm18_vm2, %v934_v36, 0.0  ;;  %v205_v2 = vld [vmem:[#allocation2 + $0x1d0] sm:$0xff] }
 0x10f   :  { %v812_v63 = vadd.f32 %v811_v12, %v810_v14  ;;  %v1007_v26 = vadd.f32 %v1006_v50, %v1005_v16  ;;  %v931_v14 = vmul.f32 %v1704_v42, %v1704_v42  ;;  %v469_v16 = vpop.f32.mrf.mxu2  ;;  %v1016_v39 = vsel %vm18_vm2, %v930_v4, 0.0 }
 0x110   :  { %v499_v12 = vpop.f32.mrf.mxu3 }
 0x111   :  { %v814_v43 = vadd.f32 %v813_v23, %v812_v63  ;;  %v1009_v48 = vadd.f32 %v1008_v22, %v1007_v26  ;;  %v1018_v18 = vsel %vm18_vm2, %v931_v14, 0.0  ;;  %v823_v63 = vsel %vm18_vm2, %v1734_v57, 0.0  ;;  %v2056_v57 = vld [vmem:[#allocation2 + $0x168] sm:$0xff] }
 0x112   :  { %v2035_v23 = vld [vmem:[#allocation2 + $0x160] sm:$0xff]  ;;  %v933_v26 = vmul.f32 %v1768_v25, %v1768_v25  ;;  %755 = vst.msk [vmem:[%s2327_s2 + $0x168] sm:$0xff] %vm18_vm2, %v2056_v57  ;;  %v827_v25 = vsel %vm18_vm2, %v1798_v34, 0.0  ;;  %v936_v34 = vmul.f32 %v1893_v7, %v1893_v7 }
 0x113   :  { %v816_v28 = vadd.f32 %v815_v60, %v814_v43  ;;  %v1011_v1 = vadd.f32 %v1010_v59, %v1009_v48  ;;  %754 = vst.msk [vmem:[%s2327_s2 + $0x160] sm:$0xff] %vm18_vm2, %v2035_v23  ;;  %v2049_v42 = vld [vmem:[#allocation2 + $0x1c0] sm:$0xff]  ;;  %v935_v59 = vmul.f32 %v1868_v3, %v1868_v3  ;;  %v193_v60 = vld [vmem:[#allocation2 + $0x170] sm:$0xff] }
 0x114   :  { %766 = vst.msk [vmem:[%s2327_s2 + $0x1c0] sm:$0xff] %vm18_vm2, %v2049_v42  ;;  %v2066_v40 = vld [vmem:[#allocation2 + $0x1c8] sm:$0xff]  ;;  %v1022_v48 = vsel %vm18_vm2, %v933_v26, 0.0  ;;  %v560_v4 = vadd.f32 %v469_v16, %v193_v60  ;;  %v831_v16 = vsel %vm18_vm2, %v1893_v7, 0.0  ;;  %v939_v26 = vmul.f32 %v1613_v49, %v1613_v49 }
 0x115   :  { %v1013_v54 = vadd.f32 %v1012_v31, %v1011_v1  ;;  %v818_v5 = vadd.f32 %v817_v35, %v816_v28  ;;  %767 = vst.msk [vmem:[%s2327_s2 + $0x1c8] sm:$0xff] %vm18_vm2, %v2066_v40  ;;  %v194_v28 = vld [vmem:[#allocation2 + $0x178] sm:$0xff]  ;;  %v941_v60 = vmul.f32 %v1662_v11, %v1662_v11 }
 0x116   :  { %625 = vst.msk [vmem:[#allocation2 + $0x170] sm:$0xff] %vm18_vm2, %v560_v4  ;;  %v942_v4 = vmul.f32 %v1684_v19, %v1684_v19 }
 0x117   :  { %v820_v50 = vadd.f32 %v819_v46, %v818_v5  ;;  %v1015_v9 = vadd.f32 %v1014_v8, %v1013_v54  ;;  %v471_v1 = vpop.f32.mrf.mxu2  ;;  %v572_v54 = vadd.f32 %v499_v12, %v205_v2  ;;  %v206_v5 = vld [vmem:[#allocation2 + $0x1d8] sm:$0xff]  ;;  %v829_v46 = vsel %vm18_vm2, %v1868_v3, 0.0 }
 0x118   :  { %v501_v8 = vpop.f32.mrf.mxu3  ;;  %v561_v14 = vadd.f32 %v471_v1, %v194_v28  ;;  %v937_v12 = vmul.f32 %v1949_v45, %v1949_v45 }
 0x119   :  { %v822_v56 = vadd.f32 %v821_v20, %v820_v50  ;;  %v1017_v22 = vadd.f32 %v1016_v39, %v1015_v9  ;;  %v573_v50 = vadd.f32 %v501_v8, %v206_v5  ;;  %v1026_v20 = vsel %vm18_vm2, %v935_v59, 0.0  ;;  %637 = vst.msk [vmem:[#allocation2 + $0x1d0] sm:$0xff] %vm18_vm2, %v572_v54 }
 0x11a   :  { %626 = vst.msk [vmem:[#allocation2 + $0x178] sm:$0xff] %vm18_vm2, %v561_v14  ;;  %v1030_v36 = vsel %vm18_vm2, %v937_v12, 0.0  ;;  %v1034_v59 = vsel %vm18_vm2, %v939_v26, 0.0  ;;  %v1038_v8 = vsel %vm18_vm2, %v941_v60, 0.0  ;;  %v208_v14 = vld [vmem:[#allocation2 + $0x1e8] sm:$0xff]  ;;  %v845_v12 = vsel %vm18_vm2, %v1712_v44, 0.0 }
 0x11b   :  { %v824_v30 = vadd.f32 %v823_v63, %v822_v56  ;;  %v1019_v29 = vadd.f32 %v1018_v18, %v1017_v22  ;;  %v1028_v56 = vsel %vm18_vm2, %v936_v34, 0.0  ;;  %v833_v22 = vsel %vm18_vm2, %v1949_v45, 0.0  ;;  %638 = vst.msk [vmem:[#allocation2 + $0x1d8] sm:$0xff] %vm18_vm2, %v573_v50 }
 0x11c   :  { %v938_v18 = vmul.f32 %v1977_v6, %v1977_v6  ;;  %v837_v45 = vsel %vm18_vm2, %v1613_v49, 0.0  ;;  %v839_v49 = vsel %vm18_vm2, %v1636_v55, 0.0  ;;  %v943_v34 = vmul.f32 %v1712_v44, %v1712_v44 }
 0x11d   :  { %v826_v41 = vadd.f32 %v825_v62, %v824_v30  ;;  %v1021_v43 = vadd.f32 %v1020_v33, %v1019_v29  ;;  %v835_v30 = vsel %vm18_vm2, %v1977_v6, 0.0 }
 0x11f   :  { %v828_v31 = vadd.f32 %v827_v25, %v826_v41  ;;  %v1023_v35 = vadd.f32 %v1022_v48, %v1021_v43  ;;  %v940_v41 = vmul.f32 %v1636_v55, %v1636_v55  ;;  %v1032_v43 = vsel %vm18_vm2, %v938_v18, 0.0  ;;  %v2107_v48 = vld [vmem:[#allocation2 + $0x170] sm:$0xff] }
 0x120   :  { %v504_v62 = vpop.f32.mrf.mxu3  ;;  %756 = vst.msk [vmem:[%s2327_s2 + $0x170] sm:$0xff] %vm18_vm2, %v2107_v48  ;;  %v2114_v6 = vld [vmem:[#allocation2 + $0x1d0] sm:$0xff]  ;;  %v847_v18 = vsel %vm18_vm2, %v1741_v58, 0.0 }
 0x121   :  { %v830_v9 = vadd.f32 %v829_v46, %v828_v31  ;;  %v1025_v39 = vadd.f32 %v1024_v47, %v1023_v35  ;;  %768 = vst.msk [vmem:[%s2327_s2 + $0x1d0] sm:$0xff] %vm18_vm2, %v2114_v6  ;;  %v2126_v2 = vld [vmem:[#allocation2 + $0x178] sm:$0xff]  ;;  %v1036_v31 = vsel %vm18_vm2, %v940_v41, 0.0  ;;  %v841_v35 = vsel %vm18_vm2, %v1662_v11, 0.0  ;;  %v207_v11 = vld [vmem:[#allocation2 + $0x1e0] sm:$0xff] }
 0x122   :  { %757 = vst.msk [vmem:[%s2327_s2 + $0x178] sm:$0xff] %vm18_vm2, %v2126_v2  ;;  %v2133_v55 = vld [vmem:[#allocation2 + $0x1d8] sm:$0xff]  ;;  %v843_v46 = vsel %vm18_vm2, %v1684_v19, 0.0 }
 0x123   :  { %v1027_v3 = vadd.f32 %v1026_v20, %v1025_v39  ;;  %v832_v21 = vadd.f32 %v831_v16, %v830_v9  ;;  %769 = vst.msk [vmem:[%s2327_s2 + $0x1d8] sm:$0xff] %vm18_vm2, %v2133_v55  ;;  %v574_v39 = vadd.f32 %v504_v62, %v207_v11  ;;  %v1040_v16 = vsel %vm18_vm2, %v942_v4, 0.0 }
 0x124   :  { %v859_v11 = vsel %vm18_vm2, %v1987_v53, 0.0 }
 0x125   :  { %v1029_v7 = vadd.f32 %v1028_v56, %v1027_v3  ;;  %v834_v63 = vadd.f32 %v833_v22, %v832_v21  ;;  %v944_v3 = vmul.f32 %v1741_v58, %v1741_v58  ;;  %639 = vst.msk [vmem:[#allocation2 + $0x1e0] sm:$0xff] %vm18_vm2, %v574_v39  ;;  %v1042_v22 = vsel %vm18_vm2, %v943_v34, 0.0 }
 0x126   :  { %v851_v58 = vsel %vm18_vm2, %v1805_v37, 0.0 }
 0x127   :  { %v1031_v29 = vadd.f32 %v1030_v36, %v1029_v7  ;;  %v836_v33 = vadd.f32 %v835_v30, %v834_v63  ;;  %v945_v7 = vmul.f32 %v1776_v27, %v1776_v27  ;;  %v1044_v26 = vsel %vm18_vm2, %v944_v3, 0.0 }
 0x128   :  { %v506_v20 = vpop.f32.mrf.mxu3  ;;  %v849_v36 = vsel %vm18_vm2, %v1776_v27, 0.0  ;;  %v946_v30 = vmul.f32 %v1805_v37, %v1805_v37  ;;  %v853_v27 = vsel %vm18_vm2, %v1876_v10, 0.0  ;;  %v861_v3 = vsel %vm18_vm2, %v2035_v23, 0.0 }
 0x129   :  { %v838_v25 = vadd.f32 %v837_v45, %v836_v33  ;;  %v1033_v47 = vadd.f32 %v1032_v43, %v1031_v29  ;;  %v575_v21 = vadd.f32 %v506_v20, %v208_v14  ;;  %v1046_v62 = vsel %vm18_vm2, %v945_v7, 0.0 }
 0x12a   :  { %v947_v45 = vmul.f32 %v1876_v10, %v1876_v10  ;;  %v855_v10 = vsel %vm18_vm2, %v1905_v24, 0.0  ;;  %v951_v14 = vmul.f32 %v2035_v23, %v2035_v23  ;;  %v953_v7 = vmul.f32 %v2107_v48, %v2107_v48 }
 0x12b   :  { %v840_v28 = vadd.f32 %v839_v49, %v838_v25  ;;  %v1035_v1 = vadd.f32 %v1034_v59, %v1033_v47  ;;  %640 = vst.msk [vmem:[#allocation2 + $0x1e8] sm:$0xff] %vm18_vm2, %v575_v21  ;;  %v1048_v47 = vsel %vm18_vm2, %v946_v30, 0.0  ;;  %v948_v59 = vmul.f32 %v1905_v24, %v1905_v24 }
 0x12c   :  { %v2177_v49 = vld [vmem:[#allocation2 + $0x1e0] sm:$0xff]  ;;  %v952_v21 = vmul.f32 %v2056_v57, %v2056_v57 }
 0x12d   :  { %v842_v54 = vadd.f32 %v841_v35, %v840_v28  ;;  %v1037_v5 = vadd.f32 %v1036_v31, %v1035_v1  ;;  %770 = vst.msk [vmem:[%s2327_s2 + $0x1e0] sm:$0xff] %vm18_vm2, %v2177_v49  ;;  %v1050_v1 = vsel %vm18_vm2, %v947_v45, 0.0  ;;  %v949_v31 = vmul.f32 %v1956_v51, %v1956_v51 }
 0x12f   :  { %v844_v50 = vadd.f32 %v843_v46, %v842_v54  ;;  %v1039_v9 = vadd.f32 %v1038_v8, %v1037_v5  ;;  %v1052_v54 = vsel %vm18_vm2, %v948_v59, 0.0  ;;  %v857_v5 = vsel %vm18_vm2, %v1956_v51, 0.0 }
 0x130   :  { %v509_v25 = vpop.f32.mrf.mxu3  ;;  %v950_v8 = vmul.f32 %v1987_v53, %v1987_v53  ;;  %v1054_v34 = vsel %vm18_vm2, %v949_v31, 0.0  ;;  %v873_v31 = vsel %vm18_vm2, %v1791_v32, 0.0 }
 0x131   :  { %v846_v56 = vadd.f32 %v845_v12, %v844_v50  ;;  %v1041_v19 = vadd.f32 %v1040_v16, %v1039_v9  ;;  %v209_v50 = vld [vmem:[#allocation2 + $0x1f0] sm:$0xff]  ;;  %v210_v9 = vld [vmem:[#allocation2 + $0x1f8] sm:$0xff] }
 0x132   :  { %v2184_v37 = vld [vmem:[#allocation2 + $0x1e8] sm:$0xff]  ;;  %v576_v16 = vadd.f32 %v509_v25, %v209_v50  ;;  %v1056_v51 = vsel %vm18_vm2, %v950_v8, 0.0  ;;  %v959_v8 = vmul.f32 %v1886_v15, %v1886_v15 }
 0x133   :  { %v1043_v63 = vadd.f32 %v1042_v22, %v1041_v19  ;;  %v848_v44 = vadd.f32 %v847_v18, %v846_v56  ;;  %771 = vst.msk [vmem:[%s2327_s2 + $0x1e8] sm:$0xff] %vm18_vm2, %v2184_v37  ;;  %v1058_v22 = vsel %vm18_vm2, %v951_v14, 0.0  ;;  %v863_v18 = vsel %vm18_vm2, %v2056_v57, 0.0 }
 0x134   :  { %641 = vst.msk [vmem:[#allocation2 + $0x1f0] sm:$0xff] %vm18_vm2, %v576_v16  ;;  %v955_v57 = vmul.f32 %v1727_v52, %v1727_v52 }
 0x135   :  { %v850_v29 = vadd.f32 %v849_v36, %v848_v44  ;;  %v1045_v33 = vadd.f32 %v1044_v26, %v1043_v63  ;;  %v1060_v44 = vsel %vm18_vm2, %v952_v21, 0.0  ;;  %v865_v26 = vsel %vm18_vm2, %v2107_v48, 0.0 }
 0x136   :  { %v954_v36 = vmul.f32 %v2126_v2, %v2126_v2  ;;  %v956_v48 = vmul.f32 %v1748_v61, %v1748_v61  ;;  %v1066_v59 = vsel %vm18_vm2, %v955_v57, 0.0  ;;  %v966_v57 = vmul.f32 %v2133_v55, %v2133_v55 }
 0x137   :  { %v852_v41 = vadd.f32 %v851_v58, %v850_v29  ;;  %v1047_v43 = vadd.f32 %v1046_v62, %v1045_v33  ;;  %v1062_v33 = vsel %vm18_vm2, %v953_v7, 0.0  ;;  %v867_v62 = vsel %vm18_vm2, %v2126_v2, 0.0 }
 0x138   :  { %v511_v12 = vpop.f32.mrf.mxu3  ;;  %v964_v7 = vmul.f32 %v2066_v40, %v2066_v40 }
 0x139   :  { %v854_v60 = vadd.f32 %v853_v27, %v852_v41  ;;  %v1049_v28 = vadd.f32 %v1048_v47, %v1047_v43  ;;  %v577_v56 = vadd.f32 %v511_v12, %v210_v9  ;;  %v869_v41 = vsel %vm18_vm2, %v1727_v52, 0.0 }
 0x13a   :  { %v1064_v43 = vsel %vm18_vm2, %v954_v36, 0.0  ;;  %v871_v52 = vsel %vm18_vm2, %v1748_v61, 0.0  ;;  %v1074_v9 = vsel %vm18_vm2, %v959_v8, 0.0 }
 0x13b   :  { %v856_v35 = vadd.f32 %v855_v10, %v854_v60  ;;  %v1051_v4 = vadd.f32 %v1050_v1, %v1049_v28  ;;  %642 = vst.msk [vmem:[#allocation2 + $0x1f8] sm:$0xff] %vm18_vm2, %v577_v56  ;;  %v2233_v25 = vld [vmem:[#allocation2 + $0x1f0] sm:$0xff]  ;;  %v957_v60 = vmul.f32 %v1791_v32, %v1791_v32  ;;  %v1068_v10 = vsel %vm18_vm2, %v956_v48, 0.0 }
 0x13c   :  { %772 = vst.msk [vmem:[%s2327_s2 + $0x1f0] sm:$0xff] %vm18_vm2, %v2233_v25  ;;  %v877_v32 = vsel %vm18_vm2, %v1886_v15, 0.0  ;;  %v881_v15 = vsel %vm18_vm2, %v1968_v0, 0.0 }
 0x13d   :  { %v858_v24 = vadd.f32 %v857_v5, %v856_v35  ;;  %v1053_v46 = vadd.f32 %v1052_v54, %v1051_v4  ;;  %v958_v35 = vmul.f32 %v1812_v38, %v1812_v38  ;;  %v1070_v54 = vsel %vm18_vm2, %v957_v60, 0.0 }
 0x13e   :  { %v875_v5 = vsel %vm18_vm2, %v1812_v38, 0.0  ;;  %v879_v38 = vsel %vm18_vm2, %v1919_v13, 0.0  ;;  %v969_v60 = vmul.f32 %v2233_v25, %v2233_v25 }
 0x13f   :  { %v860_v39 = vadd.f32 %v859_v11, %v858_v24  ;;  %v1055_v20 = vadd.f32 %v1054_v34, %v1053_v46  ;;  %v1072_v34 = vsel %vm18_vm2, %v958_v35, 0.0  ;;  %v960_v11 = vmul.f32 %v1919_v13, %v1919_v13 }
 0x140   :  { %v883_v13 = vsel %vm18_vm2, %v1999_v17, 0.0 }
 0x141   :  { %v1057_v19 = vadd.f32 %v1056_v51, %v1055_v20  ;;  %v862_v53 = vadd.f32 %v861_v3, %v860_v39  ;;  %v961_v39 = vmul.f32 %v1968_v0, %v1968_v0  ;;  %v1076_v12 = vsel %vm18_vm2, %v960_v11, 0.0 }
 0x142   :  { %v2240_v2 = vld [vmem:[#allocation2 + $0x1f8] sm:$0xff]  ;;  %v962_v51 = vmul.f32 %v1999_v17, %v1999_v17  ;;  %v885_v0 = vsel %vm18_vm2, %v2049_v42, 0.0  ;;  %v887_v17 = vsel %vm18_vm2, %v2066_v40, 0.0  ;;  %v891_v40 = vsel %vm18_vm2, %v2133_v55, 0.0 }
 0x143   :  { %v1059_v63 = vadd.f32 %v1058_v22, %v1057_v19  ;;  %v864_v23 = vadd.f32 %v863_v18, %v862_v53  ;;  %773 = vst.msk [vmem:[%s2327_s2 + $0x1f8] sm:$0xff] %vm18_vm2, %v2240_v2  ;;  %v1078_v56 = vsel %vm18_vm2, %v961_v39, 0.0  ;;  %v963_v19 = vmul.f32 %v2049_v42, %v2049_v42 }
 0x144   :  { %v1080_v18 = vsel %vm18_vm2, %v962_v51, 0.0  ;;  %v889_v42 = vsel %vm18_vm2, %v2114_v6, 0.0  ;;  %v895_v55 = vsel %vm18_vm2, %v2184_v37, 0.0  ;;  %v1104_v11 = vlaneseq }
 0x145   :  { %v1061_v30 = vadd.f32 %v1060_v44, %v1059_v63  ;;  %v866_v29 = vadd.f32 %v865_v26, %v864_v23  ;;  %v1082_v44 = vsel %vm18_vm2, %v963_v19, 0.0  ;;  %v965_v26 = vmul.f32 %v2114_v6, %v2114_v6 }
 0x146   :  { %v893_v6 = vsel %vm18_vm2, %v2177_v49, 0.0 }
 0x147   :  { %v1063_v58 = vadd.f32 %v1062_v33, %v1061_v30  ;;  %v868_v45 = vadd.f32 %v867_v62, %v866_v29  ;;  %v1084_v29 = vsel %vm18_vm2, %v964_v7, 0.0 }
 0x149   :  { %v870_v47 = vadd.f32 %v869_v41, %v868_v45  ;;  %v1065_v27 = vadd.f32 %v1064_v43, %v1063_v58  ;;  %v1086_v58 = vsel %vm18_vm2, %v965_v26, 0.0  ;;  %v967_v45 = vmul.f32 %v2177_v49, %v2177_v49 }
 0x14a   :  { %v1088_v43 = vsel %vm18_vm2, %v966_v57, 0.0  ;;  %v897_v49 = vsel %vm18_vm2, %v2233_v25, 0.0 }
 0x14b   :  { %v872_v28 = vadd.f32 %v871_v52, %v870_v47  ;;  %v1067_v1 = vadd.f32 %v1066_v59, %v1065_v27  ;;  %v968_v47 = vmul.f32 %v2184_v37, %v2184_v37  ;;  %v1090_v52 = vsel %vm18_vm2, %v967_v45, 0.0 }
 0x14c   :  { %v899_v37 = vsel %vm18_vm2, %v2240_v2, 0.0 }
 0x14d   :  { %v874_v61 = vadd.f32 %v873_v31, %v872_v28  ;;  %v1069_v4 = vadd.f32 %v1068_v10, %v1067_v1  ;;  %v1092_v10 = vsel %vm18_vm2, %v968_v47, 0.0  ;;  %v970_v31 = vmul.f32 %v2240_v2, %v2240_v2 }
 0x14f   :  { %v876_v24 = vadd.f32 %v875_v5, %v874_v61  ;;  %v1071_v46 = vadd.f32 %v1070_v54, %v1069_v4  ;;  %v1094_v4 = vsel %vm18_vm2, %v969_v60, 0.0  ;;  %v1096_v8 = vsel %vm18_vm2, %v970_v31, 0.0 }
 0x151   :  { %v878_v14 = vadd.f32 %v877_v32, %v876_v24  ;;  %v1073_v50 = vadd.f32 %v1072_v34, %v1071_v46 }
 0x153   :  { %v1075_v20 = vadd.f32 %v1074_v9, %v1073_v50  ;;  %v880_v16 = vadd.f32 %v879_v38, %v878_v14  ;;  %v1105_v38 = vshrl.u32 %v1104_v11, 7 }
 0x155   :  { %v882_v3 = vadd.f32 %v881_v15, %v880_v16  ;;  %v1077_v21 = vadd.f32 %v1076_v12, %v1075_v20  ;;  %vm1107_vm3 = vcmp.eq.s32.totalorder %v1105_v38, 1  ;;  %vm1106_vm4 = vcmp.eq.s32.totalorder %v1105_v38, 0 }
 0x157   :  { %v884_v53 = vadd.f32 %v883_v13, %v882_v3  ;;  %v1079_v22 = vadd.f32 %v1078_v56, %v1077_v21 }
 0x159   :  { %v886_v63 = vadd.f32 %v885_v0, %v884_v53  ;;  %v1081_v23 = vadd.f32 %v1080_v18, %v1079_v22 }
 0x15b   :  { %v888_v36 = vadd.f32 %v887_v17, %v886_v63  ;;  %v1083_v30 = vadd.f32 %v1082_v44, %v1081_v23 }
 0x15d   :  { %v890_v33 = vadd.f32 %v889_v42, %v888_v36  ;;  %v1085_v62 = vadd.f32 %v1084_v29, %v1083_v30 }
 0x15f   :  { %v892_v41 = vadd.f32 %v891_v40, %v890_v33  ;;  %v1087_v48 = vadd.f32 %v1086_v58, %v1085_v62 }
 0x161   :  { %v1089_v27 = vadd.f32 %v1088_v43, %v1087_v48  ;;  %v894_v59 = vadd.f32 %v893_v6, %v892_v41 }
 0x163   :  { %v1091_v28 = vadd.f32 %v1090_v52, %v1089_v27  ;;  %v896_v1 = vadd.f32 %v895_v55, %v894_v59 }
 0x165   :  { %v1093_v35 = vadd.f32 %v1092_v10, %v1091_v28  ;;  %v898_v61 = vadd.f32 %v897_v49, %v896_v1 }
 0x167   :  { %v1095_v54 = vadd.f32 %v1094_v4, %v1093_v35  ;;  %v900_v5 = vadd.f32 %v899_v37, %v898_v61 }
 0x169   :  { %v901_v24 = vrot.slane %v900_v5, 4  ;;  %v1097_v46 = vadd.f32 %v1096_v8, %v1095_v54 }
 0x16b   :  { %v902_v34 = vadd.f32 %v901_v24, %v900_v5  ;;  %v1098_v32 = vrot.slane %v1097_v46, 4 }
 0x16d   :  { %v903_v25 = vrot.slane %v902_v34, 2  ;;  %v1099_v14 = vadd.f32 %v1098_v32, %v1097_v46 }
 0x16f   :  { %v904_v50 = vadd.f32 %v903_v25, %v902_v34  ;;  %v1100_v9 = vrot.slane %v1099_v14, 2 }
 0x171   :  { %v1101_v39 = vadd.f32 %v1100_v9, %v1099_v14  ;;  %v905_v20 = vrot.slane %v904_v50, 1 }
 0x173   :  { %v1102_v16 = vrot.slane %v1101_v39, 1  ;;  %v906_v2 = vadd.f32 %v905_v20, %v904_v50 }
 0x175   :  { %v1103_v12 = vadd.f32 %v1102_v16, %v1101_v39 }
 0x177   :  { %v1108_v15 = vsel %vm1107_vm3, %v1103_v12, 0.0 }
 0x178   :  { %v1109_v51 = vsel %vm1106_vm4, %v906_v2, %v1108_v15 }
 0x179   :  { %1110 = vst.msk [vmem:[%s2328_s3] sm:$0xff] %vm18_vm2, %v1109_v51 }

// kernel: bottleneck_forward.5
= control target key start
LH: loop header
LB: loop body
LE: loop exit
PB: predicated region body
PF: predicated region fallthrough
CT: control target
= control target key end

     0   :  { %s1253_s12 = smov 0   ;;  %s1255_s13 = smov 0   ;;  %s1659_s0 = inlined_call_operand.vmem [shape: f32[2,4,9,9,8], index: 0, kind: input, shape index: {}]   ;;  %s1660_s1 = inlined_call_operand.vmem [shape: bf16[9,8,8], index: 1, kind: input, shape index: {}]   ;;  %s1661_s2 = inlined_call_operand.vmem [shape: f32[2,8,8,8], index: 2, kind: output, shape index: {0}]   ;;  %s1662_s3 = inlined_call_operand.vmem [shape: f32[2,8,8], index: 3, kind: output, shape index: {1}]  }
   0x1   :  { %s1257_s14 = smov 0  }
   0x2 LB: > { %s26_s15 = sadd.s32 1, %s1227_s13  ;;  %p1096_p0 = scmp.ge.s32.totalorder %s1231_s14, 1  ;;  %s1231_s14 = sphi %s1257_s14, %s14_s14   ;;  %s1227_s13 = sphi %s1255_s13, %s1664_s13   ;;  %s1223_s12 = sphi %s1253_s12, %s1663_s12  }
   0x3   : > { %p28_p1 = scmp.ge.s32.totalorder %s26_s15, 2  ;;  %p165_p2 = scmp.lt.s32.totalorder %s1231_s14, 3 }
   0x5   : > { %s1666_s15 = smov (%p28_p1, %s26_s15), 0  ;;  %p166_p3 = pnand %p1096_p0, %p165_p2 }
   0x6   : > { %p203_p4 = scmp.lt.s32.totalorder (!%p166_p3), %s1223_s12, 1 }
   0x7   : > { %169 = sbr.rel (%p166_p3) target bundleno = 315 (0x13b), region = 28 }
   0xc   : > { %v1110_v0 = vld [vmem:[%s1660_s1 + $0x4] sm:$0xf]  ;;  %vm280_vm0 = vcmask 1043456   ;;  %v1119_v2 = vld [vmem:[%s1660_s1 + $0x8] sm:$0xf]  ;;  %s1668_s12 = smov (!%p203_p4, %s1223_s12), 1 }
   0xd   : > { %v282_v1 = vsel %vm280_vm0, %v1110_v0, 0  ;;  %v1140_v3 = vld [vmem:[%s1660_s1 + $0xc] sm:$0xf]  ;;  %v425_v4 = vsel %vm280_vm0, %v1119_v2, 0  ;;  %v250_v6 = vld [vmem:[%s1660_s1] sm:$0xf] }
   0xe   : > { %1181 = vmatpush.bf16.msra.mxu1 %v282_v1  ;;  %1182 = vmatpush.bf16.msra.mxu2 %v282_v1  ;;  %v500_v5 = vsel %vm280_vm0, %v1140_v3, 0  ;;  %v326_v7 = vsel %vm280_vm0, %v250_v6, 0  ;;  %v1153_v8 = vld [vmem:[%s1660_s1 + $0x10] sm:$0xf]  ;;  %s1184_s26 = smul.u32 576, %s1668_s12  ;;  %vm267_vm1 = vcmask 64512  }
   0xf   : > { %1183 = vmatpush.bf16.msra.mxu3 %v282_v1  ;;  %291 = vmatpush.bf16.msra.mxu0 %v282_v1  ;;  %v567_v9 = vsel %vm280_vm0, %v1153_v8, 0  ;;  %v1163_v10 = vld [vmem:[%s1660_s1 + $0x18] sm:$0xf]  ;;  %v1168_v11 = vld [vmem:[%s1660_s1 + $0x1c] sm:$0xf]  ;;  %vm373_vm2 = vcmask 1046528  }
  0x10   : > { %s1300_s4 = scalar_lea.vmem %s1659_s0, %s1184_s26  ;;  %v1158_v12 = vld [vmem:[%s1660_s1 + $0x14] sm:$0xf]  ;;  %v1173_v13 = vld [vmem:[%s1660_s1 + $0x20] sm:$0xf]  ;;  %v731_v25 = vsel %vm280_vm0, %v1163_v10, 0  ;;  %v789_v28 = vsel %vm280_vm0, %v1168_v11, 0 }
  0x11   : > { %v1312_v14 = vld [vmem:[%s1300_s4 + $0xb0] sm:$0xff]  ;;  %v1315_v15 = vld [vmem:[%s1300_s4 + $0xc0] sm:$0xff]  ;;  %v673_v29 = vsel %vm280_vm0, %v1158_v12, 0  ;;  %v853_v30 = vsel %vm280_vm0, %v1173_v13, 0  ;;  %v229_v33 = vld [vmem:[%s1300_s4 + $0x8] sm:$0x1] }
  0x12   : > { %434 = vmatpush.bf16.msrb.mxu2 %v425_v4  ;;  %335 = vmatpush.bf16.msrb.mxu1 %v326_v7  ;;  %v1318_v16 = vld [vmem:[%s1300_s4 + $0xd0] sm:$0xff]  ;;  %v262_v17 = vpack.c.bf16 %v1315_v15, %v1312_v14  ;;  %v1323_v18 = vld [vmem:[%s1300_s4 + $0xe0] sm:$0xff]  ;;  %v231_v34 = vld [vmem:[%s1300_s4 + $0x18] sm:$0x1]  ;;  %v375_v37 = vrot.slane %v229_v33, 1  ;;  %s1180_s11 = sshll.u32 %s1668_s12, 6 }
  0x13   : > { %509 = vmatpush.bf16.msrb.mxu3 %v500_v5  ;;  %576 = vmatpush.bf16.msrb.mxu0 %v567_v9  ;;  %v1326_v19 = vld [vmem:[%s1300_s4 + $0xf0] sm:$0xff]  ;;  %v1329_v20 = vld [vmem:[%s1300_s4 + $0x100] sm:$0xff]  ;;  %v263_v21 = vpack.c.bf16 %v1323_v18, %v1318_v16  ;;  %v378_v38 = vrot.slane %v231_v34, 1  ;;  %v233_v51 = vld [vmem:[%s1300_s4 + $0x28] sm:$0x1]  ;;  %s1589_s18 = scalar_lea.vmem %s1661_s2, %s1180_s11  ;;  %s1100_s19 = sshll.u32 %s1668_s12, 3 }
  0x14   : > { %v264_v22 = vpack.c.bf16 %v1329_v20, %v1326_v19  ;;  %v1101_v23 = vld [vmem:[%s1300_s4 + $0x90] sm:$0xff]  ;;  %v1337_v24 = vld [vmem:[%s1300_s4 + $0xa0] sm:$0xff]  ;;  %1112 = vmatmul.msk.bf16.vlgmr.msra.gmra.mxu1 %vm267_vm1, %v262_v17  ;;  %v235_v52 = vld [vmem:[%s1300_s4 + $0x38] sm:$0x1]  ;;  %v381_v55 = vrot.slane %v233_v51, 1  ;;  %s226_s22 = scalar_lea.vmem %s1662_s3, %s1100_s19 }
  0x15   : > { %v261_v26 = vpack.c.bf16 %v1337_v24, %v1101_v23  ;;  %v770_v27 = vpack.c.bf16 %v1312_v14, %v1337_v24  ;;  %1113 = vmatmul.msk.bf16.vlgmr.msra.gmra.mxu2 %vm267_vm1, %v263_v21  ;;  %v228_v31 = vld [vmem:[%s1300_s4] sm:$0xff]  ;;  %v1352_v32 = vld [vmem:[%s1300_s4 + $0x10] sm:$0xff]  ;;  %v384_v56 = vrot.slane %v235_v52, 1  ;;  %v237_v5 = vld [vmem:[%s1300_s4 + $0x48] sm:$0x1]  ;;  %v771_v24 = vpack.c.bf16 %v1318_v16, %v1315_v15 }
  0x16   : > { %1114 = vmatmul.msk.bf16.vlgmr.msra.gmra.mxu3 %vm267_vm1, %v264_v22  ;;  %740 = vmatpush.bf16.msra.mxu2 %v731_v25  ;;  %v374_v35 = vrot.slane %v228_v31, 1  ;;  %v377_v36 = vrot.slane %v1352_v32, 1  ;;  %v1362_v41 = vld [vmem:[%s1300_s4 + $0x120] sm:$0xff]  ;;  %v1365_v42 = vld [vmem:[%s1300_s4 + $0x130] sm:$0xff]  ;;  %v246_v45 = vpack.c.bf16 %v1352_v32, %v228_v31  ;;  %v239_v6 = vld [vmem:[%s1300_s4 + $0x58] sm:$0x1] }
  0x17   : > { %1111 = vmatmul.msk.bf16.vlgmr.msra.gmra.mxu0 %vm267_vm1, %v261_v26  ;;  %798 = vmatpush.bf16.msra.mxu3 %v789_v28  ;;  %v1145_v43 = vld [vmem:[%s1300_s4 + $0x1b0] sm:$0xff]  ;;  %v1146_v44 = vld [vmem:[%s1300_s4 + $0x1c0] sm:$0xff]  ;;  %v481_v47 = vpack.c.bf16 %v1365_v42, %v1362_v41  ;;  %v387_v9 = vrot.slane %v237_v5, 1  ;;  %v390_v10 = vrot.slane %v239_v6, 1  ;;  %v241_v31 = vld [vmem:[%s1300_s4 + $0x68] sm:$0x1] }
  0x18   : > { %682 = vmatpush.bf16.msra.mxu1 %v673_v29  ;;  %862 = vmatpush.bf16.msra.mxu0 %v853_v30  ;;  %v376_v39 = vsel %vm373_vm2, %v374_v35, %v375_v37  ;;  %v1359_v40 = vsel %vm373_vm2, %v377_v36, %v378_v38  ;;  %v548_v48 = vpack.c.bf16 %v1146_v44, %v1145_v43  ;;  %v1378_v49 = vld [vmem:[%s1300_s4 + $0x20] sm:$0xff]  ;;  %v1381_v50 = vld [vmem:[%s1300_s4 + $0x30] sm:$0xff]  ;;  %v243_v33 = vld [vmem:[%s1300_s4 + $0x78] sm:$0x1]  ;;  %v393_v36 = vrot.slane %v241_v31, 1 }
  0x19   : > { %v406_v46 = vpack.c.bf16 %v1359_v40, %v376_v39  ;;  %v380_v53 = vrot.slane %v1378_v49, 1  ;;  %v383_v54 = vrot.slane %v1381_v50, 1  ;;  %v1394_v59 = vld [vmem:[%s1300_s4 + $0x140] sm:$0xff]  ;;  %v1397_v60 = vld [vmem:[%s1300_s4 + $0x150] sm:$0xff]  ;;  %v247_v63 = vpack.c.bf16 %v1381_v50, %v1378_v49 }
  0x1a   : > { %v1147_v61 = vld [vmem:[%s1300_s4 + $0x1d0] sm:$0xff]  ;;  %v1148_v62 = vld [vmem:[%s1300_s4 + $0x1e0] sm:$0xff]  ;;  %v482_v1 = vpack.c.bf16 %v1397_v60, %v1394_v59  ;;  %v396_v37 = vrot.slane %v243_v33, 1 }
  0x1b   : > { %v1388_v57 = vsel %vm373_vm2, %v380_v53, %v381_v55  ;;  %v1391_v58 = vsel %vm373_vm2, %v383_v54, %v384_v56  ;;  %v549_v2 = vpack.c.bf16 %v1148_v62, %v1147_v61  ;;  %v1412_v3 = vld [vmem:[%s1300_s4 + $0x40] sm:$0xff]  ;;  %v1415_v4 = vld [vmem:[%s1300_s4 + $0x50] sm:$0xff]  ;;  %v1125_v53 = vld [vmem:[%s1300_s4 + $0x128] sm:$0x1]  ;;  %v622_v55 = vrot.slane %v1362_v41, 1 }
  0x1c   : > { %v407_v0 = vpack.c.bf16 %v1391_v58, %v1388_v57  ;;  %v386_v7 = vrot.slane %v1412_v3, 1  ;;  %v389_v8 = vrot.slane %v1415_v4, 1  ;;  %v1428_v13 = vld [vmem:[%s1300_s4 + $0x160] sm:$0xff]  ;;  %v1431_v17 = vld [vmem:[%s1300_s4 + $0x170] sm:$0xff]  ;;  %v248_v23 = vpack.c.bf16 %v1415_v4, %v1412_v3  ;;  %v1127_v54 = vld [vmem:[%s1300_s4 + $0x138] sm:$0x1] }
  0x1d   : > { %v1149_v21 = vld [vmem:[%s1300_s4 + $0x1f0] sm:$0xff]  ;;  %v1150_v22 = vld [vmem:[%s1300_s4 + $0x200] sm:$0xff]  ;;  %v483_v26 = vpack.c.bf16 %v1431_v17, %v1428_v13  ;;  %v625_v56 = vrot.slane %v1365_v42, 1  ;;  %v623_v61 = vrot.slane %v1125_v53, 1  ;;  %v626_v62 = vrot.slane %v1127_v54, 1 }
  0x1e   : > { %v1422_v11 = vsel %vm373_vm2, %v386_v7, %v387_v9  ;;  %v1425_v12 = vsel %vm373_vm2, %v389_v8, %v390_v10  ;;  %v550_v28 = vpack.c.bf16 %v1150_v22, %v1149_v21  ;;  %v1446_v29 = vld [vmem:[%s1300_s4 + $0x60] sm:$0xff]  ;;  %v1449_v30 = vld [vmem:[%s1300_s4 + $0x70] sm:$0xff]  ;;  %v834_v5 = vpack.c.bf16 %v1388_v57, %v1359_v40  ;;  %v1129_v41 = vld [vmem:[%s1300_s4 + $0x148] sm:$0x1] }
  0x1f   : > { %v408_v25 = vpack.c.bf16 %v1425_v12, %v1422_v11  ;;  %v392_v34 = vrot.slane %v1446_v29, 1  ;;  %v395_v35 = vrot.slane %v1449_v30, 1  ;;  %v1460_v43 = vld [vmem:[%s1300_s4 + $0x180] sm:$0xff]  ;;  %v1463_v44 = vld [vmem:[%s1300_s4 + $0x190] sm:$0xff]  ;;  %v1131_v42 = vld [vmem:[%s1300_s4 + $0x158] sm:$0x1]  ;;  %v713_v14 = vpack.c.bf16 %v1412_v3, %v1381_v50 }
  0x20   : > { %v484_v51 = vpack.c.bf16 %v1463_v44, %v1460_v43  ;;  %v629_v40 = vrot.slane %v1129_v41, 1  ;;  %v632_v57 = vrot.slane %v1131_v42, 1  ;;  %v634_v50 = vrot.slane %v1428_v13, 1  ;;  %v1137_v13 = vld [vmem:[%s1300_s4 + $0x188] sm:$0x1]  ;;  %v1109_v33 = vld [vmem:[%s1300_s4 + $0x110] sm:$0xff] }
  0x21   : > { %v394_v38 = vsel %vm373_vm2, %v392_v34, %v393_v36  ;;  %v1457_v39 = vsel %vm373_vm2, %v395_v35, %v396_v37  ;;  %v637_v15 = vrot.slane %v1431_v17, 1  ;;  %v772_v21 = vpack.c.bf16 %v1326_v19, %v1323_v18  ;;  %v1139_v17 = vld [vmem:[%s1300_s4 + $0x198] sm:$0x1] }
  0x22   : > { %v836_v22 = vpack.c.bf16 %v394_v38, %v1425_v12  ;;  %v641_v18 = vrot.slane %v1137_v13, 1  ;;  %v644_v19 = vrot.slane %v1139_v17, 1 }
  0x24   : > { %1115 = vmatmul.msk.bf16.vlgmr.msrb.gmra.mxu1 %vm267_vm1, %v246_v45  ;;  %v1151_v45 = vld [vmem:[%s1300_s4 + $0x210] sm:$0xff] }
  0x25   : > { %1120 = vmatmul.msk.bf16.vlgmr.msrb.gmra.mxu2 %vm267_vm1, %v406_v46  ;;  %v1152_v46 = vld [vmem:[%s1300_s4 + $0x220] sm:$0xff] }
  0x26   : > { %1141 = vmatmul.msk.bf16.vlgmr.msrb.gmra.mxu3 %vm267_vm1, %v481_v47  ;;  %v249_v47 = vpack.c.bf16 %v1449_v30, %v1446_v29  ;;  %v551_v52 = vpack.c.bf16 %v1152_v46, %v1151_v45 }
  0x27   : > { %1154 = vmatmul.msk.bf16.vlgmr.msrb.gmra.mxu0 %vm267_vm1, %v548_v48  ;;  %v409_v48 = vpack.c.bf16 %v1457_v39, %v394_v38  ;;  %v773_v38 = vpack.c.bf16 %v1109_v33, %v1329_v20 }
  0x34   : > { %1116 = vmatmul.msk.bf16.gmra.mxu1 %vm267_vm1, %v247_v63  ;;  %v624_v63 = vsel %vm373_vm2, %v622_v55, %v623_v61 }
  0x35   : > { %1121 = vmatmul.msk.bf16.gmra.mxu2 %vm267_vm1, %v407_v0  ;;  %v627_v0 = vsel %vm373_vm2, %v625_v56, %v626_v62 }
  0x36   : > { %1142 = vmatmul.msk.bf16.gmra.mxu3 %vm267_vm1, %v482_v1  ;;  %v654_v1 = vpack.c.bf16 %v627_v0, %v624_v63 }
  0x37   : > { %1155 = vmatmul.msk.bf16.gmra.mxu0 %vm267_vm1, %v549_v2  ;;  %v712_v2 = vpack.c.bf16 %v1378_v49, %v1352_v32  ;;  %v628_v32 = vrot.slane %v1394_v59, 1  ;;  %v631_v49 = vrot.slane %v1397_v60, 1  ;;  %v1133_v59 = vld [vmem:[%s1300_s4 + $0x168] sm:$0x1]  ;;  %v1135_v60 = vld [vmem:[%s1300_s4 + $0x178] sm:$0x1] }
  0x38   : > { %v635_v16 = vrot.slane %v1133_v59, 1 }
  0x39   : > { %v630_v6 = vsel %vm373_vm2, %v628_v32, %v629_v40  ;;  %v633_v7 = vsel %vm373_vm2, %v631_v49, %v632_v57 }
  0x3a   : > { %v655_v8 = vpack.c.bf16 %v633_v7, %v630_v6  ;;  %v636_v3 = vsel %vm373_vm2, %v634_v50, %v635_v16 }
  0x44   : > { %1117 = vmatmul.msk.bf16.gmra.mxu1 %vm267_vm1, %v248_v23  ;;  %v244_v23 = vld [vmem:[%s1300_s4 + $0x80] sm:$0xff] }
  0x45   : > { %1122 = vmatmul.msk.bf16.gmra.mxu2 %vm267_vm1, %v408_v25  ;;  %v245_v25 = vld [vmem:[%s1300_s4 + $0x88] sm:$0x1]  ;;  %v830_v12 = vrot.slane %v244_v23, 1  ;;  %v715_v37 = vpack.c.bf16 %v244_v23, %v1449_v30 }
  0x46   : > { %1143 = vmatmul.msk.bf16.gmra.mxu3 %vm267_vm1, %v483_v26  ;;  %v643_v26 = vrot.slane %v1463_v44, 1 }
  0x47   : > { %1156 = vmatmul.msk.bf16.gmra.mxu0 %vm267_vm1, %v550_v28  ;;  %v831_v28 = vrot.slane %v245_v25, 1 }
  0x48   : > { %v645_v31 = vsel %vm373_vm2, %v643_v26, %v644_v19 }
  0x49   : > { %v832_v34 = vsel %vm373_vm2, %v830_v12, %v831_v28 }
  0x54   : > { %1118 = vmatmul.msk.bf16.gmra.mxu1 %vm267_vm1, %v249_v47 }
  0x55   : > { %1123 = vmatmul.msk.bf16.gmra.mxu2 %vm267_vm1, %v409_v48 }
  0x56   : > { %1144 = vmatmul.msk.bf16.gmra.mxu3 %vm267_vm1, %v484_v51 }
  0x57   : > { %1157 = vmatmul.msk.bf16.gmra.mxu0 %vm267_vm1, %v551_v52 }
  0x64   : > { %1159 = vmatmul.msk.bf16.vlgmr.msra.gmra.mxu1 %vm267_vm1, %v654_v1 }
  0x65   : > { %1164 = vmatmul.msk.bf16.vlgmr.msra.gmra.mxu2 %vm267_vm1, %v712_v2 }
  0x66   : > { %1169 = vmatmul.msk.bf16.vlgmr.msra.gmra.mxu3 %vm267_vm1, %v770_v27  ;;  %v835_v27 = vpack.c.bf16 %v1422_v11, %v1391_v58  ;;  %v638_v58 = vrot.slane %v1135_v60, 1  ;;  %v714_v11 = vpack.c.bf16 %v1446_v29, %v1415_v4  ;;  %v640_v4 = vrot.slane %v1460_v43, 1 }
  0x67   : > { %1174 = vmatmul.msk.bf16.vlgmr.msra.gmra.mxu0 %vm267_vm1, %v834_v5  ;;  %v837_v43 = vpack.c.bf16 %v832_v34, %v1457_v39 }
  0x68   : > { %v639_v9 = vsel %vm373_vm2, %v637_v15, %v638_v58  ;;  %v642_v29 = vsel %vm373_vm2, %v640_v4, %v641_v18 }
  0x69   : > { %v656_v10 = vpack.c.bf16 %v639_v9, %v636_v3  ;;  %v657_v35 = vpack.c.bf16 %v645_v31, %v642_v29 }
  0x74   : > { %1160 = vmatmul.msk.bf16.gmra.mxu1 %vm267_vm1, %v655_v8 }
  0x75   : > { %1165 = vmatmul.msk.bf16.gmra.mxu2 %vm267_vm1, %v713_v14 }
  0x76   : > { %1170 = vmatmul.msk.bf16.gmra.mxu3 %vm267_vm1, %v771_v24 }
  0x77   : > { %1175 = vmatmul.msk.bf16.gmra.mxu0 %vm267_vm1, %v835_v27 }
  0x84   : > { %1161 = vmatmul.msk.bf16.gmra.mxu1 %vm267_vm1, %v656_v10 }
  0x85   : > { %1166 = vmatmul.msk.bf16.gmra.mxu2 %vm267_vm1, %v714_v11 }
  0x86   : > { %1171 = vmatmul.msk.bf16.gmra.mxu3 %vm267_vm1, %v772_v21 }
  0x87   : > { %1176 = vmatmul.msk.bf16.gmra.mxu0 %vm267_vm1, %v836_v22 }
  0x91   : > { %v298_v36 = vpop.f32.mrf.mxu1 }
  0x94   : > { %v293_v44 = vpop.f32.mrf.mxu0  ;;  %1162 = vmatmul.msk.bf16.gmra.mxu1 %vm267_vm1, %v657_v35 }
  0x95   : > { %1167 = vmatmul.msk.bf16.gmra.mxu2 %vm267_vm1, %v715_v37 }
  0x96   : > { %1172 = vmatmul.msk.bf16.gmra.mxu3 %vm267_vm1, %v773_v38 }
  0x97   : > { %1177 = vmatmul.msk.bf16.gmra.mxu0 %vm267_vm1, %v837_v43 }
  0x98   : > { %v1541_v45 = vpop.f32.mrf.mxu2 }
  0x99   : > { %v1543_v46 = vpop.f32.mrf.mxu3  ;;  %v1545_v47 = vpop.f32.mrf.mxu1 }
  0x9c   : > { %v295_v30 = vpop.f32.mrf.mxu0 }
  0xa0   : > { %v1547_v48 = vpop.f32.mrf.mxu2 }
  0xa1   : > { %v1549_v20 = vpop.f32.mrf.mxu3  ;;  %v337_v39 = vpop.f32.mrf.mxu1 }
  0xa2   : > { %v338_v15 = vadd.f32 %v337_v39, %v293_v44 }
  0xa4   : > { %v578_v51 = vpop.f32.mrf.mxu0 }
  0xa8   : > { %v436_v52 = vpop.f32.mrf.mxu2 }
  0xa9   : > { %v511_v53 = vpop.f32.mrf.mxu3  ;;  %v339_v54 = vpop.f32.mrf.mxu1  ;;  %v456_v58 = vadd.f32 %v436_v52, %v338_v15 }
  0xaa   : > { %v340_v21 = vadd.f32 %v339_v54, %v295_v30 }
  0xab   : > { %v531_v10 = vadd.f32 %v511_v53, %v456_v58 }
  0xac   : > { %v580_v55 = vpop.f32.mrf.mxu0 }
  0xad   : > { %v598_v17 = vadd.f32 %v578_v51, %v531_v10 }
  0xb0   : > { %v438_v56 = vpop.f32.mrf.mxu2 }
  0xb1   : > { %v513_v61 = vpop.f32.mrf.mxu3  ;;  %v342_v62 = vpop.f32.mrf.mxu1  ;;  %v457_v13 = vadd.f32 %v438_v56, %v340_v21 }
  0xb2   : > { %v343_v12 = vadd.f32 %v342_v62, %v298_v36 }
  0xb3   : > { %v532_v26 = vadd.f32 %v513_v61, %v457_v13 }
  0xb4   : > { %v583_v63 = vpop.f32.mrf.mxu0 }
  0xb5   : > { %v599_v34 = vadd.f32 %v580_v55, %v532_v26 }
  0xb8   : > { %v441_v0 = vpop.f32.mrf.mxu2 }
  0xb9   : > { %v516_v1 = vpop.f32.mrf.mxu3  ;;  %v344_v2 = vpop.f32.mrf.mxu1  ;;  %v458_v31 = vadd.f32 %v441_v0, %v343_v12 }
  0xba   : > { %v345_v30 = vadd.f32 %v344_v2, %v1545_v47 }
  0xbb   : > { %v533_v43 = vadd.f32 %v516_v1, %v458_v31 }
  0xbc   : > { %v1551_v5 = vpop.f32.mrf.mxu0 }
  0xbd   : > { %v600_v56 = vadd.f32 %v583_v63, %v533_v43 }
  0xc0   : > { %v443_v41 = vpop.f32.mrf.mxu2 }
  0xc1   : > { %v518_v42 = vpop.f32.mrf.mxu3  ;;  %v1553_v32 = vpop.f32.mrf.mxu1  ;;  %v459_v52 = vadd.f32 %v443_v41, %v345_v30 }
  0xc2   : > { %v348_v21 = vadd.f32 %v1553_v32, %v1541_v45 }
  0xc3   : > { %v534_v10 = vadd.f32 %v518_v42, %v459_v52 }
  0xc4   : > { %v1555_v49 = vpop.f32.mrf.mxu0 }
  0xc8   : > { %v1557_v40 = vpop.f32.mrf.mxu2 }
  0xc9   : > { %v1559_v57 = vpop.f32.mrf.mxu3  ;;  %v1561_v6 = vpop.f32.mrf.mxu1 }
  0xcc   : > { %v1563_v7 = vpop.f32.mrf.mxu0 }
  0xd0   : > { %v1565_v8 = vpop.f32.mrf.mxu2 }
  0xd1   : > { %v1567_v14 = vpop.f32.mrf.mxu3  ;;  %v1569_v24 = vpop.f32.mrf.mxu1 }
  0xd4   : > { %v1571_v27 = vpop.f32.mrf.mxu0 }
  0xd8   : > { %v1573_v59 = vpop.f32.mrf.mxu2 }
  0xd9   : > { %v1575_v60 = vpop.f32.mrf.mxu3  ;;  %v1577_v50 = vpop.f32.mrf.mxu1 }
  0xdc   : > { %v1579_v16 = vpop.f32.mrf.mxu0 }
  0xe0   : > { %v1581_v3 = vpop.f32.mrf.mxu2 }
  0xe1   : > { %v1583_v9 = vpop.f32.mrf.mxu3  ;;  %v684_v11 = vpop.f32.mrf.mxu1 }
  0xe2   : > { %v704_v23 = vadd.f32 %v684_v11, %v598_v17  ;;  %v460_v17 = vadd.f32 %v1557_v40, %v348_v21 }
  0xe4   : > { %v864_v22 = vpop.f32.mrf.mxu0 }
  0xe8   : > { %v742_v25 = vpop.f32.mrf.mxu2 }
  0xe9   : > { %v800_v4 = vpop.f32.mrf.mxu3  ;;  %v762_v18 = vadd.f32 %v742_v25, %v704_v23  ;;  %v686_v19 = vpop.f32.mrf.mxu1  ;;  %v601_v25 = vadd.f32 %v1551_v5, %v534_v10  ;;  %v350_v5 = vadd.f32 %v1561_v6, %v1547_v48 }
  0xea   : > { %v705_v35 = vadd.f32 %v686_v19, %v599_v34 }
  0xeb   : > { %v820_v28 = vadd.f32 %v800_v4, %v762_v18 }
  0xec   : > { %v866_v29 = vpop.f32.mrf.mxu0 }
  0xed   : > { %v884_v33 = vadd.f32 %v864_v22, %v820_v28  ;;  %v535_v28 = vadd.f32 %v1559_v57, %v460_v17 }
  0xef   : > { %892 = vst.msk [vmem:[%s1589_s18] sm:$0xff] %vm267_vm1, %v884_v33  ;;  %v921_v53 = vmul.f32 %v884_v33, %v884_v33  ;;  %v900_v61 = vsel %vm267_vm1, %v884_v33, 0.0  ;;  %v461_v33 = vadd.f32 %v1565_v8, %v350_v5 }
  0xf0   : > { %v744_v37 = vpop.f32.mrf.mxu2 }
  0xf1   : > { %v802_v38 = vpop.f32.mrf.mxu3  ;;  %v763_v44 = vadd.f32 %v744_v37, %v705_v35  ;;  %v689_v36 = vpop.f32.mrf.mxu1  ;;  %v929_v47 = vsel %vm267_vm1, %v921_v53, 0.0  ;;  %v602_v35 = vadd.f32 %v1555_v49, %v535_v28  ;;  %v353_v49 = vadd.f32 %v1569_v24, %v1543_v46 }
  0xf2   : > { %v706_v0 = vadd.f32 %v689_v36, %v600_v56 }
  0xf3   : > { %v821_v39 = vadd.f32 %v802_v38, %v763_v44  ;;  %v462_v53 = vadd.f32 %v1573_v59, %v353_v49 }
  0xf4   : > { %v869_v51 = vpop.f32.mrf.mxu0 }
  0xf5   : > { %v885_v54 = vadd.f32 %v866_v29, %v821_v39  ;;  %v536_v39 = vadd.f32 %v1567_v14, %v461_v33 }
  0xf7   : > { %893 = vst.msk [vmem:[%s1589_s18 + $0x8] sm:$0xff] %vm267_vm1, %v885_v54  ;;  %v901_v55 = vsel %vm267_vm1, %v885_v54, 0.0  ;;  %v922_v62 = vmul.f32 %v885_v54, %v885_v54  ;;  %v603_v56 = vadd.f32 %v1563_v7, %v536_v39  ;;  %v355_v7 = vadd.f32 %v1577_v50, %v1549_v20 }
  0xf8   : > { %v902_v1 = vadd.f32 %v901_v55, %v900_v61  ;;  %v747_v15 = vpop.f32.mrf.mxu2 }
  0xf9   : > { %v805_v58 = vpop.f32.mrf.mxu3  ;;  %v930_v2 = vsel %vm267_vm1, %v922_v62, 0.0  ;;  %v764_v41 = vadd.f32 %v747_v15, %v706_v0  ;;  %v691_v11 = vpop.f32.mrf.mxu1 }
  0xfa   : > { %v931_v63 = vadd.f32 %v930_v2, %v929_v47  ;;  %v707_v26 = vadd.f32 %v691_v11, %v601_v25  ;;  %v463_v2 = vadd.f32 %v1581_v3, %v355_v7 }
  0xfb   : > { %v822_v22 = vadd.f32 %v805_v58, %v764_v41  ;;  %v537_v58 = vadd.f32 %v1575_v60, %v462_v53 }
  0xfc   : > { %v871_v13 = vpop.f32.mrf.mxu0 }
  0xfd   : > { %v886_v23 = vadd.f32 %v869_v51, %v822_v22  ;;  %v604_v11 = vadd.f32 %v1571_v27, %v537_v58 }
  0xff   : > { %894 = vst.msk [vmem:[%s1589_s18 + $0x10] sm:$0xff] %vm267_vm1, %v886_v23  ;;  %v903_v42 = vsel %vm267_vm1, %v886_v23, 0.0  ;;  %v923_v4 = vmul.f32 %v886_v23, %v886_v23  ;;  %v538_v23 = vadd.f32 %v1583_v9, %v463_v2 }
 0x100   : > { %v904_v18 = vadd.f32 %v903_v42, %v902_v1  ;;  %v749_v19 = vpop.f32.mrf.mxu2 }
 0x101   : > { %v807_v12 = vpop.f32.mrf.mxu3  ;;  %v932_v45 = vsel %vm267_vm1, %v923_v4, 0.0  ;;  %v765_v32 = vadd.f32 %v749_v19, %v707_v26  ;;  %v694_v29 = vpop.f32.mrf.mxu1  ;;  %v605_v26 = vadd.f32 %v1579_v16, %v538_v23 }
 0x102   : > { %v933_v40 = vadd.f32 %v932_v45, %v931_v63  ;;  %v708_v43 = vadd.f32 %v694_v29, %v602_v35 }
 0x103   : > { %v823_v31 = vadd.f32 %v807_v12, %v765_v32 }
 0x104   : > { %v874_v37 = vpop.f32.mrf.mxu0 }
 0x105   : > { %v887_v34 = vadd.f32 %v871_v13, %v823_v31 }
 0x107   : > { %895 = vst.msk [vmem:[%s1589_s18 + $0x18] sm:$0xff] %vm267_vm1, %v887_v34  ;;  %v905_v38 = vsel %vm267_vm1, %v887_v34, 0.0  ;;  %v924_v57 = vmul.f32 %v887_v34, %v887_v34 }
 0x108   : > { %v906_v44 = vadd.f32 %v905_v38, %v904_v18  ;;  %v752_v36 = vpop.f32.mrf.mxu2 }
 0x109   : > { %v810_v30 = vpop.f32.mrf.mxu3  ;;  %v934_v48 = vsel %vm267_vm1, %v924_v57, 0.0  ;;  %v766_v6 = vadd.f32 %v752_v36, %v708_v43  ;;  %v696_v8 = vpop.f32.mrf.mxu1  ;;  %v950_v36 = vlaneseq }
 0x10a   : > { %v935_v51 = vadd.f32 %v934_v48, %v933_v40  ;;  %v709_v14 = vadd.f32 %v696_v8, %v603_v56 }
 0x10b   : > { %v824_v52 = vadd.f32 %v810_v30, %v766_v6  ;;  %v951_v8 = vshrl.u32 %v950_v36, 7 }
 0x10c   : > { %v876_v62 = vpop.f32.mrf.mxu0 }
 0x10d   : > { %v888_v54 = vadd.f32 %v874_v37, %v824_v52  ;;  %vm953_vm3 = vcmp.eq.s32.totalorder %v951_v8, 1  ;;  %vm952_vm4 = vcmp.eq.s32.totalorder %v951_v8, 0 }
 0x10f   : > { %896 = vst.msk [vmem:[%s1589_s18 + $0x20] sm:$0xff] %vm267_vm1, %v888_v54  ;;  %v907_v61 = vsel %vm267_vm1, %v888_v54, 0.0  ;;  %v925_v55 = vmul.f32 %v888_v54, %v888_v54 }
 0x110   : > { %v908_v0 = vadd.f32 %v907_v61, %v906_v44  ;;  %v754_v1 = vpop.f32.mrf.mxu2 }
 0x111   : > { %v812_v15 = vpop.f32.mrf.mxu3  ;;  %v936_v46 = vsel %vm267_vm1, %v925_v55, 0.0  ;;  %v767_v24 = vadd.f32 %v754_v1, %v709_v14  ;;  %v699_v10 = vpop.f32.mrf.mxu1 }
 0x112   : > { %v937_v59 = vadd.f32 %v936_v46, %v935_v51  ;;  %v710_v21 = vadd.f32 %v699_v10, %v604_v11 }
 0x113   : > { %v825_v47 = vadd.f32 %v812_v15, %v767_v24 }
 0x114   : > { %v879_v3 = vpop.f32.mrf.mxu0 }
 0x115   : > { %v889_v41 = vadd.f32 %v876_v62, %v825_v47 }
 0x117   : > { %897 = vst.msk [vmem:[%s1589_s18 + $0x28] sm:$0xff] %vm267_vm1, %v889_v41  ;;  %v909_v63 = vsel %vm267_vm1, %v889_v41, 0.0  ;;  %v926_v60 = vmul.f32 %v889_v41, %v889_v41 }
 0x118   : > { %v910_v22 = vadd.f32 %v909_v63, %v908_v0  ;;  %v757_v13 = vpop.f32.mrf.mxu2 }
 0x119   : > { %v815_v17 = vpop.f32.mrf.mxu3  ;;  %v938_v20 = vsel %vm267_vm1, %v926_v60, 0.0  ;;  %v768_v50 = vadd.f32 %v757_v13, %v710_v21  ;;  %v701_v4 = vpop.f32.mrf.mxu1 }
 0x11a   : > { %v939_v25 = vadd.f32 %v938_v20, %v937_v59  ;;  %v711_v12 = vadd.f32 %v701_v4, %v605_v26 }
 0x11b   : > { %v826_v42 = vadd.f32 %v815_v17, %v768_v50 }
 0x11c   : > { %v881_v31 = vpop.f32.mrf.mxu0 }
 0x11d   : > { %v890_v27 = vadd.f32 %v879_v3, %v826_v42 }
 0x11f   : > { %898 = vst.msk [vmem:[%s1589_s18 + $0x30] sm:$0xff] %vm267_vm1, %v890_v27  ;;  %v911_v18 = vsel %vm267_vm1, %v890_v27, 0.0  ;;  %v927_v19 = vmul.f32 %v890_v27, %v890_v27 }
 0x120   : > { %v912_v28 = vadd.f32 %v911_v18, %v910_v22  ;;  %v759_v45 = vpop.f32.mrf.mxu2 }
 0x121   : > { %v940_v9 = vsel %vm267_vm1, %v927_v19, 0.0  ;;  %v769_v32 = vadd.f32 %v759_v45, %v711_v12  ;;  %v817_v40 = vpop.f32.mrf.mxu3 }
 0x122   : > { %v941_v29 = vadd.f32 %v940_v9, %v939_v25 }
 0x123   : > { %v827_v5 = vadd.f32 %v817_v40, %v769_v32 }
 0x125   : > { %v891_v33 = vadd.f32 %v881_v31, %v827_v5 }
 0x127   : > { %899 = vst.msk [vmem:[%s1589_s18 + $0x38] sm:$0xff] %vm267_vm1, %v891_v33  ;;  %v913_v16 = vsel %vm267_vm1, %v891_v33, 0.0  ;;  %v928_v34 = vmul.f32 %v891_v33, %v891_v33 }
 0x128   : > { %v914_v35 = vadd.f32 %v913_v16, %v912_v28 }
 0x129   : > { %v942_v37 = vsel %vm267_vm1, %v928_v34, 0.0 }
 0x12a   : > { %v915_v38 = vrot.slane %v914_v35, 4  ;;  %v943_v57 = vadd.f32 %v942_v37, %v941_v29 }
 0x12c   : > { %v916_v43 = vadd.f32 %v915_v38, %v914_v35  ;;  %v944_v44 = vrot.slane %v943_v57, 4 }
 0x12e   : > { %v917_v30 = vrot.slane %v916_v43, 2  ;;  %v945_v39 = vadd.f32 %v944_v44, %v943_v57 }
 0x130   : > { %v918_v48 = vadd.f32 %v917_v30, %v916_v43  ;;  %v946_v6 = vrot.slane %v945_v39, 2 }
 0x132   : > { %v947_v51 = vadd.f32 %v946_v6, %v945_v39  ;;  %v919_v49 = vrot.slane %v918_v48, 1 }
 0x134   : > { %v948_v52 = vrot.slane %v947_v51, 1  ;;  %v920_v54 = vadd.f32 %v919_v49, %v918_v48 }
 0x136   : > { %v949_v53 = vadd.f32 %v948_v52, %v947_v51 }
 0x138   : > { %v954_v56 = vsel %vm953_vm3, %v949_v53, 0.0 }
 0x139   : > { %v955_v61 = vsel %vm952_vm4, %v920_v54, %v954_v56 }
 0x13a   : > { %956 = vst.msk [vmem:[%s226_s22] sm:$0xff] %vm267_vm1, %v955_v61 }
 0x13b PF: > { %s14_s14 = sadd.s32 1, %s1231_s14   ;;  %s1663_s12 = smov %s1227_s13 }
 0x13c   : > { %p11_p5 = scmp.ge.s32.totalorder %s14_s14, 4   ;;  %s1664_s13 = smov %s1666_s15 }
 0x13e   :  { %13 = sbr.rel (!%p11_p5) target bundleno = 2 (0x2), region = 84 }

// kernel: bottleneck_forward.6
= control target key start
LH: loop header
LB: loop body
LE: loop exit
PB: predicated region body
PF: predicated region fallthrough
CT: control target
= control target key end

     0   :  { %vm101_vm0 = vcmask 1041408   ;;  %vm18_vm1 = vcmask 261120   ;;  %v339_v3 = vmov 0.0   ;;  %vm76_vm2 = vcmask 31744   ;;  %s593_s1 = inlined_call_operand.vmem [shape: bf16[4,32], index: 1, kind: input, shape index: {}]   ;;  %s594_s0 = inlined_call_operand.vmem [shape: f32[128,4], index: 0, kind: input, shape index: {}]   ;;  %s595_s2 = inlined_call_operand.vmem [shape: f32[128,32], index: 2, kind: output, shape index: {0}]   ;;  %s596_s3 = inlined_call_operand.vmem [shape: f32[1,8,32], index: 3, kind: output, shape index: {1}]  }
   0x1   :  { %v75_v0 = vld [vmem:[%s593_s1] sm:$0x3]  ;;  %v36_v2 = vld [vmem:[%s594_s0 + $0x8] sm:$0xff]  ;;  %19 = vst.msk [vmem:[#allocation2] sm:$0xff] %vm18_vm1, %v339_v3  ;;  %v37_v15 = vld [vmem:[%s594_s0 + $0x10] sm:$0xff] }
   0x2   :  { %v35_v1 = vld [vmem:[%s594_s0] sm:$0xff]  ;;  %v103_v4 = vsel %vm101_vm0, %v75_v0, 0  ;;  %v40_v7 = vld [vmem:[%s594_s0 + $0x28] sm:$0xff]  ;;  %20 = vst.msk [vmem:[#allocation2 + $0x8] sm:$0xff] %vm18_vm1, %v339_v3  ;;  %v38_v16 = vld [vmem:[%s594_s0 + $0x18] sm:$0xff] }
   0x3   :  { %v67_v5 = vpack.c.bf16 %v36_v2, %v35_v1  ;;  %v39_v6 = vld [vmem:[%s594_s0 + $0x20] sm:$0xff]  ;;  %112 = vmatpush.bf16.msra.mxu0 %v103_v4  ;;  %335 = vmatpush.bf16.msra.mxu1 %v103_v4  ;;  %v44_v10 = vld [vmem:[%s594_s0 + $0x48] sm:$0xff]  ;;  %21 = vst.msk [vmem:[#allocation2 + $0x10] sm:$0xff] %vm18_vm1, %v339_v3  ;;  %v41_v17 = vld [vmem:[%s594_s0 + $0x30] sm:$0xff]  ;;  %v68_v23 = vpack.c.bf16 %v38_v16, %v37_v15 }
   0x4   :  { %v43_v8 = vld [vmem:[%s594_s0 + $0x40] sm:$0xff]  ;;  %v69_v9 = vpack.c.bf16 %v40_v7, %v39_v6  ;;  %v48_v12 = vld [vmem:[%s594_s0 + $0x68] sm:$0xff]  ;;  %336 = vmatpush.bf16.msra.mxu2 %v103_v4  ;;  %337 = vmatpush.bf16.msra.mxu3 %v103_v4  ;;  %22 = vst.msk [vmem:[#allocation2 + $0x18] sm:$0xff] %vm18_vm1, %v339_v3  ;;  %v42_v18 = vld [vmem:[%s594_s0 + $0x38] sm:$0xff] }
   0x5   :  { %v47_v11 = vld [vmem:[%s594_s0 + $0x60] sm:$0xff]  ;;  %v71_v13 = vpack.c.bf16 %v44_v10, %v43_v8  ;;  %23 = vst.msk [vmem:[#allocation2 + $0x20] sm:$0xff] %vm18_vm1, %v339_v3  ;;  %v45_v19 = vld [vmem:[%s594_s0 + $0x50] sm:$0xff]  ;;  %v46_v20 = vld [vmem:[%s594_s0 + $0x58] sm:$0xff]  ;;  %v70_v24 = vpack.c.bf16 %v42_v18, %v41_v17 }
   0x6   :  { %v73_v14 = vpack.c.bf16 %v48_v12, %v47_v11  ;;  %327 = vmatmul.msk.bf16.vlgmr.msra.gmra.mxu0 %vm76_vm2, %v67_v5  ;;  %329 = vmatmul.msk.bf16.vlgmr.msra.gmra.mxu1 %vm76_vm2, %v69_v9  ;;  %24 = vst.msk [vmem:[#allocation2 + $0x28] sm:$0xff] %vm18_vm1, %v339_v3  ;;  %v49_v21 = vld [vmem:[%s594_s0 + $0x70] sm:$0xff]  ;;  %v50_v22 = vld [vmem:[%s594_s0 + $0x78] sm:$0xff]  ;;  %v72_v25 = vpack.c.bf16 %v46_v20, %v45_v19 }
   0x7   :  { %331 = vmatmul.msk.bf16.vlgmr.msra.gmra.mxu2 %vm76_vm2, %v71_v13  ;;  %25 = vst.msk [vmem:[#allocation2 + $0x30] sm:$0xff] %vm18_vm1, %v339_v3  ;;  %v74_v26 = vpack.c.bf16 %v50_v22, %v49_v21 }
   0x8   :  { %333 = vmatmul.msk.bf16.vlgmr.msra.gmra.mxu3 %vm76_vm2, %v73_v14  ;;  %26 = vst.msk [vmem:[#allocation2 + $0x38] sm:$0xff] %vm18_vm1, %v339_v3  ;;  %v51_v27 = vld [vmem:[#allocation2] sm:$0xff] }
   0x9   :  { %27 = vst.msk [vmem:[#allocation2 + $0x40] sm:$0xff] %vm18_vm1, %v339_v3  ;;  %v52_v34 = vld [vmem:[#allocation2 + $0x8] sm:$0xff] }
   0xa   :  { %28 = vst.msk [vmem:[#allocation2 + $0x48] sm:$0xff] %vm18_vm1, %v339_v3  ;;  %v53_v47 = vld [vmem:[#allocation2 + $0x10] sm:$0xff] }
   0xb   :  { %29 = vst.msk [vmem:[#allocation2 + $0x50] sm:$0xff] %vm18_vm1, %v339_v3  ;;  %v54_v0 = vld [vmem:[#allocation2 + $0x18] sm:$0xff] }
   0xc   :  { %30 = vst.msk [vmem:[#allocation2 + $0x58] sm:$0xff] %vm18_vm1, %v339_v3  ;;  %v55_v28 = vld [vmem:[#allocation2 + $0x20] sm:$0xff] }
   0xd   :  { %31 = vst.msk [vmem:[#allocation2 + $0x60] sm:$0xff] %vm18_vm1, %v339_v3  ;;  %v56_v35 = vld [vmem:[#allocation2 + $0x28] sm:$0xff] }
   0xe   :  { %32 = vst.msk [vmem:[#allocation2 + $0x68] sm:$0xff] %vm18_vm1, %v339_v3  ;;  %v57_v48 = vld [vmem:[#allocation2 + $0x30] sm:$0xff] }
   0xf   :  { %33 = vst.msk [vmem:[#allocation2 + $0x70] sm:$0xff] %vm18_vm1, %v339_v3  ;;  %v58_v1 = vld [vmem:[#allocation2 + $0x38] sm:$0xff] }
  0x10   :  { %34 = vst.msk [vmem:[#allocation2 + $0x78] sm:$0xff] %vm18_vm1, %v339_v3  ;;  %v59_v33 = vld [vmem:[#allocation2 + $0x40] sm:$0xff] }
  0x11   :  { %v60_v53 = vld [vmem:[#allocation2 + $0x48] sm:$0xff] }
  0x12   :  { %v61_v61 = vld [vmem:[#allocation2 + $0x50] sm:$0xff] }
  0x13   :  { %v62_v14 = vld [vmem:[#allocation2 + $0x58] sm:$0xff] }
  0x14   :  { %v63_v41 = vld [vmem:[#allocation2 + $0x60] sm:$0xff] }
  0x15   :  { %v64_v57 = vld [vmem:[#allocation2 + $0x68] sm:$0xff] }
  0x16   :  { %328 = vmatmul.msk.bf16.gmra.mxu0 %vm76_vm2, %v68_v23  ;;  %330 = vmatmul.msk.bf16.gmra.mxu1 %vm76_vm2, %v70_v24  ;;  %v65_v8 = vld [vmem:[#allocation2 + $0x70] sm:$0xff] }
  0x17   :  { %332 = vmatmul.msk.bf16.gmra.mxu2 %vm76_vm2, %v72_v25  ;;  %v66_v15 = vld [vmem:[#allocation2 + $0x78] sm:$0xff] }
  0x18   :  { %334 = vmatmul.msk.bf16.gmra.mxu3 %vm76_vm2, %v74_v26 }
  0x83   :  { %v114_v29 = vpop.f32.mrf.mxu0  ;;  %v124_v30 = vpop.f32.mrf.mxu1 }
  0x84   :  { %v154_v31 = vadd.f32 %v114_v29, %v51_v27  ;;  %v158_v32 = vadd.f32 %v124_v30, %v55_v28 }
  0x86   :  { %171 = vst.msk [vmem:[#allocation2] sm:$0xff] %vm18_vm1, %v154_v31 }
  0x87   :  { %175 = vst.msk [vmem:[#allocation2 + $0x20] sm:$0xff] %vm18_vm1, %v158_v32 }
  0x8a   :  { %v134_v36 = vpop.f32.mrf.mxu2 }
  0x8b   :  { %v144_v37 = vpop.f32.mrf.mxu3  ;;  %v116_v38 = vpop.f32.mrf.mxu0  ;;  %v162_v40 = vadd.f32 %v134_v36, %v59_v33 }
  0x8c   :  { %v126_v39 = vpop.f32.mrf.mxu1  ;;  %v155_v42 = vadd.f32 %v116_v38, %v52_v34  ;;  %v166_v46 = vadd.f32 %v144_v37, %v63_v41 }
  0x8d   :  { %v437_v43 = vld [vmem:[#allocation2] sm:$0xff]  ;;  %v159_v44 = vadd.f32 %v126_v39, %v56_v35  ;;  %179 = vst.msk [vmem:[#allocation2 + $0x40] sm:$0xff] %vm18_vm1, %v162_v40 }
  0x8e   :  { %206 = vst.msk [vmem:[%s595_s2] sm:$0xff] %vm18_vm1, %v437_v43  ;;  %v445_v45 = vld [vmem:[#allocation2 + $0x20] sm:$0xff]  ;;  %v259_v17 = vmul.f32 %v437_v43, %v437_v43  ;;  %v222_v25 = vsel %vm18_vm1, %v437_v43, 0.0 }
  0x8f   :  { %210 = vst.msk [vmem:[%s595_s2 + $0x20] sm:$0xff] %vm18_vm1, %v445_v45  ;;  %v263_v35 = vmul.f32 %v445_v45, %v445_v45  ;;  %v229_v41 = vsel %vm18_vm1, %v445_v45, 0.0 }
  0x90   :  { %172 = vst.msk [vmem:[#allocation2 + $0x8] sm:$0xff] %vm18_vm1, %v155_v42  ;;  %v275_v30 = vsel %vm18_vm1, %v259_v17, 0.0 }
  0x91   :  { %176 = vst.msk [vmem:[#allocation2 + $0x28] sm:$0xff] %vm18_vm1, %v159_v44 }
  0x92   :  { %v136_v49 = vpop.f32.mrf.mxu2  ;;  %183 = vst.msk [vmem:[#allocation2 + $0x60] sm:$0xff] %vm18_vm1, %v166_v46 }
  0x93   :  { %v146_v50 = vpop.f32.mrf.mxu3  ;;  %v119_v51 = vpop.f32.mrf.mxu0  ;;  %v163_v58 = vadd.f32 %v136_v49, %v60_v53 }
  0x94   :  { %v129_v52 = vpop.f32.mrf.mxu1  ;;  %v455_v54 = vld [vmem:[#allocation2 + $0x40] sm:$0xff]  ;;  %v156_v55 = vadd.f32 %v119_v51, %v53_v47  ;;  %v167_v62 = vadd.f32 %v146_v50, %v64_v57 }
  0x95   :  { %v160_v56 = vadd.f32 %v129_v52, %v57_v48  ;;  %214 = vst.msk [vmem:[%s595_s2 + $0x40] sm:$0xff] %vm18_vm1, %v455_v54  ;;  %v282_v48 = vsel %vm18_vm1, %v263_v35, 0.0 }
  0x96   :  { %173 = vst.msk [vmem:[#allocation2 + $0x10] sm:$0xff] %vm18_vm1, %v156_v55 }
  0x97   :  { %v191_v59 = vld [vmem:[#allocation2 + $0x8] sm:$0xff]  ;;  %177 = vst.msk [vmem:[#allocation2 + $0x30] sm:$0xff] %vm18_vm1, %v160_v56 }
  0x98   :  { %207 = vst.msk [vmem:[%s595_s2 + $0x8] sm:$0xff] %vm18_vm1, %v191_v59  ;;  %v468_v60 = vld [vmem:[#allocation2 + $0x28] sm:$0xff]  ;;  %v260_v13 = vmul.f32 %v191_v59, %v191_v59  ;;  %v223_v18 = vsel %vm18_vm1, %v191_v59, 0.0 }
  0x99   :  { %211 = vst.msk [vmem:[%s595_s2 + $0x28] sm:$0xff] %vm18_vm1, %v468_v60  ;;  %v475_v63 = vld [vmem:[#allocation2 + $0x60] sm:$0xff]  ;;  %v224_v29 = vadd.f32 %v223_v18, %v222_v25  ;;  %v264_v42 = vmul.f32 %v468_v60, %v468_v60  ;;  %v231_v49 = vsel %vm18_vm1, %v468_v60, 0.0  ;;  %v267_v60 = vmul.f32 %v455_v54, %v455_v54 }
  0x9a   :  { %180 = vst.msk [vmem:[#allocation2 + $0x48] sm:$0xff] %vm18_vm1, %v163_v58  ;;  %v139_v2 = vpop.f32.mrf.mxu2  ;;  %v276_v26 = vsel %vm18_vm1, %v260_v13, 0.0  ;;  %v271_v17 = vmul.f32 %v475_v63, %v475_v63 }
  0x9b   :  { %v149_v3 = vpop.f32.mrf.mxu3  ;;  %218 = vst.msk [vmem:[%s595_s2 + $0x60] sm:$0xff] %vm18_vm1, %v475_v63  ;;  %v121_v4 = vpop.f32.mrf.mxu0  ;;  %v164_v6 = vadd.f32 %v139_v2, %v61_v61  ;;  %v277_v32 = vadd.f32 %v276_v26, %v275_v30  ;;  %v284_v53 = vsel %vm18_vm1, %v264_v42, 0.0  ;;  %v237_v2 = vsel %vm18_vm1, %v455_v54, 0.0 }
  0x9c   :  { %v131_v5 = vpop.f32.mrf.mxu1  ;;  %v157_v7 = vadd.f32 %v121_v4, %v54_v0  ;;  %184 = vst.msk [vmem:[#allocation2 + $0x68] sm:$0xff] %vm18_vm1, %v167_v62  ;;  %v168_v12 = vadd.f32 %v149_v3, %v65_v8 }
  0x9d   :  { %v192_v9 = vld [vmem:[#allocation2 + $0x10] sm:$0xff]  ;;  %v161_v10 = vadd.f32 %v131_v5, %v58_v1  ;;  %181 = vst.msk [vmem:[#allocation2 + $0x50] sm:$0xff] %vm18_vm1, %v164_v6 }
  0x9e   :  { %208 = vst.msk [vmem:[%s595_s2 + $0x10] sm:$0xff] %vm18_vm1, %v192_v9  ;;  %v196_v11 = vld [vmem:[#allocation2 + $0x30] sm:$0xff]  ;;  %v261_v19 = vmul.f32 %v192_v9, %v192_v9  ;;  %v225_v27 = vsel %vm18_vm1, %v192_v9, 0.0 }
  0x9f   :  { %212 = vst.msk [vmem:[%s595_s2 + $0x30] sm:$0xff] %vm18_vm1, %v196_v11  ;;  %v226_v33 = vadd.f32 %v225_v27, %v224_v29  ;;  %v265_v50 = vmul.f32 %v196_v11, %v196_v11  ;;  %v233_v55 = vsel %vm18_vm1, %v196_v11, 0.0  ;;  %v298_v27 = vsel %vm18_vm1, %v271_v17, 0.0 }
  0xa0   :  { %174 = vst.msk [vmem:[#allocation2 + $0x18] sm:$0xff] %vm18_vm1, %v157_v7  ;;  %v278_v31 = vsel %vm18_vm1, %v261_v19, 0.0  ;;  %v290_v7 = vsel %vm18_vm1, %v267_v60, 0.0 }
  0xa1   :  { %v494_v16 = vld [vmem:[#allocation2 + $0x48] sm:$0xff]  ;;  %178 = vst.msk [vmem:[#allocation2 + $0x38] sm:$0xff] %vm18_vm1, %v161_v10  ;;  %v279_v39 = vadd.f32 %v278_v31, %v277_v32  ;;  %v286_v61 = vsel %vm18_vm1, %v265_v50, 0.0 }
  0xa2   :  { %215 = vst.msk [vmem:[%s595_s2 + $0x48] sm:$0xff] %vm18_vm1, %v494_v16  ;;  %v141_v20 = vpop.f32.mrf.mxu2  ;;  %v268_v3 = vmul.f32 %v494_v16, %v494_v16  ;;  %v239_v8 = vsel %vm18_vm1, %v494_v16, 0.0  ;;  %v245_v16 = vsel %vm18_vm1, %v475_v63, 0.0 }
  0xa3   :  { %v151_v21 = vpop.f32.mrf.mxu3  ;;  %v505_v22 = vld [vmem:[#allocation2 + $0x68] sm:$0xff]  ;;  %v165_v23 = vadd.f32 %v141_v20, %v62_v14  ;;  %185 = vst.msk [vmem:[#allocation2 + $0x70] sm:$0xff] %vm18_vm1, %v168_v12 }
  0xa4   :  { %v169_v24 = vadd.f32 %v151_v21, %v66_v15  ;;  %v200_v28 = vld [vmem:[#allocation2 + $0x50] sm:$0xff]  ;;  %219 = vst.msk [vmem:[%s595_s2 + $0x68] sm:$0xff] %vm18_vm1, %v505_v22  ;;  %v292_v12 = vsel %vm18_vm1, %v268_v3, 0.0 }
  0xa5   :  { %216 = vst.msk [vmem:[%s595_s2 + $0x50] sm:$0xff] %vm18_vm1, %v200_v28  ;;  %v269_v9 = vmul.f32 %v200_v28, %v200_v28  ;;  %v241_v13 = vsel %vm18_vm1, %v200_v28, 0.0  ;;  %v247_v28 = vsel %vm18_vm1, %v505_v22, 0.0 }
  0xa6   :  { %182 = vst.msk [vmem:[#allocation2 + $0x58] sm:$0xff] %vm18_vm1, %v165_v23  ;;  %v272_v23 = vmul.f32 %v505_v22, %v505_v22 }
  0xa7   :  { %v193_v34 = vld [vmem:[#allocation2 + $0x18] sm:$0xff]  ;;  %186 = vst.msk [vmem:[#allocation2 + $0x78] sm:$0xff] %vm18_vm1, %v169_v24  ;;  %v294_v18 = vsel %vm18_vm1, %v269_v9, 0.0 }
  0xa8   :  { %209 = vst.msk [vmem:[%s595_s2 + $0x18] sm:$0xff] %vm18_vm1, %v193_v34  ;;  %v227_v36 = vsel %vm18_vm1, %v193_v34, 0.0  ;;  %v262_v37 = vmul.f32 %v193_v34, %v193_v34  ;;  %v197_v38 = vld [vmem:[#allocation2 + $0x38] sm:$0xff]  ;;  %v300_v32 = vsel %vm18_vm1, %v272_v23, 0.0 }
  0xa9   :  { %v228_v40 = vadd.f32 %v227_v36, %v226_v33  ;;  %213 = vst.msk [vmem:[%s595_s2 + $0x38] sm:$0xff] %vm18_vm1, %v197_v38  ;;  %v266_v56 = vmul.f32 %v197_v38, %v197_v38  ;;  %v235_v62 = vsel %vm18_vm1, %v197_v38, 0.0 }
  0xaa   :  { %v280_v43 = vsel %vm18_vm1, %v262_v37, 0.0  ;;  %v204_v44 = vld [vmem:[#allocation2 + $0x70] sm:$0xff] }
  0xab   :  { %v230_v46 = vadd.f32 %v229_v41, %v228_v40  ;;  %v281_v47 = vadd.f32 %v280_v43, %v279_v39  ;;  %220 = vst.msk [vmem:[%s595_s2 + $0x70] sm:$0xff] %vm18_vm1, %v204_v44  ;;  %v288_v4 = vsel %vm18_vm1, %v266_v56, 0.0  ;;  %v273_v29 = vmul.f32 %v204_v44, %v204_v44 }
  0xac   :  { %v249_v33 = vsel %vm18_vm1, %v204_v44, 0.0 }
  0xad   :  { %v283_v45 = vadd.f32 %v282_v48, %v281_v47  ;;  %v232_v51 = vadd.f32 %v231_v49, %v230_v46  ;;  %v201_v52 = vld [vmem:[#allocation2 + $0x58] sm:$0xff]  ;;  %v302_v36 = vsel %vm18_vm1, %v273_v29, 0.0  ;;  %v312_v46 = vlaneseq }
  0xae   :  { %217 = vst.msk [vmem:[%s595_s2 + $0x58] sm:$0xff] %vm18_vm1, %v201_v52  ;;  %v205_v57 = vld [vmem:[#allocation2 + $0x78] sm:$0xff]  ;;  %v270_v54 = vmul.f32 %v201_v52, %v201_v52  ;;  %v243_v19 = vsel %vm18_vm1, %v201_v52, 0.0 }
  0xaf   :  { %v234_v58 = vadd.f32 %v233_v55, %v232_v51  ;;  %v285_v59 = vadd.f32 %v284_v53, %v283_v45  ;;  %221 = vst.msk [vmem:[%s595_s2 + $0x78] sm:$0xff] %vm18_vm1, %v205_v57  ;;  %v274_v63 = vmul.f32 %v205_v57, %v205_v57  ;;  %v251_v37 = vsel %vm18_vm1, %v205_v57, 0.0 }
  0xb0   :  { %v296_v24 = vsel %vm18_vm1, %v270_v54, 0.0  ;;  %v313_v50 = vshrl.u32 %v312_v46, 7 }
  0xb1   :  { %v236_v0 = vadd.f32 %v235_v62, %v234_v58  ;;  %v287_v1 = vadd.f32 %v286_v61, %v285_v59  ;;  %v304_v40 = vsel %vm18_vm1, %v274_v63, 0.0 }
  0xb2   :  { %vm315_vm3 = vcmp.eq.s32.totalorder %v313_v50, 1  ;;  %vm314_vm4 = vcmp.eq.s32.totalorder %v313_v50, 0 }
  0xb3   :  { %v238_v5 = vadd.f32 %v237_v2, %v236_v0  ;;  %v289_v6 = vadd.f32 %v288_v4, %v287_v1 }
  0xb5   :  { %v291_v10 = vadd.f32 %v290_v7, %v289_v6  ;;  %v240_v11 = vadd.f32 %v239_v8, %v238_v5 }
  0xb7   :  { %v242_v14 = vadd.f32 %v241_v13, %v240_v11  ;;  %v293_v15 = vadd.f32 %v292_v12, %v291_v10 }
  0xb9   :  { %v295_v20 = vadd.f32 %v294_v18, %v293_v15  ;;  %v244_v21 = vadd.f32 %v243_v19, %v242_v14 }
  0xbb   :  { %v246_v25 = vadd.f32 %v245_v16, %v244_v21  ;;  %v297_v26 = vadd.f32 %v296_v24, %v295_v20 }
  0xbd   :  { %v299_v30 = vadd.f32 %v298_v27, %v297_v26  ;;  %v248_v31 = vadd.f32 %v247_v28, %v246_v25 }
  0xbf   :  { %v250_v34 = vadd.f32 %v249_v33, %v248_v31  ;;  %v301_v35 = vadd.f32 %v300_v32, %v299_v30 }
  0xc1   :  { %v303_v38 = vadd.f32 %v302_v36, %v301_v35  ;;  %v252_v39 = vadd.f32 %v251_v37, %v250_v34 }
  0xc3   :  { %v253_v41 = vrot.slane %v252_v39, 4  ;;  %v305_v22 = vadd.f32 %v304_v40, %v303_v38 }
  0xc5   :  { %v254_v42 = vadd.f32 %v253_v41, %v252_v39  ;;  %v306_v43 = vrot.slane %v305_v22, 4 }
  0xc7   :  { %v255_v47 = vrot.slane %v254_v42, 2  ;;  %v307_v48 = vadd.f32 %v306_v43, %v305_v22 }
  0xc9   :  { %v256_v49 = vadd.f32 %v255_v47, %v254_v42  ;;  %v308_v44 = vrot.slane %v307_v48, 2 }
  0xcb   :  { %v309_v45 = vadd.f32 %v308_v44, %v307_v48  ;;  %v257_v51 = vrot.slane %v256_v49, 1 }
  0xcd   :  { %v310_v52 = vrot.slane %v309_v45, 1  ;;  %v258_v55 = vadd.f32 %v257_v51, %v256_v49 }
  0xcf   :  { %v311_v53 = vadd.f32 %v310_v52, %v309_v45 }
  0xd1   :  { %v316_v56 = vsel %vm315_vm3, %v311_v53, 0.0 }
  0xd2   :  { %v317_v57 = vsel %vm314_vm4, %v258_v55, %v316_v56 }
  0xd3   :  { %318 = vst.msk [vmem:[%s596_s3] sm:$0xff] %vm18_vm1, %v317_v57 }

// kernel: bottleneck_forward.7
= control target key start
LH: loop header
LB: loop body
LE: loop exit
PB: predicated region body
PF: predicated region fallthrough
CT: control target
= control target key end

     0   :  { %vm172_vm0 = vcmask 1043456   ;;  %vm33_vm1 = vcmask 261120   ;;  %v502_v3 = vmov 0.0   ;;  %vm147_vm2 = vcmask 64512   ;;  %s947_s1 = inlined_call_operand.vmem [shape: bf16[8,32], index: 1, kind: input, shape index: {}]   ;;  %s948_s0 = inlined_call_operand.vmem [shape: f32[128,8], index: 0, kind: input, shape index: {}]   ;;  %s949_s2 = inlined_call_operand.vmem [shape: f32[1,8], index: 2, kind: input, shape index: {}]   ;;  %s950_s3 = inlined_call_operand.vmem [shape: f32[1,8], index: 3, kind: input, shape index: {}]   ;;  %s951_s5 = inlined_call_operand.vmem [shape: f32[1,32], index: 5, kind: input, shape index: {}]   ;;  %s952_s6 = inlined_call_operand.vmem [shape: f32[1,32], index: 6, kind: input, shape index: {}]   ;;  %s953_s4 = inlined_call_operand.vmem [shape: f32[128,32], index: 4, kind: input, shape index: {}]   ;;  %s954_s7 = inlined_call_operand.vmem [shape: f32[128,32], index: 7, kind: output, shape index: {0}]   ;;  %s955_s8 = inlined_call_operand.vmem [shape: f32[1,8,32], index: 8, kind: output, shape index: {1}]  }
   0x1   :  { %v146_v0 = vld [vmem:[%s947_s1] sm:$0xf]  ;;  %v51_v2 = vld [vmem:[%s948_s0 + $0x8] sm:$0xff]  ;;  %34 = vst.msk [vmem:[#allocation2] sm:$0xff] %vm33_vm1, %v502_v3  ;;  %v52_v28 = vld [vmem:[%s948_s0 + $0x10] sm:$0xff] }
   0x2   :  { %v50_v1 = vld [vmem:[%s948_s0] sm:$0xff]  ;;  %v174_v4 = vsel %vm172_vm0, %v146_v0, 0  ;;  %v55_v8 = vld [vmem:[%s948_s0 + $0x28] sm:$0xff]  ;;  %35 = vst.msk [vmem:[#allocation2 + $0x8] sm:$0xff] %vm33_vm1, %v502_v3  ;;  %v53_v29 = vld [vmem:[%s948_s0 + $0x18] sm:$0xff] }
   0x3   :  { %v562_v5 = vld [vmem:[%s949_s2] ss:$0 sm:$0xff]  ;;  %183 = vmatpush.bf16.msra.mxu0 %v174_v4  ;;  %494 = vmatpush.bf16.msra.mxu1 %v174_v4  ;;  %v59_v14 = vld [vmem:[%s948_s0 + $0x48] sm:$0xff]  ;;  %36 = vst.msk [vmem:[#allocation2 + $0x10] sm:$0xff] %vm33_vm1, %v502_v3  ;;  %v56_v30 = vld [vmem:[%s948_s0 + $0x30] sm:$0xff] }
   0x4   :  { %v54_v6 = vld [vmem:[%s948_s0 + $0x20] sm:$0xff]  ;;  %495 = vmatpush.bf16.msra.mxu2 %v174_v4  ;;  %v70_v9 = vmul.f32 %v562_v5, %v50_v1  ;;  %v71_v10 = vmul.f32 %v562_v5, %v51_v2  ;;  %v75_v12 = vmul.f32 %v562_v5, %v55_v8  ;;  %v79_v17 = vmul.f32 %v562_v5, %v59_v14  ;;  %v63_v18 = vld [vmem:[%s948_s0 + $0x68] sm:$0xff]  ;;  %v57_v35 = vld [vmem:[%s948_s0 + $0x38] sm:$0xff] }
   0x5   :  { %v570_v7 = vld [vmem:[%s950_s3] ss:$0 sm:$0xff]  ;;  %v74_v11 = vmul.f32 %v562_v5, %v54_v6  ;;  %496 = vmatpush.bf16.msra.mxu3 %v174_v4  ;;  %37 = vst.msk [vmem:[#allocation2 + $0x18] sm:$0xff] %vm33_vm1, %v502_v3  ;;  %v83_v26 = vmul.f32 %v562_v5, %v63_v18  ;;  %v60_v42 = vld [vmem:[%s948_s0 + $0x50] sm:$0xff]  ;;  %v61_v43 = vld [vmem:[%s948_s0 + $0x58] sm:$0xff]  ;;  %v72_v46 = vmul.f32 %v562_v5, %v52_v28 }
   0x6   :  { %v58_v13 = vld [vmem:[%s948_s0 + $0x40] sm:$0xff]  ;;  %v90_v20 = vadd.f32 %v570_v7, %v70_v9  ;;  %v91_v21 = vadd.f32 %v570_v7, %v71_v10  ;;  %v95_v23 = vadd.f32 %v570_v7, %v75_v12  ;;  %v99_v25 = vadd.f32 %v570_v7, %v79_v17  ;;  %38 = vst.msk [vmem:[#allocation2 + $0x20] sm:$0xff] %vm33_vm1, %v502_v3  ;;  %v64_v50 = vld [vmem:[%s948_s0 + $0x70] sm:$0xff]  ;;  %v65_v51 = vld [vmem:[%s948_s0 + $0x78] sm:$0xff] }
   0x7   :  { %v62_v15 = vld [vmem:[%s948_s0 + $0x60] sm:$0xff]  ;;  %v78_v16 = vmul.f32 %v562_v5, %v58_v13  ;;  %v94_v22 = vadd.f32 %v570_v7, %v74_v11  ;;  %39 = vst.msk [vmem:[#allocation2 + $0x28] sm:$0xff] %vm33_vm1, %v502_v3  ;;  %v103_v38 = vadd.f32 %v570_v7, %v83_v26  ;;  %v73_v47 = vmul.f32 %v562_v5, %v53_v29 }
   0x8   :  { %v82_v19 = vmul.f32 %v562_v5, %v62_v15  ;;  %v106_v31 = vmax.f32 %v90_v20, 0.0  ;;  %v107_v32 = vmax.f32 %v91_v21, 0.0  ;;  %v111_v34 = vmax.f32 %v95_v23, 0.0  ;;  %40 = vst.msk [vmem:[#allocation2 + $0x30] sm:$0xff] %vm33_vm1, %v502_v3  ;;  %v277_v20 = vld [vmem:[%s953_s4] sm:$0xff] }
   0x9   :  { %v98_v24 = vadd.f32 %v570_v7, %v78_v16  ;;  %v110_v33 = vmax.f32 %v94_v22, 0.0  ;;  %v115_v37 = vmax.f32 %v99_v25, 0.0  ;;  %41 = vst.msk [vmem:[#allocation2 + $0x38] sm:$0xff] %vm33_vm1, %v502_v3  ;;  %v119_v45 = vmax.f32 %v103_v38, 0.0  ;;  %v281_v21 = vld [vmem:[%s953_s4 + $0x20] sm:$0xff]  ;;  %v123_v23 = vld [vmem:[#allocation2 + $0x8] sm:$0xff] }
   0xa   :  { %v102_v27 = vadd.f32 %v570_v7, %v82_v19  ;;  %v138_v40 = vpack.c.bf16 %v107_v32, %v106_v31  ;;  %42 = vst.msk [vmem:[#allocation2 + $0x40] sm:$0xff] %vm33_vm1, %v502_v3  ;;  %v76_v48 = vmul.f32 %v562_v5, %v56_v30  ;;  %v77_v49 = vmul.f32 %v562_v5, %v57_v35  ;;  %v685_v19 = vld [vmem:[%s951_s5] ss:$0 sm:$0xff] }
   0xb   :  { %v114_v36 = vmax.f32 %v98_v24, 0.0  ;;  %v140_v41 = vpack.c.bf16 %v111_v34, %v110_v33  ;;  %43 = vst.msk [vmem:[#allocation2 + $0x48] sm:$0xff] %vm33_vm1, %v502_v3  ;;  %v80_v53 = vmul.f32 %v562_v5, %v60_v42  ;;  %v81_v54 = vmul.f32 %v562_v5, %v61_v43  ;;  %v699_v32 = vld [vmem:[%s952_s6] ss:$0 sm:$0xff]  ;;  %v278_v42 = vld [vmem:[%s953_s4 + $0x8] sm:$0xff] }
   0xc   :  { %v118_v39 = vmax.f32 %v102_v27, 0.0  ;;  %486 = vmatmul.msk.bf16.vlgmr.msra.gmra.mxu0 %vm147_vm2, %v138_v40  ;;  %44 = vst.msk [vmem:[#allocation2 + $0x50] sm:$0xff] %vm33_vm1, %v502_v3  ;;  %v84_v55 = vmul.f32 %v562_v5, %v64_v50  ;;  %v85_v56 = vmul.f32 %v562_v5, %v65_v51  ;;  %v92_v57 = vadd.f32 %v570_v7, %v72_v46  ;;  %v285_v40 = vld [vmem:[%s953_s4 + $0x40] sm:$0xff] }
   0xd   :  { %v142_v44 = vpack.c.bf16 %v115_v37, %v114_v36  ;;  %488 = vmatmul.msk.bf16.vlgmr.msra.gmra.mxu1 %vm147_vm2, %v140_v41  ;;  %45 = vst.msk [vmem:[#allocation2 + $0x58] sm:$0xff] %vm33_vm1, %v502_v3  ;;  %v93_v58 = vadd.f32 %v570_v7, %v73_v47  ;;  %v96_v59 = vadd.f32 %v570_v7, %v76_v48  ;;  %v289_v50 = vld [vmem:[%s953_s4 + $0x60] sm:$0xff] }
   0xe   :  { %v144_v52 = vpack.c.bf16 %v119_v45, %v118_v39  ;;  %v97_v60 = vadd.f32 %v570_v7, %v77_v49  ;;  %46 = vst.msk [vmem:[#allocation2 + $0x60] sm:$0xff] %vm33_vm1, %v502_v3  ;;  %v100_v61 = vadd.f32 %v570_v7, %v80_v53  ;;  %v101_v62 = vadd.f32 %v570_v7, %v81_v54  ;;  %v127_v24 = vld [vmem:[#allocation2 + $0x28] sm:$0xff]  ;;  %v124_v45 = vld [vmem:[#allocation2 + $0x10] sm:$0xff] }
   0xf   :  { %490 = vmatmul.msk.bf16.vlgmr.msra.gmra.mxu2 %vm147_vm2, %v142_v44  ;;  %47 = vst.msk [vmem:[#allocation2 + $0x68] sm:$0xff] %vm33_vm1, %v502_v3  ;;  %v104_v63 = vadd.f32 %v570_v7, %v84_v55  ;;  %v105_v0 = vadd.f32 %v570_v7, %v85_v56  ;;  %v108_v1 = vmax.f32 %v92_v57, 0.0  ;;  %v109_v2 = vmax.f32 %v93_v58, 0.0  ;;  %v126_v7 = vld [vmem:[#allocation2 + $0x20] sm:$0xff]  ;;  %v282_v44 = vld [vmem:[%s953_s4 + $0x28] sm:$0xff]  ;;  %v128_v48 = vld [vmem:[#allocation2 + $0x30] sm:$0xff] }
  0x10   :  { %492 = vmatmul.msk.bf16.vlgmr.msra.gmra.mxu3 %vm147_vm2, %v144_v52  ;;  %48 = vst.msk [vmem:[#allocation2 + $0x70] sm:$0xff] %vm33_vm1, %v502_v3  ;;  %v112_v4 = vmax.f32 %v96_v59, 0.0  ;;  %v113_v5 = vmax.f32 %v97_v60, 0.0  ;;  %v116_v6 = vmax.f32 %v100_v61, 0.0  ;;  %v117_v8 = vmax.f32 %v101_v62, 0.0 }
  0x11   :  { %49 = vst.msk [vmem:[#allocation2 + $0x78] sm:$0xff] %vm33_vm1, %v502_v3  ;;  %v120_v9 = vmax.f32 %v104_v63, 0.0  ;;  %v121_v10 = vmax.f32 %v105_v0, 0.0  ;;  %v139_v11 = vpack.c.bf16 %v109_v2, %v108_v1  ;;  %v122_v3 = vld [vmem:[#allocation2] sm:$0xff]  ;;  %v297_v25 = vmul.f32 %v685_v19, %v277_v20 }
  0x12   :  { %v141_v12 = vpack.c.bf16 %v113_v5, %v112_v4  ;;  %v143_v13 = vpack.c.bf16 %v117_v8, %v116_v6  ;;  %v130_v22 = vld [vmem:[#allocation2 + $0x40] sm:$0xff]  ;;  %v301_v28 = vmul.f32 %v685_v19, %v281_v21  ;;  %v305_v47 = vmul.f32 %v685_v19, %v285_v40  ;;  %v131_v49 = vld [vmem:[#allocation2 + $0x48] sm:$0xff] }
  0x13   :  { %v145_v14 = vpack.c.bf16 %v121_v10, %v120_v9  ;;  %v298_v52 = vmul.f32 %v685_v19, %v278_v42  ;;  %v302_v56 = vmul.f32 %v685_v19, %v282_v44  ;;  %v309_v63 = vmul.f32 %v685_v19, %v289_v50  ;;  %v279_v10 = vld [vmem:[%s953_s4 + $0x10] sm:$0xff] }
  0x14   :  { %v299_v20 = vmul.f32 %v685_v19, %v279_v10 }
  0x15   :  { %v134_v27 = vld [vmem:[#allocation2 + $0x60] sm:$0xff] }
  0x16   :  { %v135_v54 = vld [vmem:[#allocation2 + $0x68] sm:$0xff] }
  0x1c   :  { %487 = vmatmul.msk.bf16.gmra.mxu0 %vm147_vm2, %v139_v11 }
  0x1d   :  { %489 = vmatmul.msk.bf16.gmra.mxu1 %vm147_vm2, %v141_v12 }
  0x1f   :  { %491 = vmatmul.msk.bf16.gmra.mxu2 %vm147_vm2, %v143_v13  ;;  %v283_v13 = vld [vmem:[%s953_s4 + $0x30] sm:$0xff] }
  0x20   :  { %493 = vmatmul.msk.bf16.gmra.mxu3 %vm147_vm2, %v145_v14 }
  0x89   :  { %v185_v15 = vpop.f32.mrf.mxu0 }
  0x8a   :  { %v195_v16 = vpop.f32.mrf.mxu1  ;;  %v225_v17 = vadd.f32 %v185_v15, %v122_v3  ;;  %v286_v15 = vld [vmem:[%s953_s4 + $0x48] sm:$0xff] }
  0x8b   :  { %v229_v18 = vadd.f32 %v195_v16, %v126_v7  ;;  %v125_v16 = vld [vmem:[#allocation2 + $0x18] sm:$0xff] }
  0x8c   :  { %242 = vst.msk [vmem:[#allocation2] sm:$0xff] %vm33_vm1, %v225_v17  ;;  %v132_v17 = vld [vmem:[#allocation2 + $0x50] sm:$0xff] }
  0x8d   :  { %246 = vst.msk [vmem:[#allocation2 + $0x20] sm:$0xff] %vm33_vm1, %v229_v18 }
  0x91   :  { %v187_v29 = vpop.f32.mrf.mxu0 }
  0x92   :  { %v205_v26 = vpop.f32.mrf.mxu2  ;;  %v197_v30 = vpop.f32.mrf.mxu1  ;;  %v226_v33 = vadd.f32 %v187_v29, %v123_v23  ;;  %v290_v23 = vld [vmem:[%s953_s4 + $0x68] sm:$0xff] }
  0x93   :  { %v233_v31 = vadd.f32 %v205_v26, %v130_v22  ;;  %v230_v34 = vadd.f32 %v197_v30, %v127_v24  ;;  %v215_v35 = vpop.f32.mrf.mxu3  ;;  %v261_v36 = vld [vmem:[#allocation2] sm:$0xff]  ;;  %v129_v30 = vld [vmem:[#allocation2 + $0x38] sm:$0xff] }
  0x94   :  { %v237_v37 = vadd.f32 %v215_v35, %v134_v27  ;;  %v313_v38 = vadd.f32 %v297_v25, %v261_v36  ;;  %v265_v39 = vld [vmem:[#allocation2 + $0x20] sm:$0xff]  ;;  %243 = vst.msk [vmem:[#allocation2 + $0x8] sm:$0xff] %vm33_vm1, %v226_v33  ;;  %v303_v25 = vmul.f32 %v685_v19, %v283_v13  ;;  %v306_v27 = vmul.f32 %v685_v19, %v286_v15 }
  0x95   :  { %250 = vst.msk [vmem:[#allocation2 + $0x40] sm:$0xff] %vm33_vm1, %v233_v31  ;;  %v317_v41 = vadd.f32 %v301_v28, %v265_v39  ;;  %v310_v36 = vmul.f32 %v685_v19, %v290_v23 }
  0x96   :  { %247 = vst.msk [vmem:[#allocation2 + $0x28] sm:$0xff] %vm33_vm1, %v230_v34  ;;  %v333_v43 = vadd.f32 %v699_v32, %v313_v38 }
  0x97   :  { %254 = vst.msk [vmem:[#allocation2 + $0x60] sm:$0xff] %vm33_vm1, %v237_v37  ;;  %v337_v46 = vadd.f32 %v699_v32, %v317_v41  ;;  %v136_v37 = vld [vmem:[#allocation2 + $0x70] sm:$0xff] }
  0x98   :  { %v720_v51 = vmax.f32 %v333_v43, 0.0 }
  0x99   :  { %v723_v55 = vmax.f32 %v337_v46, 0.0  ;;  %v190_v57 = vpop.f32.mrf.mxu0 }
  0x9a   :  { %v207_v53 = vpop.f32.mrf.mxu2  ;;  %v200_v58 = vpop.f32.mrf.mxu1  ;;  %365 = vst.msk [vmem:[%s954_s7] sm:$0xff] %vm33_vm1, %v720_v51  ;;  %v227_v60 = vadd.f32 %v190_v57, %v124_v45  ;;  %v280_v45 = vld [vmem:[%s953_s4 + $0x18] sm:$0xff] }
  0x9b   :  { %v231_v61 = vadd.f32 %v200_v58, %v128_v48  ;;  %v234_v62 = vadd.f32 %v207_v53, %v131_v49  ;;  %v217_v0 = vpop.f32.mrf.mxu3  ;;  %369 = vst.msk [vmem:[%s954_s7 + $0x20] sm:$0xff] %vm33_vm1, %v723_v55  ;;  %v262_v1 = vld [vmem:[#allocation2 + $0x8] sm:$0xff]  ;;  %v287_v49 = vld [vmem:[%s953_s4 + $0x50] sm:$0xff] }
  0x9c   :  { %v269_v59 = vld [vmem:[#allocation2 + $0x40] sm:$0xff]  ;;  %v238_v4 = vadd.f32 %v217_v0, %v135_v54  ;;  %v314_v5 = vadd.f32 %v298_v52, %v262_v1  ;;  %244 = vst.msk [vmem:[#allocation2 + $0x10] sm:$0xff] %vm33_vm1, %v227_v60  ;;  %v133_v52 = vld [vmem:[#allocation2 + $0x58] sm:$0xff]  ;;  %v307_v0 = vmul.f32 %v685_v19, %v287_v49 }
  0x9d   :  { %v321_v2 = vadd.f32 %v305_v47, %v269_v59  ;;  %v266_v6 = vld [vmem:[#allocation2 + $0x28] sm:$0xff]  ;;  %248 = vst.msk [vmem:[#allocation2 + $0x30] sm:$0xff] %vm33_vm1, %v231_v61  ;;  %v300_v59 = vmul.f32 %v685_v19, %v280_v45  ;;  %v291_v61 = vld [vmem:[%s953_s4 + $0x70] sm:$0xff] }
  0x9e   :  { %v318_v8 = vadd.f32 %v302_v56, %v266_v6  ;;  %v273_v11 = vld [vmem:[#allocation2 + $0x60] sm:$0xff]  ;;  %v334_v12 = vadd.f32 %v699_v32, %v314_v5  ;;  %251 = vst.msk [vmem:[#allocation2 + $0x48] sm:$0xff] %vm33_vm1, %v234_v62  ;;  %v284_v56 = vld [vmem:[%s953_s4 + $0x38] sm:$0xff]  ;;  %v311_v10 = vmul.f32 %v685_v19, %v291_v61 }
  0x9f   :  { %v341_v9 = vadd.f32 %v699_v32, %v321_v2  ;;  %v325_v14 = vadd.f32 %v309_v63, %v273_v11  ;;  %255 = vst.msk [vmem:[#allocation2 + $0x68] sm:$0xff] %vm33_vm1, %v238_v4  ;;  %v137_v62 = vld [vmem:[#allocation2 + $0x78] sm:$0xff]  ;;  %v304_v5 = vmul.f32 %v685_v19, %v284_v56 }
  0xa0   :  { %v338_v3 = vadd.f32 %v699_v32, %v318_v8  ;;  %v755_v18 = vmax.f32 %v334_v12, 0.0  ;;  %v288_v8 = vld [vmem:[%s953_s4 + $0x58] sm:$0xff]  ;;  %v418_v12 = vmul.f32 %v720_v51, %v720_v51 }
  0xa1   :  { %v749_v7 = vmax.f32 %v341_v9, 0.0  ;;  %v345_v21 = vadd.f32 %v699_v32, %v325_v14  ;;  %v192_v26 = vpop.f32.mrf.mxu0 }
  0xa2   :  { %v210_v22 = vpop.f32.mrf.mxu2  ;;  %v762_v24 = vmax.f32 %v338_v3, 0.0  ;;  %366 = vst.msk [vmem:[%s954_s7 + $0x8] sm:$0xff] %vm33_vm1, %v755_v18  ;;  %v228_v29 = vadd.f32 %v192_v26, %v125_v16  ;;  %v202_v31 = vpop.f32.mrf.mxu1  ;;  %v419_v4 = vmul.f32 %v755_v18, %v755_v18  ;;  %v382_v13 = vsel %vm33_vm1, %v755_v18, 0.0 }
  0xa3   :  { %373 = vst.msk [vmem:[%s954_s7 + $0x40] sm:$0xff] %vm33_vm1, %v749_v7  ;;  %v776_v28 = vmax.f32 %v345_v21, 0.0  ;;  %v235_v33 = vadd.f32 %v210_v22, %v132_v17  ;;  %v220_v34 = vpop.f32.mrf.mxu3  ;;  %v263_v35 = vld [vmem:[#allocation2 + $0x10] sm:$0xff]  ;;  %v232_v42 = vadd.f32 %v202_v31, %v129_v30  ;;  %v381_v16 = vsel %vm33_vm1, %v720_v51, 0.0  ;;  %v292_v31 = vld [vmem:[%s953_s4 + $0x78] sm:$0xff] }
  0xa4   :  { %370 = vst.msk [vmem:[%s954_s7 + $0x28] sm:$0xff] %vm33_vm1, %v762_v24  ;;  %v315_v38 = vadd.f32 %v299_v20, %v263_v35  ;;  %v267_v39 = vld [vmem:[#allocation2 + $0x30] sm:$0xff]  ;;  %v239_v47 = vadd.f32 %v220_v34, %v136_v37  ;;  %v308_v21 = vmul.f32 %v685_v19, %v288_v8  ;;  %v435_v18 = vsel %vm33_vm1, %v419_v4, 0.0 }
  0xa5   :  { %377 = vst.msk [vmem:[%s954_s7 + $0x60] sm:$0xff] %vm33_vm1, %v776_v28  ;;  %v319_v40 = vadd.f32 %v303_v25, %v267_v39  ;;  %v270_v41 = vld [vmem:[#allocation2 + $0x48] sm:$0xff]  ;;  %v383_v51 = vadd.f32 %v382_v13, %v381_v16  ;;  %v423_v49 = vmul.f32 %v762_v24, %v762_v24 }
  0xa6   :  { %245 = vst.msk [vmem:[#allocation2 + $0x18] sm:$0xff] %vm33_vm1, %v228_v29  ;;  %v335_v43 = vadd.f32 %v699_v32, %v315_v38  ;;  %v322_v44 = vadd.f32 %v306_v27, %v270_v41  ;;  %v274_v46 = vld [vmem:[#allocation2 + $0x68] sm:$0xff]  ;;  %v422_v27 = vmul.f32 %v723_v55, %v723_v55 }
  0xa7   :  { %252 = vst.msk [vmem:[#allocation2 + $0x50] sm:$0xff] %vm33_vm1, %v235_v33  ;;  %v339_v48 = vadd.f32 %v699_v32, %v319_v40  ;;  %v326_v50 = vadd.f32 %v310_v36, %v274_v46  ;;  %v434_v33 = vsel %vm33_vm1, %v418_v12, 0.0 }
  0xa8   :  { %249 = vst.msk [vmem:[#allocation2 + $0x38] sm:$0xff] %vm33_vm1, %v232_v42  ;;  %v351_v53 = vmax.f32 %v335_v43, 0.0  ;;  %v342_v54 = vadd.f32 %v699_v32, %v322_v44  ;;  %v436_v37 = vadd.f32 %v435_v18, %v434_v33  ;;  %v312_v44 = vmul.f32 %v685_v19, %v292_v31 }
  0xa9   :  { %256 = vst.msk [vmem:[#allocation2 + $0x70] sm:$0xff] %vm33_vm1, %v239_v47  ;;  %v805_v58 = vmax.f32 %v339_v48, 0.0  ;;  %v346_v60 = vadd.f32 %v699_v32, %v326_v50  ;;  %v388_v48 = vsel %vm33_vm1, %v723_v55, 0.0  ;;  %v441_v56 = vsel %vm33_vm1, %v422_v27, 0.0 }
  0xaa   :  { %v212_v57 = vpop.f32.mrf.mxu2  ;;  %367 = vst.msk [vmem:[%s954_s7 + $0x10] sm:$0xff] %vm33_vm1, %v351_v53  ;;  %v816_v63 = vmax.f32 %v342_v54, 0.0  ;;  %v420_v14 = vmul.f32 %v351_v53, %v351_v53  ;;  %v384_v22 = vsel %vm33_vm1, %v351_v53, 0.0 }
  0xab   :  { %v236_v1 = vadd.f32 %v212_v57, %v133_v52  ;;  %v222_v2 = vpop.f32.mrf.mxu3  ;;  %371 = vst.msk [vmem:[%s954_s7 + $0x30] sm:$0xff] %vm33_vm1, %v805_v58  ;;  %v827_v6 = vmax.f32 %v346_v60, 0.0  ;;  %v385_v38 = vadd.f32 %v384_v22, %v383_v51  ;;  %v390_v57 = vsel %vm33_vm1, %v762_v24, 0.0 }
  0xac   :  { %374 = vst.msk [vmem:[%s954_s7 + $0x48] sm:$0xff] %vm33_vm1, %v816_v63  ;;  %v240_v11 = vadd.f32 %v222_v2, %v137_v62  ;;  %v437_v34 = vsel %vm33_vm1, %v420_v14, 0.0  ;;  %v392_v2 = vsel %vm33_vm1, %v805_v58, 0.0  ;;  %v426_v24 = vmul.f32 %v749_v7, %v749_v7 }
  0xad   :  { %v264_v9 = vld [vmem:[#allocation2 + $0x18] sm:$0xff]  ;;  %378 = vst.msk [vmem:[%s954_s7 + $0x68] sm:$0xff] %vm33_vm1, %v827_v6  ;;  %v438_v45 = vadd.f32 %v437_v34, %v436_v37 }
  0xae   :  { %v316_v3 = vadd.f32 %v300_v59, %v264_v9  ;;  %v271_v15 = vld [vmem:[#allocation2 + $0x50] sm:$0xff]  ;;  %253 = vst.msk [vmem:[#allocation2 + $0x58] sm:$0xff] %vm33_vm1, %v236_v1  ;;  %v424_v59 = vmul.f32 %v805_v58, %v805_v58  ;;  %v443_v1 = vsel %vm33_vm1, %v423_v49, 0.0  ;;  %v427_v58 = vmul.f32 %v816_v63, %v816_v63 }
  0xaf   :  { %v268_v17 = vld [vmem:[#allocation2 + $0x38] sm:$0xff]  ;;  %v323_v20 = vadd.f32 %v307_v0, %v271_v15  ;;  %257 = vst.msk [vmem:[#allocation2 + $0x78] sm:$0xff] %vm33_vm1, %v240_v11 }
  0xb0   :  { %v336_v23 = vadd.f32 %v699_v32, %v316_v3  ;;  %v320_v25 = vadd.f32 %v304_v5, %v268_v17  ;;  %v275_v26 = vld [vmem:[#allocation2 + $0x70] sm:$0xff]  ;;  %v445_v11 = vsel %vm33_vm1, %v424_v59, 0.0 }
  0xb1   :  { %v343_v29 = vadd.f32 %v699_v32, %v323_v20  ;;  %v327_v30 = vadd.f32 %v311_v10, %v275_v26  ;;  %v449_v20 = vsel %vm33_vm1, %v426_v24, 0.0 }
  0xb2   :  { %v352_v35 = vmax.f32 %v336_v23, 0.0  ;;  %v340_v36 = vadd.f32 %v699_v32, %v320_v25  ;;  %v451_v23 = vsel %vm33_vm1, %v427_v58, 0.0 }
  0xb3   :  { %v359_v39 = vmax.f32 %v343_v29, 0.0  ;;  %v347_v40 = vadd.f32 %v699_v32, %v327_v30  ;;  %v430_v29 = vmul.f32 %v776_v28, %v776_v28 }
  0xb4   :  { %368 = vst.msk [vmem:[%s954_s7 + $0x18] sm:$0xff] %vm33_vm1, %v352_v35  ;;  %v386_v41 = vsel %vm33_vm1, %v352_v35, 0.0  ;;  %v421_v42 = vmul.f32 %v352_v35, %v352_v35  ;;  %v356_v43 = vmax.f32 %v340_v36, 0.0  ;;  %v431_v35 = vmul.f32 %v827_v6, %v827_v6 }
  0xb5   :  { %v387_v46 = vadd.f32 %v386_v41, %v385_v38  ;;  %375 = vst.msk [vmem:[%s954_s7 + $0x50] sm:$0xff] %vm33_vm1, %v359_v39  ;;  %v875_v47 = vmax.f32 %v347_v40, 0.0  ;;  %v272_v19 = vld [vmem:[#allocation2 + $0x58] sm:$0xff]  ;;  %v428_v18 = vmul.f32 %v359_v39, %v359_v39  ;;  %v400_v25 = vsel %vm33_vm1, %v359_v39, 0.0 }
  0xb6   :  { %v439_v50 = vsel %vm33_vm1, %v421_v42, 0.0  ;;  %372 = vst.msk [vmem:[%s954_s7 + $0x38] sm:$0xff] %vm33_vm1, %v356_v43  ;;  %v324_v54 = vadd.f32 %v308_v21, %v272_v19  ;;  %v276_v55 = vld [vmem:[#allocation2 + $0x78] sm:$0xff]  ;;  %v425_v4 = vmul.f32 %v356_v43, %v356_v43  ;;  %v394_v12 = vsel %vm33_vm1, %v356_v43, 0.0 }
  0xb7   :  { %v389_v52 = vadd.f32 %v388_v48, %v387_v46  ;;  %v440_v53 = vadd.f32 %v439_v50, %v438_v45  ;;  %379 = vst.msk [vmem:[%s954_s7 + $0x70] sm:$0xff] %vm33_vm1, %v875_v47  ;;  %v328_v60 = vadd.f32 %v312_v44, %v276_v55  ;;  %v398_v21 = vsel %vm33_vm1, %v816_v63, 0.0 }
  0xb8   :  { %v344_v0 = vadd.f32 %v699_v32, %v324_v54  ;;  %v447_v15 = vsel %vm33_vm1, %v425_v4, 0.0  ;;  %v453_v30 = vsel %vm33_vm1, %v428_v18, 0.0  ;;  %v404_v63 = vsel %vm33_vm1, %v776_v28, 0.0 }
  0xb9   :  { %v442_v61 = vadd.f32 %v441_v56, %v440_v53  ;;  %v391_v62 = vadd.f32 %v390_v57, %v389_v52  ;;  %v348_v5 = vadd.f32 %v699_v32, %v328_v60  ;;  %v396_v32 = vsel %vm33_vm1, %v749_v7, 0.0 }
  0xba   :  { %v360_v10 = vmax.f32 %v344_v0, 0.0  ;;  %v457_v39 = vsel %vm33_vm1, %v430_v29, 0.0  ;;  %v406_v40 = vsel %vm33_vm1, %v827_v6, 0.0  ;;  %v432_v41 = vmul.f32 %v875_v47, %v875_v47 }
  0xbb   :  { %v393_v8 = vadd.f32 %v392_v2, %v391_v62  ;;  %v444_v9 = vadd.f32 %v443_v1, %v442_v61  ;;  %v364_v13 = vmax.f32 %v348_v5, 0.0  ;;  %v459_v44 = vsel %vm33_vm1, %v431_v35, 0.0 }
  0xbc   :  { %376 = vst.msk [vmem:[%s954_s7 + $0x58] sm:$0xff] %vm33_vm1, %v360_v10  ;;  %v429_v26 = vmul.f32 %v360_v10, %v360_v10  ;;  %v402_v31 = vsel %vm33_vm1, %v360_v10, 0.0  ;;  %v408_v28 = vsel %vm33_vm1, %v875_v47, 0.0  ;;  %v461_v49 = vsel %vm33_vm1, %v432_v41, 0.0 }
  0xbd   :  { %v395_v14 = vadd.f32 %v394_v12, %v393_v8  ;;  %v446_v3 = vadd.f32 %v445_v11, %v444_v9  ;;  %380 = vst.msk [vmem:[%s954_s7 + $0x78] sm:$0xff] %vm33_vm1, %v364_v13  ;;  %v433_v45 = vmul.f32 %v364_v13, %v364_v13  ;;  %v410_v50 = vsel %vm33_vm1, %v364_v13, 0.0 }
  0xbe   :  { %v455_v36 = vsel %vm33_vm1, %v429_v26, 0.0  ;;  %v471_v57 = vlaneseq }
  0xbf   :  { %v397_v16 = vadd.f32 %v396_v32, %v395_v14  ;;  %v448_v17 = vadd.f32 %v447_v15, %v446_v3  ;;  %v463_v6 = vsel %vm33_vm1, %v433_v45, 0.0 }
  0xc0   :  { %v472_v62 = vshrl.u32 %v471_v57, 7 }
  0xc1   :  { %v450_v22 = vadd.f32 %v449_v20, %v448_v17  ;;  %v399_v7 = vadd.f32 %v398_v21, %v397_v16 }
  0xc2   :  { %vm474_vm3 = vcmp.eq.s32.totalorder %v472_v62, 1  ;;  %vm473_vm4 = vcmp.eq.s32.totalorder %v472_v62, 0 }
  0xc3   :  { %v401_v27 = vadd.f32 %v400_v25, %v399_v7  ;;  %v452_v51 = vadd.f32 %v451_v23, %v450_v22 }
  0xc5   :  { %v454_v33 = vadd.f32 %v453_v30, %v452_v51  ;;  %v403_v34 = vadd.f32 %v402_v31, %v401_v27 }
  0xc7   :  { %v405_v37 = vadd.f32 %v404_v63, %v403_v34  ;;  %v456_v38 = vadd.f32 %v455_v36, %v454_v33 }
  0xc9   :  { %v458_v42 = vadd.f32 %v457_v39, %v456_v38  ;;  %v407_v43 = vadd.f32 %v406_v40, %v405_v37 }
  0xcb   :  { %v409_v46 = vadd.f32 %v408_v28, %v407_v43  ;;  %v460_v48 = vadd.f32 %v459_v44, %v458_v42 }
  0xcd   :  { %v462_v19 = vadd.f32 %v461_v49, %v460_v48  ;;  %v411_v52 = vadd.f32 %v410_v50, %v409_v46 }
  0xcf   :  { %v412_v53 = vrot.slane %v411_v52, 4  ;;  %v464_v54 = vadd.f32 %v463_v6, %v462_v19 }
  0xd1   :  { %v413_v55 = vadd.f32 %v412_v53, %v411_v52  ;;  %v465_v56 = vrot.slane %v464_v54, 4 }
  0xd3   :  { %v414_v59 = vrot.slane %v413_v55, 2  ;;  %v466_v60 = vadd.f32 %v465_v56, %v464_v54 }
  0xd5   :  { %v415_v61 = vadd.f32 %v414_v59, %v413_v55  ;;  %v467_v47 = vrot.slane %v466_v60, 2 }
  0xd7   :  { %v468_v0 = vadd.f32 %v467_v47, %v466_v60  ;;  %v416_v1 = vrot.slane %v415_v61, 1 }
  0xd9   :  { %v469_v2 = vrot.slane %v468_v0, 1  ;;  %v417_v5 = vadd.f32 %v416_v1, %v415_v61 }
  0xdb   :  { %v470_v4 = vadd.f32 %v469_v2, %v468_v0 }
  0xdd   :  { %v475_v8 = vsel %vm474_vm3, %v470_v4, 0.0 }
  0xde   :  { %v476_v9 = vsel %vm473_vm4, %v417_v5, %v475_v8 }
  0xdf   :  { %477 = vst.msk [vmem:[%s955_s8] sm:$0xff] %vm33_vm1, %v476_v9 }

</bundles_post_ra>
